<compile_context>
chip_gen: v7x
topology: tpu7x:2x2x1
jax: 0.10.0
libtpu: 0.0.40
codegen_flags: <defaults>
</compile_context>

<pallas_src>
import jax
import jax.numpy as jnp
from jax.experimental import pallas as pl
from jax.experimental.pallas import tpu as pltpu

VMEM_LIMIT = 48 * 1024 * 1024   # scoped-VMEM budget (safe on v5e/v6e/v7x)
BN_EPS = 1e-5
GN_EPS = 1e-5


def _round_up(x, m):
    return (x + m - 1) // m * m


def _edge_masks(H, W):
    """(H*W, 2) f32: col 0 zeroes outputs at x==0 (left wrap of the flat conv),
    col 1 zeroes outputs at x==W-1 (right wrap)."""
    col = jnp.arange(H * W, dtype=jnp.int32) % W
    return jnp.stack([(col > 0), (col < W - 1)], axis=-1).astype(jnp.float32)


# ----------------------------------------------------------------------------
# Kernel 1: SpatialAttention core: conv3x3 + BN(eval) + ReLU -> feat (bf16),
#           channel mean/max maps and the 1x1 "cosine" conv (tiny outputs)
# ----------------------------------------------------------------------------

def spatial_attention_core(x, p, in_w, in_b, edge_mask, H, W):
    B, HW, Cin = x.shape
    C = p['conv_w'].shape[-1]
    OFF = _round_up(W + 1, 16)        # sublane-aligned interior offset (bf16 tile)
    ROWS = OFF + HW + W + 1           # flat y-padded activation rows

    bn_scale = p['bn_gamma'] / jnp.sqrt(p['bn_rv'] + BN_EPS)
    bn_shift = (p['conv_b'] - p['bn_rm']) * bn_scale + p['bn_beta']
    wk = p['conv_w'].reshape(9, Cin, C).astype(jnp.bfloat16)
    sc = bn_scale.reshape(1, C).astype(jnp.float32)
    sh = bn_shift.reshape(1, C).astype(jnp.float32)
    wi = in_w.reshape(C, 1).astype(jnp.bfloat16)
    bi = in_b.reshape(-1).astype(jnp.float32)          # (1,) SMEM scalar

    def kernel(x_ref, em_ref, w_ref, sc_ref, sh_ref, wi_ref, bi_ref,
               feat_ref, avg_ref, max_ref, cos_ref, xp_ref):
        # flat y-padded activation scratch: zero only the halo rows, overwrite
        # the interior every step (no full-buffer zero fill).
        xp_ref[0:OFF, :] = jnp.zeros((OFF, Cin), jnp.bfloat16)
        xp_ref[OFF + HW:ROWS, :] = jnp.zeros((ROWS - OFF - HW, Cin), jnp.bfloat16)
        xp_ref[OFF:OFF + HW, :] = x_ref[0]

        mask_l = em_ref[:, 0:1]
        mask_r = em_ref[:, 1:2]

        def tap_group(kx):            # 3 vertically shifted taps, value-chain acc
            g = None
            for ky in range(3):
                start = OFF + (ky - 1) * W + (kx - 1)
                patch = xp_ref[start:start + HW, :]          # contiguous slice
                d = jnp.dot(patch, w_ref[ky * 3 + kx],
                            preferred_element_type=jnp.float32)
                g = d if g is None else g + d
            return g

        acc = tap_group(1)
        acc = acc + mask_l * tap_group(0)
        acc = acc + mask_r * tap_group(2)

        fm = jnp.maximum(acc * sc_ref[...] + sh_ref[...], 0.0)   # (HW, C) f32
        fm_bf = fm.astype(jnp.bfloat16)
        feat_ref[...] = fm_bf.reshape(1, HW, C)

        avg_ref[...] = jnp.mean(fm, axis=-1, keepdims=True).reshape(1, HW, 1)
        max_ref[...] = jnp.max(fm, axis=-1, keepdims=True).reshape(1, HW, 1)
        cos_ref[...] = (jnp.dot(fm_bf, wi_ref[...],
                                preferred_element_type=jnp.float32)
                        + bi_ref[0]).reshape(1, HW, 1)

    return pl.pallas_call(
        kernel,
        out_shape=(jax.ShapeDtypeStruct((B, HW, C), jnp.bfloat16),
                   jax.ShapeDtypeStruct((B, HW, 1), jnp.float32),
                   jax.ShapeDtypeStruct((B, HW, 1), jnp.float32),
                   jax.ShapeDtypeStruct((B, HW, 1), jnp.float32)),
        grid=(B,),
        in_specs=[
            pl.BlockSpec((1, HW, Cin), lambda b: (b, 0, 0)),
            pl.BlockSpec((HW, 2), lambda b: (0, 0)),
            pl.BlockSpec((9, Cin, C), lambda b: (0, 0, 0)),
            pl.BlockSpec((1, C), lambda b: (0, 0)),
            pl.BlockSpec((1, C), lambda b: (0, 0)),
            pl.BlockSpec((C, 1), lambda b: (0, 0)),
            pl.BlockSpec(memory_space=pltpu.MemorySpace.SMEM),
        ],
        out_specs=(pl.BlockSpec((1, HW, C), lambda b: (b, 0, 0)),
                   pl.BlockSpec((1, HW, 1), lambda b: (b, 0, 0)),
                   pl.BlockSpec((1, HW, 1), lambda b: (b, 0, 0)),
                   pl.BlockSpec((1, HW, 1), lambda b: (b, 0, 0))),
        scratch_shapes=[pltpu.VMEM((ROWS, Cin), jnp.bfloat16)],
        compiler_params=pltpu.CompilerParams(
            dimension_semantics=("parallel",),
            vmem_limit_bytes=VMEM_LIMIT),
    )(x, edge_mask, wk, sc, sh, wi, bi)


# ----------------------------------------------------------------------------
# Kernel 2: per-sample 7x7 attention conv (lane-dense) + sigmoid for both
#           branches, global cosine gate, affinity bmm + mlp + flat softmax +
#           weight update, final sigmoid gating maps
# ----------------------------------------------------------------------------

def attention_and_gates(avg_r, max_r, avg_d, max_d, cos_r, cos_d, scalars, H, W):
    B = avg_r.shape[0]

    def kernel(s_ref, ar_ref, mr_ref, ad_ref, md_ref, cr_ref, cd_ref,
               sr_ref, sd_ref, pa_r, pm_r, pa_d, pm_d):

        def attn_branch(a_ref, m_ref, pa_ref, pm_ref, off):
            # lane-dense (H+6, W+6) padded pooled maps; 49 taps on (H, W) tiles
            pa_ref[...] = jnp.zeros_like(pa_ref)
            pm_ref[...] = jnp.zeros_like(pm_ref)
            pa_ref[3:3 + H, 3:3 + W] = a_ref[0]
            pm_ref[3:3 + H, 3:3 + W] = m_ref[0]
            attn = jnp.zeros((H, W), jnp.float32) + s_ref[off + 98]
            for t in range(49):
                ky, kx = t // 7, t % 7
                attn = (attn
                        + pa_ref[ky:ky + H, kx:kx + W] * s_ref[off + 2 * t]
                        + pm_ref[ky:ky + H, kx:kx + W] * s_ref[off + 2 * t + 1])
            return jax.nn.sigmoid(attn)

        rw = attn_branch(ar_ref, mr_ref, pa_r, pm_r, 0)
        dw = attn_branch(ad_ref, md_ref, pa_d, pm_d, 99)

        # global cosine similarity of the flattened 1-channel maps, -> (1+cos)/2
        rc = cr_ref[0]
        dc = cd_ref[0]
        dot_rd = jnp.sum(rc * dc)
        nr = jnp.sqrt(jnp.sum(rc * rc))
        nd = jnp.sqrt(jnp.sum(dc * dc))
        cosine = dot_rd / (jnp.maximum(nr, 1e-8) * jnp.maximum(nd, 1e-8))
        gate = (1.0 + cosine) * 0.5

        # affinity = rgb_w @ depth_w^T (contract over W)
        aff = jax.lax.dot_general(rw, dw, (((1,), (1,)), ((), ())),
                                  preferred_element_type=jnp.float32)

        def mlp_softmax(wm, bm):
            a = jnp.maximum(aff * wm + bm, 0.0)      # 1x1 conv (1->1) + ReLU
            a = a - jnp.max(a)                       # softmax over all H*H entries
            e = jnp.exp(a)
            return e / jnp.sum(e)

        MLP = 198
        ar_sm = mlp_softmax(s_ref[MLP + 0], s_ref[MLP + 1])
        ad_sm = mlp_softmax(s_ref[MLP + 2], s_ref[MLP + 3])
        rw_new = rw + s_ref[MLP + 4] * jnp.dot(ar_sm, rw,
                                               preferred_element_type=jnp.float32)
        dw_new = dw + s_ref[MLP + 5] * jnp.dot(ad_sm, dw,
                                               preferred_element_type=jnp.float32)
        sr_ref[...] = jax.nn.sigmoid(rw_new).reshape(1, H, W)
        sd_ref[...] = (gate * jax.nn.sigmoid(dw_new)).reshape(1, H, W)

    map_spec = pl.BlockSpec((1, H, W), lambda b: (b, 0, 0))
    return pl.pallas_call(
        kernel,
        out_shape=(jax.ShapeDtypeStruct((B, H, W), jnp.float32),
                   jax.ShapeDtypeStruct((B, H, W), jnp.float32)),
        grid=(B,),
        in_specs=[pl.BlockSpec(memory_space=pltpu.MemorySpace.SMEM)]
                + [map_spec] * 6,
        out_specs=(map_spec, map_spec),
        scratch_shapes=[pltpu.VMEM((H + 6, W + 6), jnp.float32)
                        for _ in range(4)],
        compiler_params=pltpu.CompilerParams(
            dimension_semantics=("parallel",),
            vmem_limit_bytes=VMEM_LIMIT),
    )(scalars, avg_r, max_r, avg_d, max_d, cos_r, cos_d)


# ----------------------------------------------------------------------------
# Kernel 3: fused [gate * x (+ add)] -> 3x3 conv (no bias) -> GroupNorm -> ReLU
# ----------------------------------------------------------------------------

def conv_gn_relu(x, w, gamma, beta, num_groups, edge_mask, H, W,
                 gate=None, add=None):
    B, HW, Cin = x.shape
    Cout = w.shape[-1]
    cg = Cout // num_groups
    tco = Cout if Cout <= 128 else (128 if (Cout % 128 == 0 and 128 % cg == 0) else Cout)
    # TODO(synk): on v6e/v7x try tco=256 + a row-tiled inner accumulation loop to
    # use the full 256-wide MXU; tco<=128 is the safe cross-generation default.
    n_co = Cout // tco
    gt = tco // cg
    OFF = _round_up(W + 1, 16)
    ROWS = OFF + HW + W + 1
    n_elem = float(HW * cg)

    wk = w.reshape(9, Cin, Cout).astype(jnp.bfloat16)
    gmr = gamma.reshape(1, Cout).astype(jnp.float32)
    btr = beta.reshape(1, Cout).astype(jnp.float32)
    M = (jnp.arange(tco)[:, None] // cg == jnp.arange(gt)[None, :]).astype(jnp.float32)
    MT = jnp.transpose(M)

    has_gate = gate is not None
    has_add = add is not None

    def kernel(*refs):
        i = 0
        x_ref = refs[i]; i += 1
        gate_ref = add_ref = None
        if has_gate:
            gate_ref = refs[i]; i += 1
        if has_add:
            add_ref = refs[i]; i += 1
        em_ref, w_ref, gm_ref, bt_ref, m_ref, mt_ref, o_ref, xp_ref = refs[i:]
        co = pl.program_id(1)

        # padded (gated / summed) input filled once per batch step; persists
        # across the sequential 'arbitrary' co axis on a single core
        @pl.when(co == 0)
        def _():
            xp_ref[0:OFF, :] = jnp.zeros((OFF, Cin), jnp.bfloat16)
            xp_ref[OFF + HW:ROWS, :] = jnp.zeros((ROWS - OFF - HW, Cin),
                                                 jnp.bfloat16)
            if has_gate or has_add:
                interior = x_ref[0].astype(jnp.float32)
                if has_gate:
                    interior = interior * gate_ref[0]
                if has_add:
                    interior = interior + add_ref[0].astype(jnp.float32)
                xp_ref[OFF:OFF + HW, :] = interior.astype(jnp.bfloat16)
            else:
                xp_ref[OFF:OFF + HW, :] = x_ref[0]

        mask_l = em_ref[:, 0:1]
        mask_r = em_ref[:, 1:2]

        def tap_group(kx):
            g = None
            for ky in range(3):
                start = OFF + (ky - 1) * W + (kx - 1)
                patch = xp_ref[start:start + HW, :]
                d = jnp.dot(patch, w_ref[ky * 3 + kx],
                            preferred_element_type=jnp.float32)
                g = d if g is None else g + d
            return g

        xf = tap_group(1)
        xf = xf + mask_l * tap_group(0)
        xf = xf + mask_r * tap_group(2)                      # (HW, tco) f32

        # GroupNorm (groups never straddle a channel tile: 128 % cg == 0 guard)
        s1 = jnp.sum(xf, axis=0, keepdims=True)
        s2 = jnp.sum(xf * xf, axis=0, keepdims=True)
        gs1 = jnp.dot(s1, m_ref[...], preferred_element_type=jnp.float32)
        gs2 = jnp.dot(s2, m_ref[...], preferred_element_type=jnp.float32)
        mean = gs1 / n_elem
        var = gs2 / n_elem - mean * mean
        inv = jax.lax.rsqrt(var + GN_EPS)
        mean_c = jnp.dot(mean, mt_ref[...], preferred_element_type=jnp.float32)
        inv_c = jnp.dot(inv, mt_ref[...], preferred_element_type=jnp.float32)
        y = (xf - mean_c) * inv_c * gm_ref[...] + bt_ref[...]
        o_ref[...] = jnp.maximum(y, 0.0).astype(jnp.bfloat16).reshape(1, HW, tco)

    in_arrays = [x]
    in_specs = [pl.BlockSpec((1, HW, Cin), lambda b, co: (b, 0, 0))]
    if has_gate:
        in_arrays.append(gate)
        in_specs.append(pl.BlockSpec((1, HW, 1), lambda b, co: (b, 0, 0)))
    if has_add:
        in_arrays.append(add)
        in_specs.append(pl.BlockSpec((1, HW, Cin), lambda b, co: (b, 0, 0)))
    in_arrays += [edge_mask, wk, gmr, btr, M, MT]
    in_specs += [
        pl.BlockSpec((HW, 2), lambda b, co: (0, 0)),
        pl.BlockSpec((9, Cin, tco), lambda b, co: (0, 0, co)),
        pl.BlockSpec((1, tco), lambda b, co: (0, co)),
        pl.BlockSpec((1, tco), lambda b, co: (0, co)),
        pl.BlockSpec((tco, gt), lambda b, co: (0, 0)),
        pl.BlockSpec((gt, tco), lambda b, co: (0, 0)),
    ]

    return pl.pallas_call(
        kernel,
        out_shape=jax.ShapeDtypeStruct((B, HW, Cout), jnp.bfloat16),
        grid=(B, n_co),
        in_specs=in_specs,
        out_specs=pl.BlockSpec((1, HW, tco), lambda b, co: (b, 0, co)),
        scratch_shapes=[pltpu.VMEM((ROWS, Cin), jnp.bfloat16)],
        compiler_params=pltpu.CompilerParams(
            dimension_semantics=("parallel", "arbitrary"),
            vmem_limit_bytes=VMEM_LIMIT),
    )(*in_arrays)


# ----------------------------------------------------------------------------
# Kernel 4: fused mask head: 3x3 conv ((dim+2)->dim, coords-first concat)
#           + ReLU + 1x1 projection (projection accumulated across co tiles)
# ----------------------------------------------------------------------------

def mask_head(s, mask_w, mask_b, proj_w, proj_b, coords, edge_mask, H, W):
    B, HW, C = s.shape
    Cout = mask_w.shape[-1]
    KD = proj_w.shape[-1]
    tco = Cout if Cout <= 128 else (128 if Cout % 128 == 0 else Cout)
    n_co = Cout // tco
    OFF = _round_up(W + 1, 16)
    ROWS = OFF + HW + W + 1

    w_feat = mask_w[:, :, 2:, :].reshape(9, C, Cout).astype(jnp.bfloat16)
    # batch-independent im2col of the 2 coordinate channels: (HW, 18) f32,
    # fetched once (constant block index) and recombined in-kernel
    cp = jnp.pad(coords, ((1, 1), (1, 1), (0, 0)))
    taps = [cp[ky:ky + H, kx:kx + W, :] for ky in range(3) for kx in range(3)]
    coord_patch = jnp.concatenate(taps, axis=-1).reshape(HW, 18).astype(jnp.float32)
    coord_w = mask_w[:, :, :2, :].reshape(18, Cout).astype(jnp.float32)
    mb = mask_b.reshape(1, Cout).astype(jnp.float32)
    pw = proj_w.reshape(Cout, KD).astype(jnp.bfloat16)
    pb = proj_b.reshape(1, KD).astype(jnp.float32)

    def kernel(s_ref, em_ref, w_ref, cp_ref, cw_ref, mb_ref, pw_ref, pb_ref,
               o_ref, xp_ref, pacc_ref):
        co = pl.program_id(1)

        @pl.when(co == 0)
        def _():
            xp_ref[0:OFF, :] = jnp.zeros((OFF, C), jnp.bfloat16)
            xp_ref[OFF + HW:ROWS, :] = jnp.zeros((ROWS - OFF - HW, C),
                                                 jnp.bfloat16)
            xp_ref[OFF:OFF + HW, :] = s_ref[0]

        mask_l = em_ref[:, 0:1]
        mask_r = em_ref[:, 1:2]

        def tap_group(kx):
            g = None
            for ky in range(3):
                start = OFF + (ky - 1) * W + (kx - 1)
                patch = xp_ref[start:start + HW, :]
                d = jnp.dot(patch, w_ref[ky * 3 + kx],
                            preferred_element_type=jnp.float32)
                g = d if g is None else g + d
            return g

        # coordinate channels (coords-first concat, order [x_loc, y_loc]) + bias
        acc = jnp.dot(cp_ref[...], cw_ref[...],
                      preferred_element_type=jnp.float32) + mb_ref[...]
        acc = acc + tap_group(1)
        acc = acc + mask_l * tap_group(0)
        acc = acc + mask_r * tap_group(2)

        r = jnp.maximum(acc, 0.0).astype(jnp.bfloat16)
        contrib = jnp.dot(r, pw_ref[...], preferred_element_type=jnp.float32)

        @pl.when(co == 0)
        def _():
            pacc_ref[...] = contrib

        @pl.when(co != 0)
        def _():
            pacc_ref[...] += contrib

        @pl.when(co == n_co - 1)
        def _():
            o_ref[...] = (pacc_ref[...] + pb_ref[...]).reshape(1, HW, KD)

    return pl.pallas_call(
        kernel,
        out_shape=jax.ShapeDtypeStruct((B, HW, KD), jnp.float32),
        grid=(B, n_co),
        in_specs=[
            pl.BlockSpec((1, HW, C), lambda b, co: (b, 0, 0)),
            pl.BlockSpec((HW, 2), lambda b, co: (0, 0)),
            pl.BlockSpec((9, C, tco), lambda b, co: (0, 0, co)),
            pl.BlockSpec((HW, 18), lambda b, co: (0, 0)),
            pl.BlockSpec((18, tco), lambda b, co: (0, co)),
            pl.BlockSpec((1, tco), lambda b, co: (0, co)),
            pl.BlockSpec((tco, KD), lambda b, co: (co, 0)),
            pl.BlockSpec((1, KD), lambda b, co: (0, 0)),
        ],
        out_specs=pl.BlockSpec((1, HW, KD), lambda b, co: (b, 0, 0)),
        scratch_shapes=[pltpu.VMEM((ROWS, C), jnp.bfloat16),
                        pltpu.VMEM((HW, KD), jnp.float32)],
        compiler_params=pltpu.CompilerParams(
            dimension_semantics=("parallel", "arbitrary"),
            vmem_limit_bytes=VMEM_LIMIT),
    )(s, edge_mask, w_feat, coord_patch, coord_w, mb, pw, pb)


# ----------------------------------------------------------------------------
# Module assembly (small XLA glue only: transposes, tiny reshapes, coord table)
# ----------------------------------------------------------------------------

def weight_sharing_fusion(rgb, depth, P, edge_mask, H, W):
    B, HW, _ = rgb.shape

    rgb_feat, r_avg, r_max, r_cos = spatial_attention_core(
        rgb, P['sa_rgb'], P['rgb_in_w'], P['rgb_in_b'], edge_mask, H, W)
    depth_feat, d_avg, d_max, d_cos = spatial_attention_core(
        depth, P['sa_depth'], P['depth_in_w'], P['depth_in_b'], edge_mask, H, W)

    # scalar table: [rgb attn w(98), b(1), depth attn w(98), b(1), mlp(6)]
    scalars = jnp.concatenate([
        P['sa_rgb']['attn_w'].reshape(-1), P['sa_rgb']['attn_b'].reshape(-1),
        P['sa_depth']['attn_w'].reshape(-1), P['sa_depth']['attn_b'].reshape(-1),
        jnp.stack([P['rgb_mlp_w'], P['rgb_mlp_b'],
                   P['depth_mlp_w'], P['depth_mlp_b'],
                   P['g1'], P['g2']]).reshape(-1),
    ]).astype(jnp.float32)

    sig_r, sgate_d = attention_and_gates(
        r_avg.reshape(B, H, W), r_max.reshape(B, H, W),
        d_avg.reshape(B, H, W), d_max.reshape(B, H, W),
        r_cos.reshape(B, H, W), d_cos.reshape(B, H, W),
        scalars, H, W)

    # sigmoid gating (and the cosine gate) folded into the conv prologues
    d = conv_gn_relu(depth_feat, P['depth_conv_w'], P['depth_gn_g'],
                     P['depth_gn_b'], P['num_groups'], edge_mask, H, W,
                     gate=sgate_d.reshape(B, HW, 1))
    s = conv_gn_relu(rgb_feat, P['smooth_conv_w'], P['smooth_gn_g'],
                     P['smooth_gn_b'], P['num_groups'], edge_mask, H, W,
                     gate=sig_r.reshape(B, HW, 1), add=d)
    return s


def calibnet_fusion_decoder(rgb_features, depth_features, P):
    B, Cin, H, W = rgb_features[2].shape
    HW = H * W

    # cast to bf16 before the NCHW->NHWC relayout (halves transpose traffic),
    # then flatten spatial to (B, H*W, Cin) (free, row-major)
    x_rgb = jnp.transpose(rgb_features[2].astype(jnp.bfloat16),
                          (0, 2, 3, 1)).reshape(B, HW, Cin)
    x_depth = jnp.transpose(depth_features[2].astype(jnp.bfloat16),
                            (0, 2, 3, 1)).reshape(B, HW, Cin)

    edge_mask = _edge_masks(H, W)

    # compute_coordinates(): channel order [x_loc, y_loc], values in [-1, 1]
    yv = -1.0 + 2.0 * jnp.arange(H, dtype=jnp.float32) / (H - 1)
    xv = -1.0 + 2.0 * jnp.arange(W, dtype=jnp.float32) / (W - 1)
    coords = jnp.stack([jnp.broadcast_to(xv[None, :], (H, W)),
                        jnp.broadcast_to(yv[:, None], (H, W))], axis=-1)

    feat = weight_sharing_fusion(x_rgb, x_depth, P, edge_mask, H, W)
    out = mask_head(feat, P['mask_w'], P['mask_b'], P['proj_w'], P['proj_b'],
                    coords, edge_mask, H, W)
    out = out.reshape(B, H, W, -1)
    return jnp.transpose(out, (0, 3, 1, 2))        # NCHW (B, MASK_DIM, H, W)


# ----------------------------------------------------------------------------
# Deterministic synthetic parameters (kaiming-style)
# ----------------------------------------------------------------------------

def init_params(key, in_ch, dim, kernel_dim, num_groups):
    keys = jax.random.split(key, 12)

    def kaiming(k, shape, fan_in):
        return jax.random.normal(k, shape, jnp.float32) * jnp.sqrt(2.0 / fan_in)

    def sa_params(k):
        k1, k2 = jax.random.split(k)
        return dict(
            conv_w=kaiming(k1, (3, 3, in_ch, dim), in_ch * 9),
            conv_b=jnp.zeros((dim,), jnp.float32),
            bn_gamma=jnp.ones((dim,), jnp.float32),
            bn_beta=jnp.zeros((dim,), jnp.float32),
            bn_rm=jnp.zeros((dim,), jnp.float32),
            bn_rv=jnp.ones((dim,), jnp.float32),
            attn_w=kaiming(k2, (7, 7, 2, 1), 2 * 49),
            attn_b=jnp.zeros((1,), jnp.float32),
        )

    return dict(
        sa_rgb=sa_params(keys[0]),
        sa_depth=sa_params(keys[1]),
        rgb_in_w=kaiming(keys[2], (1, 1, dim, 1), dim),
        rgb_in_b=jnp.zeros((1,), jnp.float32),
        depth_in_w=kaiming(keys[3], (1, 1, dim, 1), dim),
        depth_in_b=jnp.zeros((1,), jnp.float32),
        rgb_mlp_w=jax.random.normal(keys[4], ()) * jnp.sqrt(2.0),
        rgb_mlp_b=jnp.zeros(()),
        depth_mlp_w=jax.random.normal(keys[5], ()) * jnp.sqrt(2.0),
        depth_mlp_b=jnp.zeros(()),
        g1=jnp.ones(()),
        g2=jnp.ones(()),
        depth_conv_w=kaiming(keys[6], (3, 3, dim, dim), dim * 9),
        depth_gn_g=jnp.ones((dim,), jnp.float32),
        depth_gn_b=jnp.zeros((dim,), jnp.float32),
        smooth_conv_w=kaiming(keys[7], (3, 3, dim, dim), dim * 9),
        smooth_gn_g=jnp.ones((dim,), jnp.float32),
        smooth_gn_b=jnp.zeros((dim,), jnp.float32),
        mask_w=kaiming(keys[8], (3, 3, dim + 2, dim), (dim + 2) * 9),
        mask_b=jnp.zeros((dim,), jnp.float32),
        proj_w=kaiming(keys[9], (1, 1, dim, kernel_dim), dim),
        proj_b=jnp.zeros((kernel_dim,), jnp.float32),
        num_groups=num_groups,
    )


if __name__ == "__main__":
    # Small synthetic config: INPUT_DIM must equal the fusion dim (the PyTorch
    # module only runs when input_dim == conv_dim); original uses 256, we use 32.
    B, C_IN, H, W = 2, 32, 16, 16
    DIM = 32          # fusion conv dim (256 in the real config)
    KERNEL_DIM = 8    # MASK_DIM
    NUM_GROUPS = 32   # GroupNorm(32, dim)

    key = jax.random.PRNGKey(0)
    kp, kr, kd = jax.random.split(key, 3)
    params = init_params(kp, C_IN, DIM, KERNEL_DIM, NUM_GROUPS)

    def make_pyramid(k):
        k1, k2, k3 = jax.random.split(k, 3)
        # only level [2] is consumed by the decoder
        return [jax.random.normal(k1, (B, C_IN, H * 4, W * 4), jnp.float32),
                jax.random.normal(k2, (B, C_IN, H * 2, W * 2), jnp.float32),
                jax.random.normal(k3, (B, C_IN, H, W), jnp.float32)]

    rgb_features = make_pyramid(kr)
    depth_features = make_pyramid(kd)

    out = calibnet_fusion_decoder(rgb_features, depth_features, params)
    out = jax.block_until_ready(out)
    assert out.shape == (B, KERNEL_DIM, H, W)
    assert bool(jnp.all(jnp.isfinite(out)))
    print("KERNEL_OK")
</pallas_src>

<mosaic_0001>
module attributes {stable_mosaic.version = 11 : i64} {
  func.func @kernel(%arg0: i32, %arg1: memref<1x256x32xbf16, #tpu.memory_space<vmem>>, %arg2: memref<256x2xf32, #tpu.memory_space<vmem>>, %arg3: memref<9x32x32xbf16, #tpu.memory_space<vmem>>, %arg4: memref<1x32xf32, #tpu.memory_space<vmem>>, %arg5: memref<1x32xf32, #tpu.memory_space<vmem>>, %arg6: memref<32x1xbf16, #tpu.memory_space<vmem>>, %arg7: memref<1xf32, #tpu.memory_space<smem>>, %arg8: memref<1x256x32xbf16, #tpu.memory_space<vmem>>, %arg9: memref<1x256x1xf32, #tpu.memory_space<vmem>>, %arg10: memref<1x256x1xf32, #tpu.memory_space<vmem>>, %arg11: memref<1x256x1xf32, #tpu.memory_space<vmem>>, %arg12: memref<305x32xbf16, #tpu.memory_space<vmem>>) attributes {dimension_semantics = [#tpu.dimension_semantics<parallel>], iteration_bounds = array<i64: 2>, scalar_prefetch = 0 : i64, scratch_operands = 1 : i64, tpu.core_type = #tpu.core_type<tc>, window_params = [{transform_indices = @transform_0, window_bounds = array<i64: 1, 256, 32>}, {pipeline_mode = #tpu.pipeline_mode<synchronous>, transform_indices = @transform_1, window_bounds = array<i64: 256, 2>}, {pipeline_mode = #tpu.pipeline_mode<synchronous>, transform_indices = @transform_2, window_bounds = array<i64: 9, 32, 32>}, {pipeline_mode = #tpu.pipeline_mode<synchronous>, transform_indices = @transform_3, window_bounds = array<i64: 1, 32>}, {pipeline_mode = #tpu.pipeline_mode<synchronous>, transform_indices = @transform_4, window_bounds = array<i64: 1, 32>}, {pipeline_mode = #tpu.pipeline_mode<synchronous>, transform_indices = @transform_5, window_bounds = array<i64: 32, 1>}, {transform_indices = @transform_6, window_bounds = array<i64: 1>}, {transform_indices = @transform_7, window_bounds = array<i64: 1, 256, 32>}, {transform_indices = @transform_8, window_bounds = array<i64: 1, 256, 1>}, {transform_indices = @transform_9, window_bounds = array<i64: 1, 256, 1>}, {transform_indices = @transform_10, window_bounds = array<i64: 1, 256, 1>}]} {
    %cst = arith.constant 0.000000e+00 : bf16
    %0 = vector.broadcast %cst : bf16 to vector<32x32xbf16>
    %c0 = arith.constant 0 : index
    %c0_0 = arith.constant 0 : index
    %1 = vector.load %arg12[%c0, %c0_0] : memref<305x32xbf16, #tpu.memory_space<vmem>>, vector<32x32xbf16>
    tpu.vector_store %arg12[%c0, %c0_0], %0 {strides = array<i32>} : memref<305x32xbf16, #tpu.memory_space<vmem>>, vector<32x32xbf16>,
    %cst_1 = arith.constant 0.000000e+00 : bf16
    %2 = vector.broadcast %cst_1 : bf16 to vector<17x32xbf16>
    %c288 = arith.constant 288 : index
    %c0_2 = arith.constant 0 : index
    %3 = vector.load %arg12[%c288, %c0_2] : memref<305x32xbf16, #tpu.memory_space<vmem>>, vector<17x32xbf16>
    tpu.vector_store %arg12[%c288, %c0_2], %2 {strides = array<i32>} : memref<305x32xbf16, #tpu.memory_space<vmem>>, vector<17x32xbf16>,
    %c0_3 = arith.constant 0 : index
    %c0_4 = arith.constant 0 : index
    %c0_5 = arith.constant 0 : index
    %4 = vector.load %arg1[%c0_3, %c0_4, %c0_5] : memref<1x256x32xbf16, #tpu.memory_space<vmem>>, vector<1x256x32xbf16>
    %5 = vector.shape_cast %4 : vector<1x256x32xbf16> to vector<256x32xbf16>
    %c32 = arith.constant 32 : index
    %c0_6 = arith.constant 0 : index
    %6 = vector.load %arg12[%c32, %c0_6] : memref<305x32xbf16, #tpu.memory_space<vmem>>, vector<256x32xbf16>
    tpu.vector_store %arg12[%c32, %c0_6], %5 {strides = array<i32>} : memref<305x32xbf16, #tpu.memory_space<vmem>>, vector<256x32xbf16>,
    %c0_7 = arith.constant 0 : index
    %c0_8 = arith.constant 0 : index
    %7 = vector.load %arg2[%c0_7, %c0_8] : memref<256x2xf32, #tpu.memory_space<vmem>>, vector<256x1xf32>
    %c0_9 = arith.constant 0 : index
    %c1 = arith.constant 1 : index
    %8 = vector.load %arg2[%c0_9, %c1] : memref<256x2xf32, #tpu.memory_space<vmem>>, vector<256x1xf32>
    %c16 = arith.constant 16 : index
    %c0_10 = arith.constant 0 : index
    %9 = vector.load %arg12[%c16, %c0_10] : memref<305x32xbf16, #tpu.memory_space<vmem>>, vector<256x32xbf16>
    %c1_11 = arith.constant 1 : index
    %c0_12 = arith.constant 0 : index
    %c0_13 = arith.constant 0 : index
    %10 = vector.load %arg3[%c1_11, %c0_12, %c0_13] : memref<9x32x32xbf16, #tpu.memory_space<vmem>>, vector<1x32x32xbf16>
    %11 = vector.shape_cast %10 : vector<1x32x32xbf16> to vector<32x32xbf16>
    %cst_14 = arith.constant dense<0.000000e+00> : vector<256x32xf32>
    %12 = tpu.matmul %9, %11, %cst_14 {dimension_numbers = #tpu.dot_dimension_numbers<[1], [0], [0], [1], [0, 0, 1, 1], [], []>} : vector<256x32xbf16>, vector<32x32xbf16>, vector<256x32xf32> -> vector<256x32xf32>
    %c32_15 = arith.constant 32 : index
    %c0_16 = arith.constant 0 : index
    %13 = vector.load %arg12[%c32_15, %c0_16] : memref<305x32xbf16, #tpu.memory_space<vmem>>, vector<256x32xbf16>
    %c4 = arith.constant 4 : index
    %c0_17 = arith.constant 0 : index
    %c0_18 = arith.constant 0 : index
    %14 = vector.load %arg3[%c4, %c0_17, %c0_18] : memref<9x32x32xbf16, #tpu.memory_space<vmem>>, vector<1x32x32xbf16>
    %15 = vector.shape_cast %14 : vector<1x32x32xbf16> to vector<32x32xbf16>
    %cst_19 = arith.constant dense<0.000000e+00> : vector<256x32xf32>
    %16 = tpu.matmul %13, %15, %cst_19 {dimension_numbers = #tpu.dot_dimension_numbers<[1], [0], [0], [1], [0, 0, 1, 1], [], []>} : vector<256x32xbf16>, vector<32x32xbf16>, vector<256x32xf32> -> vector<256x32xf32>
    %17 = arith.addf %12, %16 : vector<256x32xf32>
    %c48 = arith.constant 48 : index
    %c0_20 = arith.constant 0 : index
    %18 = vector.load %arg12[%c48, %c0_20] : memref<305x32xbf16, #tpu.memory_space<vmem>>, vector<256x32xbf16>
    %c7 = arith.constant 7 : index
    %c0_21 = arith.constant 0 : index
    %c0_22 = arith.constant 0 : index
    %19 = vector.load %arg3[%c7, %c0_21, %c0_22] : memref<9x32x32xbf16, #tpu.memory_space<vmem>>, vector<1x32x32xbf16>
    %20 = vector.shape_cast %19 : vector<1x32x32xbf16> to vector<32x32xbf16>
    %cst_23 = arith.constant dense<0.000000e+00> : vector<256x32xf32>
    %21 = tpu.matmul %18, %20, %cst_23 {dimension_numbers = #tpu.dot_dimension_numbers<[1], [0], [0], [1], [0, 0, 1, 1], [], []>} : vector<256x32xbf16>, vector<32x32xbf16>, vector<256x32xf32> -> vector<256x32xf32>
    %22 = arith.addf %17, %21 : vector<256x32xf32>
    %c15 = arith.constant 15 : index
    %c0_24 = arith.constant 0 : index
    %23 = vector.load %arg12[%c15, %c0_24] : memref<305x32xbf16, #tpu.memory_space<vmem>>, vector<256x32xbf16>
    %c0_25 = arith.constant 0 : index
    %c0_26 = arith.constant 0 : index
    %c0_27 = arith.constant 0 : index
    %24 = vector.load %arg3[%c0_25, %c0_26, %c0_27] : memref<9x32x32xbf16, #tpu.memory_space<vmem>>, vector<1x32x32xbf16>
    %25 = vector.shape_cast %24 : vector<1x32x32xbf16> to vector<32x32xbf16>
    %cst_28 = arith.constant dense<0.000000e+00> : vector<256x32xf32>
    %26 = tpu.matmul %23, %25, %cst_28 {dimension_numbers = #tpu.dot_dimension_numbers<[1], [0], [0], [1], [0, 0, 1, 1], [], []>} : vector<256x32xbf16>, vector<32x32xbf16>, vector<256x32xf32> -> vector<256x32xf32>
    %c31 = arith.constant 31 : index
    %c0_29 = arith.constant 0 : index
    %27 = vector.load %arg12[%c31, %c0_29] : memref<305x32xbf16, #tpu.memory_space<vmem>>, vector<256x32xbf16>
    %c3 = arith.constant 3 : index
    %c0_30 = arith.constant 0 : index
    %c0_31 = arith.constant 0 : index
    %28 = vector.load %arg3[%c3, %c0_30, %c0_31] : memref<9x32x32xbf16, #tpu.memory_space<vmem>>, vector<1x32x32xbf16>
    %29 = vector.shape_cast %28 : vector<1x32x32xbf16> to vector<32x32xbf16>
    %cst_32 = arith.constant dense<0.000000e+00> : vector<256x32xf32>
    %30 = tpu.matmul %27, %29, %cst_32 {dimension_numbers = #tpu.dot_dimension_numbers<[1], [0], [0], [1], [0, 0, 1, 1], [], []>} : vector<256x32xbf16>, vector<32x32xbf16>, vector<256x32xf32> -> vector<256x32xf32>
    %31 = arith.addf %26, %30 : vector<256x32xf32>
    %c47 = arith.constant 47 : index
    %c0_33 = arith.constant 0 : index
    %32 = vector.load %arg12[%c47, %c0_33] : memref<305x32xbf16, #tpu.memory_space<vmem>>, vector<256x32xbf16>
    %c6 = arith.constant 6 : index
    %c0_34 = arith.constant 0 : index
    %c0_35 = arith.constant 0 : index
    %33 = vector.load %arg3[%c6, %c0_34, %c0_35] : memref<9x32x32xbf16, #tpu.memory_space<vmem>>, vector<1x32x32xbf16>
    %34 = vector.shape_cast %33 : vector<1x32x32xbf16> to vector<32x32xbf16>
    %cst_36 = arith.constant dense<0.000000e+00> : vector<256x32xf32>
    %35 = tpu.matmul %32, %34, %cst_36 {dimension_numbers = #tpu.dot_dimension_numbers<[1], [0], [0], [1], [0, 0, 1, 1], [], []>} : vector<256x32xbf16>, vector<32x32xbf16>, vector<256x32xf32> -> vector<256x32xf32>
    %36 = arith.addf %31, %35 : vector<256x32xf32>
    %37 = vector.broadcast %7 : vector<256x1xf32> to vector<256x32xf32>
    %38 = arith.mulf %37, %36 : vector<256x32xf32>
    %39 = arith.addf %22, %38 : vector<256x32xf32>
    %c17 = arith.constant 17 : index
    %c0_37 = arith.constant 0 : index
    %40 = vector.load %arg12[%c17, %c0_37] : memref<305x32xbf16, #tpu.memory_space<vmem>>, vector<256x32xbf16>
    %c2 = arith.constant 2 : index
    %c0_38 = arith.constant 0 : index
    %c0_39 = arith.constant 0 : index
    %41 = vector.load %arg3[%c2, %c0_38, %c0_39] : memref<9x32x32xbf16, #tpu.memory_space<vmem>>, vector<1x32x32xbf16>
    %42 = vector.shape_cast %41 : vector<1x32x32xbf16> to vector<32x32xbf16>
    %cst_40 = arith.constant dense<0.000000e+00> : vector<256x32xf32>
    %43 = tpu.matmul %40, %42, %cst_40 {dimension_numbers = #tpu.dot_dimension_numbers<[1], [0], [0], [1], [0, 0, 1, 1], [], []>} : vector<256x32xbf16>, vector<32x32xbf16>, vector<256x32xf32> -> vector<256x32xf32>
    %c33 = arith.constant 33 : index
    %c0_41 = arith.constant 0 : index
    %44 = vector.load %arg12[%c33, %c0_41] : memref<305x32xbf16, #tpu.memory_space<vmem>>, vector<256x32xbf16>
    %c5 = arith.constant 5 : index
    %c0_42 = arith.constant 0 : index
    %c0_43 = arith.constant 0 : index
    %45 = vector.load %arg3[%c5, %c0_42, %c0_43] : memref<9x32x32xbf16, #tpu.memory_space<vmem>>, vector<1x32x32xbf16>
    %46 = vector.shape_cast %45 : vector<1x32x32xbf16> to vector<32x32xbf16>
    %cst_44 = arith.constant dense<0.000000e+00> : vector<256x32xf32>
    %47 = tpu.matmul %44, %46, %cst_44 {dimension_numbers = #tpu.dot_dimension_numbers<[1], [0], [0], [1], [0, 0, 1, 1], [], []>} : vector<256x32xbf16>, vector<32x32xbf16>, vector<256x32xf32> -> vector<256x32xf32>
    %48 = arith.addf %43, %47 : vector<256x32xf32>
    %c49 = arith.constant 49 : index
    %c0_45 = arith.constant 0 : index
    %49 = vector.load %arg12[%c49, %c0_45] : memref<305x32xbf16, #tpu.memory_space<vmem>>, vector<256x32xbf16>
    %c8 = arith.constant 8 : index
    %c0_46 = arith.constant 0 : index
    %c0_47 = arith.constant 0 : index
    %50 = vector.load %arg3[%c8, %c0_46, %c0_47] : memref<9x32x32xbf16, #tpu.memory_space<vmem>>, vector<1x32x32xbf16>
    %51 = vector.shape_cast %50 : vector<1x32x32xbf16> to vector<32x32xbf16>
    %cst_48 = arith.constant dense<0.000000e+00> : vector<256x32xf32>
    %52 = tpu.matmul %49, %51, %cst_48 {dimension_numbers = #tpu.dot_dimension_numbers<[1], [0], [0], [1], [0, 0, 1, 1], [], []>} : vector<256x32xbf16>, vector<32x32xbf16>, vector<256x32xf32> -> vector<256x32xf32>
    %53 = arith.addf %48, %52 : vector<256x32xf32>
    %54 = vector.broadcast %8 : vector<256x1xf32> to vector<256x32xf32>
    %55 = arith.mulf %54, %53 : vector<256x32xf32>
    %56 = arith.addf %39, %55 : vector<256x32xf32>
    %c0_49 = arith.constant 0 : index
    %c0_50 = arith.constant 0 : index
    %57 = vector.load %arg4[%c0_49, %c0_50] : memref<1x32xf32, #tpu.memory_space<vmem>>, vector<1x32xf32>
    %58 = vector.broadcast %57 : vector<1x32xf32> to vector<256x32xf32>
    %59 = arith.mulf %56, %58 : vector<256x32xf32>
    %c0_51 = arith.constant 0 : index
    %c0_52 = arith.constant 0 : index
    %60 = vector.load %arg5[%c0_51, %c0_52] : memref<1x32xf32, #tpu.memory_space<vmem>>, vector<1x32xf32>
    %61 = vector.broadcast %60 : vector<1x32xf32> to vector<256x32xf32>
    %62 = arith.addf %59, %61 : vector<256x32xf32>
    %cst_53 = arith.constant 0.000000e+00 : f32
    %63 = vector.broadcast %cst_53 : f32 to vector<256x32xf32>
    %64 = arith.maximumf %62, %63 : vector<256x32xf32>
    %65 = arith.truncf %64 : vector<256x32xf32> to vector<256x32xbf16>
    %66 = vector.shape_cast %65 : vector<256x32xbf16> to vector<1x256x32xbf16>
    %c0_54 = arith.constant 0 : index
    %c0_55 = arith.constant 0 : index
    %c0_56 = arith.constant 0 : index
    %67 = vector.load %arg8[%c0_54, %c0_55, %c0_56] : memref<1x256x32xbf16, #tpu.memory_space<vmem>>, vector<1x256x32xbf16>
    tpu.vector_store %arg8[%c0_54, %c0_55, %c0_56], %66 {strides = array<i32>} : memref<1x256x32xbf16, #tpu.memory_space<vmem>>, vector<1x256x32xbf16>,
    %cst_57 = arith.constant dense<0.000000e+00> : vector<256xf32>
    %68 = vector.multi_reduction <add>, %64, %cst_57 [1] : vector<256x32xf32> to vector<256xf32>
    %69 = vector.shape_cast %68 : vector<256xf32> to vector<256x1xf32>
    %cst_58 = arith.constant 3.200000e+01 : f32
    %70 = vector.broadcast %cst_58 : f32 to vector<256x1xf32>
    %71 = arith.divf %69, %70 : vector<256x1xf32>
    %72 = vector.shape_cast %71 : vector<256x1xf32> to vector<1x256x1xf32>
    %c0_59 = arith.constant 0 : index
    %c0_60 = arith.constant 0 : index
    %c0_61 = arith.constant 0 : index
    %73 = vector.load %arg9[%c0_59, %c0_60, %c0_61] : memref<1x256x1xf32, #tpu.memory_space<vmem>>, vector<1x256x1xf32>
    tpu.vector_store %arg9[%c0_59, %c0_60, %c0_61], %72 {strides = array<i32>} : memref<1x256x1xf32, #tpu.memory_space<vmem>>, vector<1x256x1xf32>,
    %cst_62 = arith.constant dense<0xFF800000> : vector<256xf32>
    %74 = vector.multi_reduction <maximumf>, %64, %cst_62 [1] : vector<256x32xf32> to vector<256xf32>
    %75 = vector.shape_cast %74 : vector<256xf32> to vector<256x1xf32>
    %76 = vector.shape_cast %75 : vector<256x1xf32> to vector<1x256x1xf32>
    %c0_63 = arith.constant 0 : index
    %c0_64 = arith.constant 0 : index
    %c0_65 = arith.constant 0 : index
    %77 = vector.load %arg10[%c0_63, %c0_64, %c0_65] : memref<1x256x1xf32, #tpu.memory_space<vmem>>, vector<1x256x1xf32>
    tpu.vector_store %arg10[%c0_63, %c0_64, %c0_65], %76 {strides = array<i32>} : memref<1x256x1xf32, #tpu.memory_space<vmem>>, vector<1x256x1xf32>,
    %c0_66 = arith.constant 0 : index
    %c0_67 = arith.constant 0 : index
    %78 = vector.load %arg6[%c0_66, %c0_67] : memref<32x1xbf16, #tpu.memory_space<vmem>>, vector<32x1xbf16>
    %cst_68 = arith.constant dense<0.000000e+00> : vector<256x1xf32>
    %79 = tpu.matmul %65, %78, %cst_68 {dimension_numbers = #tpu.dot_dimension_numbers<[1], [0], [0], [1], [0, 0, 1, 1], [], []>} : vector<256x32xbf16>, vector<32x1xbf16>, vector<256x1xf32> -> vector<256x1xf32>
    %c0_69 = arith.constant 0 : index
    %80 = memref.load %arg7[%c0_69] : memref<1xf32, #tpu.memory_space<smem>>
    %81 = vector.broadcast %80 : f32 to vector<256x1xf32>
    %82 = arith.addf %79, %81 : vector<256x1xf32>
    %83 = vector.shape_cast %82 : vector<256x1xf32> to vector<1x256x1xf32>
    %c0_70 = arith.constant 0 : index
    %c0_71 = arith.constant 0 : index
    %c0_72 = arith.constant 0 : index
    %84 = vector.load %arg11[%c0_70, %c0_71, %c0_72] : memref<1x256x1xf32, #tpu.memory_space<vmem>>, vector<1x256x1xf32>
    tpu.vector_store %arg11[%c0_70, %c0_71, %c0_72], %83 {strides = array<i32>} : memref<1x256x1xf32, #tpu.memory_space<vmem>>, vector<1x256x1xf32>,
    return
  }
  func.func @transform_0(%arg0: i32) -> (i32, i32, i32) {
    %c0_i32 = arith.constant 0 : i32
    %c0_i32_0 = arith.constant 0 : i32
    %c0_i32_1 = arith.constant 0 : i32
    return %arg0, %c0_i32, %c0_i32_0 : i32, i32, i32
  }
  func.func @transform_1(%arg0: i32) -> (i32, i32) {
    %c0_i32 = arith.constant 0 : i32
    %c0_i32_0 = arith.constant 0 : i32
    %c0_i32_1 = arith.constant 0 : i32
    return %c0_i32, %c0_i32_0 : i32, i32
  }
  func.func @transform_2(%arg0: i32) -> (i32, i32, i32) {
    %c0_i32 = arith.constant 0 : i32
    %c0_i32_0 = arith.constant 0 : i32
    %c0_i32_1 = arith.constant 0 : i32
    %c0_i32_2 = arith.constant 0 : i32
    return %c0_i32, %c0_i32_0, %c0_i32_1 : i32, i32, i32
  }
  func.func @transform_3(%arg0: i32) -> (i32, i32) {
    %c0_i32 = arith.constant 0 : i32
    %c0_i32_0 = arith.constant 0 : i32
    %c0_i32_1 = arith.constant 0 : i32
    return %c0_i32, %c0_i32_0 : i32, i32
  }
  func.func @transform_4(%arg0: i32) -> (i32, i32) {
    %c0_i32 = arith.constant 0 : i32
    %c0_i32_0 = arith.constant 0 : i32
    %c0_i32_1 = arith.constant 0 : i32
    return %c0_i32, %c0_i32_0 : i32, i32
  }
  func.func @transform_5(%arg0: i32) -> (i32, i32) {
    %c0_i32 = arith.constant 0 : i32
    %c0_i32_0 = arith.constant 0 : i32
    %c0_i32_1 = arith.constant 0 : i32
    return %c0_i32, %c0_i32_0 : i32, i32
  }
  func.func @transform_6(%arg0: i32) -> i32 {
    %c0_i32 = arith.constant 0 : i32
    %c0_i32_0 = arith.constant 0 : i32
    return %c0_i32 : i32
  }
  func.func @transform_7(%arg0: i32) -> (i32, i32, i32) {
    %c0_i32 = arith.constant 0 : i32
    %c0_i32_0 = arith.constant 0 : i32
    %c0_i32_1 = arith.constant 0 : i32
    return %arg0, %c0_i32, %c0_i32_0 : i32, i32, i32
  }
  func.func @transform_8(%arg0: i32) -> (i32, i32, i32) {
    %c0_i32 = arith.constant 0 : i32
    %c0_i32_0 = arith.constant 0 : i32
    %c0_i32_1 = arith.constant 0 : i32
    return %arg0, %c0_i32, %c0_i32_0 : i32, i32, i32
  }
  func.func @transform_9(%arg0: i32) -> (i32, i32, i32) {
    %c0_i32 = arith.constant 0 : i32
    %c0_i32_0 = arith.constant 0 : i32
    %c0_i32_1 = arith.constant 0 : i32
    return %arg0, %c0_i32, %c0_i32_0 : i32, i32, i32
  }
  func.func @transform_10(%arg0: i32) -> (i32, i32, i32) {
    %c0_i32 = arith.constant 0 : i32
    %c0_i32_0 = arith.constant 0 : i32
    %c0_i32_1 = arith.constant 0 : i32
    return %arg0, %c0_i32, %c0_i32_0 : i32, i32, i32
  }
}

</mosaic_0001>

<bundles_post_ra>
// kernel: tpu_custom_call.1
= control target key start
LH: loop header
LB: loop body
LE: loop exit
PB: predicated region body
PF: predicated region fallthrough
CT: control target
= control target key end

     0   :  { %s6372_s15 = smov 0   ;;  %s8603_s0 = inlined_call_operand.vmem [shape: bf16[2,256,32], index: 0, kind: input, shape index: {}]   ;;  %s8604_s1 = inlined_call_operand.vmem [shape: f32[256,2], index: 1, kind: input, shape index: {}]   ;;  %s8605_s2 = inlined_call_operand.vmem [shape: bf16[9,32,32], index: 2, kind: input, shape index: {}]   ;;  %s8606_s3 = inlined_call_operand.vmem [shape: f32[1,32], index: 3, kind: input, shape index: {}]   ;;  %s8607_s4 = inlined_call_operand.vmem [shape: f32[1,32], index: 4, kind: input, shape index: {}]   ;;  %s8608_s5 = inlined_call_operand.vmem [shape: bf16[32,1], index: 5, kind: input, shape index: {}]   ;;  %s8609_s6 = inlined_call_operand.<no memory space> [shape: f32[1], index: 6, kind: input, shape index: {}]   ;;  %s8610_s7 = inlined_call_operand.vmem [shape: bf16[2,256,32], index: 7, kind: output, shape index: {0}]   ;;  %s8611_s8 = inlined_call_operand.vmem [shape: f32[2,256,1], index: 8, kind: output, shape index: {1}]   ;;  %s8612_s9 = inlined_call_operand.vmem [shape: f32[2,256,1], index: 9, kind: output, shape index: {2}]   ;;  %s8613_s10 = inlined_call_operand.vmem [shape: f32[2,256,1], index: 10, kind: output, shape index: {3}]  }
   0x1   :  { %16 = sst [smem:[#allocation3]] %s8609_s6 }
   0x2 LB: > { %s5031_s16 = sadd.s32 4294967295, %s6310_s15   ;;  %p5035_p0 = scmp.ge.s32.totalorder %s6310_s15, 1  ;;  %s6310_s15 = sphi %s6372_s15, %s22_s15  }
   0x3   : > { %p320_p1 = scmp.lt.s32.totalorder %s6310_s15, 3 }
   0x5   : > { %p321_p2 = pnand %p5035_p0, %p320_p1 }
   0x7   : > { %324 = sbr.rel (%p321_p2) target bundleno = 794 (0x31a), region = 48 }
   0xe   : > { %v6193_v0 = vld [vmem:[%s8605_s2 + $0x10] sm:$0xff]   ;;  %p373_p3 = scmp.lt.s32.totalorder %s5031_s16, 1  ;;  %v6194_v1 = vld [vmem:[%s8605_s2 + $0x40] sm:$0xff]   ;;  %vm399_vm0 = vcmask 257024   ;;  %v6195_v2 = vld [vmem:[%s8605_s2 + $0x18] sm:$0xff]   ;;  %v8614_v4 = vmov 0  }
   0xf   : > { %5653 = vmatprep.subr.bf16.mxu0 %v6193_v0  ;;  %5617 = vmatprep.subr.bf16.mxu1 %v6194_v1  ;;  %v6196_v3 = vld [vmem:[%s8605_s2 + $0x48] sm:$0xff]   ;;  %401 = vst.msk [vmem:[#allocation2 + $0x4] sm:$0xf] %vm399_vm0, %v8614_v4  ;;  %402 = vst.msk [vmem:[#allocation2 + $0x8] sm:$0xf] %vm399_vm0, %v8614_v4  ;;  %v6415_v5 = vld [vmem:[%s8605_s2 + $0x70] sm:$0xff]  }
  0x10   : > { %s8740_s16 = smov (!%p373_p3, %s5031_s16), 1  ;;  %5654 = vmatpush3.bf16.msra.mxu0 %v6193_v0  ;;  %5618 = vmatpush3.bf16.msra.mxu1 %v6194_v1  ;;  %403 = vst.msk [vmem:[#allocation2 + $0xc] sm:$0xf] %vm399_vm0, %v8614_v4  ;;  %404 = vst.msk [vmem:[#allocation2 + $0x90] sm:$0xf] %vm399_vm0, %v8614_v4  ;;  %vm644_vm1 = vcmask 261120  }
  0x11   : > { %5655 = vmatprep.subr.bf16.mxu0 %v6195_v2  ;;  %s5400_s24 = sshll.u32 %s8740_s16, 7  ;;  %405 = vst.msk [vmem:[#allocation2 + $0x94] sm:$0xf] %vm399_vm0, %v8614_v4  ;;  %5619 = vmatprep.subr.bf16.mxu1 %v6196_v3  ;;  %v6210_v31 = vld [vmem:[%s8605_s2 + $0x78] sm:$0xff]   ;;  %vm1435_vm2 = vsmask.f32 4352 }
  0x12   : > { %s6410_s27 = scalar_lea.vmem %s8603_s0, %s5400_s24  ;;  %6180 = vset.pattern.permute.xlu1 %v8614_v4  ;;  %6179 = vset.pattern.permute.xlu0 %v8614_v4  ;;  %vm2806_vm3 = vsmask.f32 7424  ;;  %vm406_vm4 = vcmask 253952   ;;  %vm407_vm5 = vsmask.f32 256  ;;  %s7883_s21 = scalar_lea.vmem %s8610_s7, %s5400_s24  ;;  %vm4457_vm7 = vcmask 7168  }
  0x13   : > { %v412_v6 = vld [vmem:[%s6410_s27] sm:$0xf]  ;;  %v413_v7 = vld [vmem:[%s6410_s27 + $0x4] sm:$0xf]  ;;  %v414_v8 = vld [vmem:[%s6410_s27 + $0x8] sm:$0xf] }
  0x14   : > { %5656 = vmatpush3.bf16.msra.mxu0 %v6195_v2  ;;  %444 = vst.msk [vmem:[#allocation2 + $0x10] sm:$0xf] %vm399_vm0, %v412_v6  ;;  %v415_v9 = vld [vmem:[%s6410_s27 + $0xc] sm:$0xf]  ;;  %v416_v10 = vld [vmem:[%s6410_s27 + $0x10] sm:$0xf]  ;;  %5620 = vmatpush3.bf16.msra.mxu1 %v6196_v3  ;;  %vm408_vm6 = vmand %vm406_vm4, %vm407_vm5 }
  0x15   : > { %445 = vst.msk [vmem:[#allocation2 + $0x14] sm:$0xf] %vm399_vm0, %v413_v7  ;;  %446 = vst.msk [vmem:[#allocation2 + $0x18] sm:$0xf] %vm399_vm0, %v414_v8  ;;  %v417_v11 = vld [vmem:[%s6410_s27 + $0x14] sm:$0xf]  ;;  %5689 = vmatprep.subr.bf16.mxu0 %v6415_v5 }
  0x16   : > { %447 = vst.msk [vmem:[#allocation2 + $0x1c] sm:$0xf] %vm399_vm0, %v415_v9  ;;  %448 = vst.msk [vmem:[#allocation2 + $0x20] sm:$0xf] %vm399_vm0, %v416_v10  ;;  %v418_v12 = vld [vmem:[%s6410_s27 + $0x18] sm:$0xf] }
  0x17   : > { %449 = vst.msk [vmem:[#allocation2 + $0x24] sm:$0xf] %vm399_vm0, %v417_v11  ;;  %v419_v13 = vld [vmem:[%s6410_s27 + $0x1c] sm:$0xf]  ;;  %v420_v14 = vld [vmem:[%s6410_s27 + $0x20] sm:$0xf] }
  0x18   : > { %450 = vst.msk [vmem:[#allocation2 + $0x28] sm:$0xf] %vm399_vm0, %v418_v12  ;;  %451 = vst.msk [vmem:[#allocation2 + $0x2c] sm:$0xf] %vm399_vm0, %v419_v13  ;;  %v421_v15 = vld [vmem:[%s6410_s27 + $0x24] sm:$0xf] }
  0x19   : > { %452 = vst.msk [vmem:[#allocation2 + $0x30] sm:$0xf] %vm399_vm0, %v420_v14  ;;  %v422_v16 = vld [vmem:[%s6410_s27 + $0x28] sm:$0xf]  ;;  %v423_v17 = vld [vmem:[%s6410_s27 + $0x2c] sm:$0xf] }
  0x1a   : > { %453 = vst.msk [vmem:[#allocation2 + $0x34] sm:$0xf] %vm399_vm0, %v421_v15  ;;  %454 = vst.msk [vmem:[#allocation2 + $0x38] sm:$0xf] %vm399_vm0, %v422_v16  ;;  %v424_v18 = vld [vmem:[%s6410_s27 + $0x30] sm:$0xf] }
  0x1b   : > { %455 = vst.msk [vmem:[#allocation2 + $0x3c] sm:$0xf] %vm399_vm0, %v423_v17  ;;  %v425_v19 = vld [vmem:[%s6410_s27 + $0x34] sm:$0xf]  ;;  %v426_v20 = vld [vmem:[%s6410_s27 + $0x38] sm:$0xf] }
  0x1c   : > { %v508_v21 = vld [vmem:[#allocation2 + $0x8] sm:$0xf]  ;;  %v509_v22 = vld [vmem:[#allocation2 + $0xc] sm:$0xf]  ;;  %456 = vst.msk [vmem:[#allocation2 + $0x40] sm:$0xf] %vm399_vm0, %v424_v18 }
  0x1d   : > { %457 = vst.msk [vmem:[#allocation2 + $0x44] sm:$0xf] %vm399_vm0, %v425_v19  ;;  %458 = vst.msk [vmem:[#allocation2 + $0x48] sm:$0xf] %vm399_vm0, %v426_v20  ;;  %v5088_v23 = vcombine.low %v508_v21, %v509_v22  ;;  %v1405_v24 = vld [vmem:[#allocation2 + $0x4] sm:$0x8] }
  0x1e   : > { %v427_v25 = vld [vmem:[%s6410_s27 + $0x3c] sm:$0xf]  ;;  %v428_v26 = vld [vmem:[%s6410_s27 + $0x40] sm:$0xf]  ;;  %v429_v27 = vld [vmem:[%s6410_s27 + $0x44] sm:$0xf]  ;;  %v5184_v39 = vcombine.low %v1405_v24, %v508_v21 }
  0x1f   : > { %459 = vst.msk [vmem:[#allocation2 + $0x4c] sm:$0xf] %vm399_vm0, %v427_v25  ;;  %v430_v28 = vld [vmem:[%s6410_s27 + $0x48] sm:$0xf]  ;;  %v6455_v29 = vld [vmem:[#allocation2 + $0x10] sm:$0xf]  ;;  %5657 = vmatprep.mubr.msk.bf16.mxu0 %vm644_vm1, %v5088_v23 }
  0x20   : > { %v511_v30 = vld [vmem:[#allocation2 + $0x14] sm:$0xf]  ;;  %460 = vst.msk [vmem:[#allocation2 + $0x50] sm:$0xf] %vm399_vm0, %v428_v26  ;;  %461 = vst.msk [vmem:[#allocation2 + $0x54] sm:$0xf] %vm399_vm0, %v429_v27  ;;  %v6465_v32 = vcombine.low %v509_v22, %v6455_v29 }
  0x21   : > { %462 = vst.msk [vmem:[#allocation2 + $0x58] sm:$0xf] %vm399_vm0, %v430_v28  ;;  %v512_v33 = vld [vmem:[#allocation2 + $0x18] sm:$0xf]  ;;  %v6467_v34 = vld [vmem:[#allocation2 + $0x1c] sm:$0xf]  ;;  %v5054_v36 = vcombine.low %v6455_v29, %v511_v30 }
  0x22   : > { %v6469_v35 = vld [vmem:[#allocation2 + $0x20] sm:$0xf]  ;;  %v5055_v37 = vcombine.low %v512_v33, %v6467_v34  ;;  %v6473_v38 = vld [vmem:[#allocation2 + $0x24] sm:$0xf]  ;;  %v5150_v41 = vcombine.low %v511_v30, %v512_v33  ;;  %v6482_v42 = vld [vmem:[#allocation2 + $0x28] sm:$0xf] }
  0x23   : > { %5621 = vmatprep.mubr.msk.bf16.mxu1 %vm644_vm1, %v5054_v36  ;;  %5658 = vmatmul.mubr.msk.bf16.vlgmr.msra.gmra.mrb[0].mxu0 %vm644_vm1, %v5054_v36  ;;  %v5056_v40 = vcombine.low %v6469_v35, %v6473_v38  ;;  %v6484_v43 = vld [vmem:[#allocation2 + $0x2c] sm:$0xf]  ;;  %v6487_v44 = vld [vmem:[#allocation2 + $0x30] sm:$0xf]  ;;  %v6489_v45 = vld [vmem:[#allocation2 + $0x34] sm:$0xf] }
  0x24   : > { %5690 = vmatpush3.bf16.msra.mxu0 %v6415_v5  ;;  %5622 = vmatmul.mubr.msk.bf16.vlgmr.msra.gmra.mrb[0].mxu1 %vm644_vm1, %v5055_v37  ;;  %v1815_v46 = vshrl.u32 %v5184_v39, 16  ;;  %v1818_v47 = vshll.u32 %v5184_v39, 16  ;;  %v1823_v48 = vshrl.u32 %v6465_v32, 16  ;;  %v1826_v49 = vshll.u32 %v6465_v32, 16  ;;  %v431_v54 = vld [vmem:[%s6410_s27 + $0x4c] sm:$0xf] }
  0x25   : > { %5661 = vmatprep.mubr.msk.bf16.mxu0 %vm644_vm1, %v5055_v37  ;;  %5691 = vmatprep.subr.bf16.mxu0 %v6210_v31  ;;  %v5057_v50 = vcombine.low %v6482_v42, %v6484_v43  ;;  %v1445_v51 = vshrl.u32 %v5150_v41, 16  ;;  %v1448_v52 = vshll.u32 %v5150_v41, 16  ;;  %v5058_v53 = vcombine.low %v6487_v44, %v6489_v45  ;;  %v432_v55 = vld [vmem:[%s6410_s27 + $0x50] sm:$0xf]  ;;  %463 = vst.msk [vmem:[#allocation2 + $0x5c] sm:$0xf] %vm399_vm0, %v431_v54 }
  0x26   : > { %5625 = vmatprep.mubr.msk.bf16.mxu1 %vm644_vm1, %v5056_v40  ;;  %v433_v56 = vld [vmem:[%s6410_s27 + $0x54] sm:$0xf]  ;;  %464 = vst.msk [vmem:[#allocation2 + $0x60] sm:$0xf] %vm399_vm0, %v432_v55  ;;  %v434_v57 = vld [vmem:[%s6410_s27 + $0x58] sm:$0xf] }
  0x27   : > { %v435_v58 = vld [vmem:[%s6410_s27 + $0x5c] sm:$0xf]  ;;  %v6505_v59 = vld [vmem:[#allocation2 + $0x38] sm:$0xf]  ;;  %465 = vst.msk [vmem:[#allocation2 + $0x64] sm:$0xf] %vm399_vm0, %v433_v56 }
  0x28   : > { %5692 = vmatpush3.bf16.msra.mxu0 %v6210_v31  ;;  %v6507_v60 = vld [vmem:[#allocation2 + $0x3c] sm:$0xf]  ;;  %466 = vst.msk [vmem:[#allocation2 + $0x68] sm:$0xf] %vm399_vm0, %v434_v57  ;;  %467 = vst.msk [vmem:[#allocation2 + $0x6c] sm:$0xf] %vm399_vm0, %v435_v58 }
  0x29   : > { %v436_v61 = vld [vmem:[%s6410_s27 + $0x60] sm:$0xf]  ;;  %v437_v62 = vld [vmem:[%s6410_s27 + $0x64] sm:$0xf]  ;;  %v438_v63 = vld [vmem:[%s6410_s27 + $0x68] sm:$0xf]  ;;  %v5059_v14 = vcombine.low %v6505_v59, %v6507_v60 }
  0x2a   : > { %v6517_v0 = vld [vmem:[#allocation2 + $0x40] sm:$0xf]  ;;  %v6519_v1 = vld [vmem:[#allocation2 + $0x44] sm:$0xf]  ;;  %468 = vst.msk [vmem:[#allocation2 + $0x70] sm:$0xf] %vm399_vm0, %v436_v61 }
  0x2b   : > { %5662 = vmatmul.mubr.msk.bf16.gmra.mrb[4].mxu0 %vm644_vm1, %v5056_v40  ;;  %469 = vst.msk [vmem:[#allocation2 + $0x74] sm:$0xf] %vm399_vm0, %v437_v62  ;;  %v439_v2 = vld [vmem:[%s6410_s27 + $0x6c] sm:$0xf]  ;;  %470 = vst.msk [vmem:[#allocation2 + $0x78] sm:$0xf] %vm399_vm0, %v438_v63  ;;  %v5060_v19 = vcombine.low %v6517_v0, %v6519_v1 }
  0x2c   : > { %5626 = vmatmul.mubr.msk.bf16.gmra.mrb[4].mxu1 %vm644_vm1, %v5057_v50  ;;  %5665 = vmatprep.mubr.msk.bf16.mxu0 %vm644_vm1, %v5057_v50  ;;  %v440_v3 = vld [vmem:[%s6410_s27 + $0x70] sm:$0xf]  ;;  %v441_v5 = vld [vmem:[%s6410_s27 + $0x74] sm:$0xf]  ;;  %471 = vst.msk [vmem:[#allocation2 + $0x7c] sm:$0xf] %vm399_vm0, %v439_v2 }
  0x2d   : > { %5629 = vmatprep.mubr.msk.bf16.mxu1 %vm644_vm1, %v5058_v53  ;;  %472 = vst.msk [vmem:[#allocation2 + $0x80] sm:$0xf] %vm399_vm0, %v440_v3  ;;  %473 = vst.msk [vmem:[#allocation2 + $0x84] sm:$0xf] %vm399_vm0, %v441_v5  ;;  %v442_v6 = vld [vmem:[%s6410_s27 + $0x78] sm:$0xf] }
  0x2e   : > { %v443_v7 = vld [vmem:[%s6410_s27 + $0x7c] sm:$0xf]  ;;  %v1817_v8 = vrot.slane %v1815_v46, 3  ;;  %474 = vst.msk [vmem:[#allocation2 + $0x88] sm:$0xf] %vm399_vm0, %v442_v6  ;;  %v6221_v9 = vld [vmem:[%s8605_s2 + $0x30] sm:$0xff]  }
  0x2f   : > { %475 = vst.msk [vmem:[#allocation2 + $0x8c] sm:$0xf] %vm399_vm0, %v443_v7  ;;  %v1820_v10 = vrot.slane %v1818_v47, 4  ;;  %v1825_v11 = vrot.slane %v1823_v48, 3  ;;  %v1828_v12 = vrot.slane %v1826_v49, 4  ;;  %v6222_v13 = vld [vmem:[%s8605_s2 + $0x38] sm:$0xff]   ;;  %5725 = vmatprep.subr.bf16.mxu1 %v6221_v9 }
  0x30   : > { %v6543_v15 = vld [vmem:[#allocation2 + $0x1c] sm:$0xf]  ;;  %v6545_v16 = vld [vmem:[#allocation2 + $0x20] sm:$0xf]  ;;  %v1447_v17 = vrot.slane %v1445_v51, 3  ;;  %v1450_v18 = vrot.slane %v1448_v52, 4  ;;  %5726 = vmatpush3.bf16.msra.mxu1 %v6221_v9 }
  0x31   : > { %v6551_v20 = vcombine.low %v6543_v15, %v6545_v16  ;;  %5727 = vmatprep.subr.bf16.mxu1 %v6222_v13  ;;  %v1821_v21 = vor.u32 %v1820_v10, %v1817_v8  ;;  %v1829_v22 = vor.u32 %v1828_v12, %v1825_v11  ;;  %v6556_v23 = vld [vmem:[#allocation2 + $0x48] sm:$0xf]  ;;  %v6558_v24 = vld [vmem:[#allocation2 + $0x4c] sm:$0xf]  ;;  %v6560_v25 = vld [vmem:[#allocation2 + $0x50] sm:$0xf] }
  0x32   : > { %v6563_v26 = vld [vmem:[#allocation2 + $0x54] sm:$0xf]  ;;  %v6565_v27 = vld [vmem:[#allocation2 + $0x24] sm:$0xf]  ;;  %v6567_v28 = vor.u32 %v1450_v18, %v1447_v17  ;;  %v6574_v31 = vld [vmem:[#allocation2 + $0x28] sm:$0xf]  ;;  %v5061_v39 = vcombine.low %v6556_v23, %v6558_v24 }
  0x33   : > { %5666 = vmatmul.mubr.msk.bf16.gmra.mrb[8].mxu0 %vm644_vm1, %v5058_v53  ;;  %v6572_v30 = vld [vmem:[%s8605_s2 + $0x50] sm:$0xff]   ;;  %v6576_v32 = vld [vmem:[#allocation2 + $0x2c] sm:$0xf]  ;;  %v6581_v36 = vsel %vm1435_vm2, %v1821_v21, %v1829_v22  ;;  %v6592_v40 = vcombine.low %v6565_v27, %v6574_v31  ;;  %v6601_v46 = vld [vmem:[%s8605_s2] sm:$0xff]   ;;  %v5062_v47 = vcombine.low %v6560_v25, %v6563_v26  ;;  %s8354_s24 = sshll.u32 %s8740_s16, 8  ;;  %s4622_s28 = sld [smem:[#allocation3]] }
  0x34   : > { %5630 = vmatmul.mubr.msk.bf16.gmra.mrb[8].mxu1 %vm644_vm1, %v5059_v14  ;;  %5669 = vmatprep.mubr.msk.bf16.mxu0 %vm644_vm1, %v5059_v14  ;;  %v6578_v33 = vld [vmem:[#allocation2 + $0x30] sm:$0xf]  ;;  %8645 = vst [vmem:[#allocation4_spill] sm:$0xff] %v6581_v36  ;;  %v6585_v37 = vsel %vm1435_vm2, %v1829_v22, %v6567_v28  ;;  %v6605_v48 = vld [vmem:[#allocation2 + $0x34] sm:$0xf]  ;;  %s8360_s25 = scalar_lea.vmem %s8611_s8, %s8354_s24  ;;  %s8366_s16 = scalar_lea.vmem %s8612_s9, %s8354_s24 }
  0x35   : > { %5633 = vmatprep.mubr.msk.bf16.mxu1 %vm644_vm1, %v5060_v19  ;;  %5728 = vmatpush3.bf16.msra.mxu1 %v6222_v13  ;;  %8646 = vst [vmem:[#allocation5_spill] sm:$0xff] %v6585_v37  ;;  %v6596_v41 = vcombine.low %v6576_v32, %v6578_v33  ;;  %v6607_v49 = vld [vmem:[#allocation2 + $0x38] sm:$0xf]  ;;  %v6611_v50 = vld [vmem:[#allocation2 + $0x3c] sm:$0xf]  ;;  %s8446_s11 = scalar_lea.vmem %s8613_s10, %s8354_s24 }
  0x36   : > { %5833 = vmatprep.subr.bf16.mxu0 %v6572_v30  ;;  %5761 = vmatprep.subr.bf16.mxu1 %v6601_v46  ;;  %v6615_v51 = vcombine.low %v6605_v48, %v6607_v49  ;;  %v6617_v52 = vld [vmem:[#allocation2 + $0x40] sm:$0xf]  ;;  %v6621_v53 = vld [vmem:[#allocation2 + $0x58] sm:$0xf]  ;;  %v6628_v55 = vld [vmem:[#allocation2 + $0x5c] sm:$0xf] }
  0x37   : > { %v6625_v54 = vcombine.low %v6611_v50, %v6617_v52  ;;  %v6630_v56 = vld [vmem:[#allocation2 + $0x44] sm:$0xf]  ;;  %v6632_v57 = vld [vmem:[#allocation2 + $0x48] sm:$0xf]  ;;  %v6634_v58 = vld [vmem:[#allocation2 + $0x60] sm:$0xf]  ;;  %v5063_v3 = vcombine.low %v6621_v53, %v6628_v55 }
  0x38   : > { %v6636_v61 = vld [vmem:[#allocation2 + $0x64] sm:$0xf]  ;;  %v6638_v62 = vld [vmem:[#allocation2 + $0x4c] sm:$0xf]  ;;  %v6642_v63 = vcombine.low %v6630_v56, %v6632_v57  ;;  %v6644_v2 = vld [vmem:[#allocation2 + $0x50] sm:$0xf] }
  0x39   : > { %8648 = vst [vmem:[#allocation7_spill] sm:$0xff] %v6644_v2  ;;  %v6650_v5 = vcombine.low %v6638_v62, %v6644_v2  ;;  %v1410_v6 = vld [vmem:[#allocation2 + $0xc] sm:$0x8]  ;;  %v5064_v7 = vcombine.low %v6634_v58, %v6636_v61  ;;  %v6654_v8 = vld [vmem:[#allocation2 + $0x54] sm:$0xf] }
  0x3a   : > { %8647 = vst [vmem:[#allocation6_spill] sm:$0xff] %v6642_v63  ;;  %8650 = vst [vmem:[#allocation9_spill] sm:$0xff] %v6654_v8  ;;  %v6656_v9 = vld [vmem:[#allocation2 + $0x58] sm:$0xf]  ;;  %v6663_v11 = vld [vmem:[#allocation2 + $0x5c] sm:$0xf]  ;;  %v5149_v13 = vcombine.low %v1410_v6, %v6455_v29  ;;  %v5151_v29 = vcombine.low %v6467_v34, %v6469_v35 }
  0x3b   : > { %5670 = vmatmul.mubr.msk.bf16.gmra.mrb[12].mxu0 %vm644_vm1, %v5060_v19  ;;  %8649 = vst [vmem:[#allocation8_spill] sm:$0xff] %v6650_v5  ;;  %8651 = vst [vmem:[#allocation10_spill] sm:$0xff] %v6656_v9  ;;  %v6660_v10 = vcombine.low %v6654_v8, %v6656_v9  ;;  %v6665_v12 = vld [vmem:[#allocation2 + $0x60] sm:$0xf]  ;;  %v6670_v14 = vld [vmem:[#allocation2 + $0x68] sm:$0xf]  ;;  %v5157_v5 = vcombine.low %v6558_v24, %v6560_v25 }
  0x3c   : > { %5634 = vmatmul.mubr.msk.bf16.gmra.mrb[12].mxu1 %vm644_vm1, %v5061_v39  ;;  %5673 = vmatprep.mubr.msk.bf16.mxu0 %vm644_vm1, %v5061_v39  ;;  %8653 = vst [vmem:[#allocation12_spill] sm:$0xff] %v6663_v11  ;;  %8654 = vst [vmem:[#allocation13_spill] sm:$0xff] %v6665_v12  ;;  %v6674_v17 = vcombine.low %v6663_v11, %v6665_v12  ;;  %v6677_v18 = vld [vmem:[#allocation2 + $0x6c] sm:$0xf]  ;;  %v6679_v19 = vld [vmem:[#allocation2 + $0x64] sm:$0xf] }
  0x3d   : > { %5637 = vmatprep.mubr.msk.bf16.mxu1 %vm644_vm1, %v5062_v47  ;;  %8652 = vst [vmem:[#allocation11_spill] sm:$0xff] %v6660_v10  ;;  %8656 = vst [vmem:[#allocation15_spill] sm:$0xff] %v6679_v19  ;;  %v6681_v21 = vld [vmem:[#allocation2 + $0x68] sm:$0xf]  ;;  %v6685_v22 = vld [vmem:[#allocation2 + $0x70] sm:$0xf]  ;;  %v5065_v37 = vcombine.low %v6670_v14, %v6677_v18  ;;  %v5153_v10 = vcombine.low %v6484_v43, %v6487_v44 }
  0x3e   : > { %8655 = vst [vmem:[#allocation14_spill] sm:$0xff] %v6674_v17  ;;  %8657 = vst [vmem:[#allocation16_spill] sm:$0xff] %v6681_v21  ;;  %v6687_v39 = vld [vmem:[#allocation2 + $0x74] sm:$0xf]  ;;  %v6695_v6 = vld [vmem:[#allocation2 + $0x70] sm:$0xf] }
  0x3f   : > { %8660 = vst [vmem:[#allocation19_spill] sm:$0xff] %v6695_v6  ;;  %v1437_v4 = vshrl.u32 %v5149_v13, 16  ;;  %v5066_v34 = vcombine.low %v6685_v22, %v6687_v39  ;;  %v6705_v35 = vld [vmem:[#allocation2 + $0x74] sm:$0xf]  ;;  %v6707_v12 = vld [vmem:[#allocation2 + $0x78] sm:$0xf] }
  0x40   : > { %8662 = vst [vmem:[#allocation21_spill] sm:$0xff] %v6705_v35  ;;  %8663 = vst [vmem:[#allocation22_spill] sm:$0xff] %v6707_v12  ;;  %v6714_v17 = vld [vmem:[#allocation2 + $0x78] sm:$0xf]  ;;  %v6716_v9 = vld [vmem:[#allocation2 + $0x7c] sm:$0xf] }
  0x41   : > { %v6741_v11 = vld [vmem:[#allocation2 + $0x8c] sm:$0xf]  ;;  %v1457_v2 = vshll.u32 %v5151_v29, 16  ;;  %v2066_v25 = vshrl.u32 %v6592_v40, 16 }
  0x42   : > { %8671 = vst [vmem:[#allocation30_spill] sm:$0xff] %v6741_v11  ;;  %v6767_v43 = vld [vmem:[#allocation2 + $0x8c] sm:$0xf] }
  0x43   : > { %5674 = vmatmul.mubr.msk.bf16.gmra.mrb[16].mxu0 %vm644_vm1, %v5062_v47  ;;  %v6691_v47 = vcombine.low %v6679_v19, %v6681_v21  ;;  %v1440_v21 = vshll.u32 %v5149_v13, 16  ;;  %v1454_v19 = vshrl.u32 %v5151_v29, 16  ;;  %v6724_v13 = vld [vmem:[#allocation2 + $0x80] sm:$0xf]  ;;  %v1459_v29 = vrot.slane %v1457_v2, 4 }
  0x44   : > { %5638 = vmatmul.mubr.msk.bf16.gmra.mrb[16].mxu1 %vm644_vm1, %v5063_v3  ;;  %5677 = vmatprep.mubr.msk.bf16.mxu0 %vm644_vm1, %v5063_v3  ;;  %v6693_v3 = vld [vmem:[#allocation2 + $0x6c] sm:$0xf] }
  0x45   : > { %5641 = vmatprep.mubr.msk.bf16.mxu1 %vm644_vm1, %v5064_v7  ;;  %8658 = vst [vmem:[#allocation17_spill] sm:$0xff] %v6691_v47  ;;  %8659 = vst [vmem:[#allocation18_spill] sm:$0xff] %v6693_v3  ;;  %v6701_v36 = vcombine.low %v6693_v3, %v6695_v6  ;;  %v6711_v47 = vcombine.low %v6705_v35, %v6707_v12  ;;  %v6718_v6 = vld [vmem:[#allocation2 + $0x7c] sm:$0xf]  ;;  %v6733_v35 = vld [vmem:[#allocation2 + $0x88] sm:$0xf] }
  0x46   : > { %8665 = vst [vmem:[#allocation24_spill] sm:$0xff] %v6718_v6  ;;  %8669 = vst [vmem:[#allocation28_spill] sm:$0xff] %v6733_v35 }
  0x47   : > { %8661 = vst [vmem:[#allocation20_spill] sm:$0xff] %v6701_v36  ;;  %8664 = vst [vmem:[#allocation23_spill] sm:$0xff] %v6711_v47  ;;  %v6720_v36 = vld [vmem:[#allocation2 + $0x80] sm:$0xf]  ;;  %v6735_v47 = vld [vmem:[#allocation2 + $0x84] sm:$0xf] }
  0x48   : > { %8666 = vst [vmem:[#allocation25_spill] sm:$0xff] %v6720_v36  ;;  %v6728_v12 = vcombine.low %v6718_v6, %v6720_v36  ;;  %v5152_v36 = vcombine.low %v6473_v38, %v6482_v42  ;;  %v5068_v8 = vcombine.low %v6724_v13, %v6735_v47  ;;  %v5154_v38 = vcombine.low %v6489_v45, %v6505_v59  ;;  %v1035_v42 = vld [vmem:[#allocation2 + $0x18] sm:$0xf]  ;;  %v2023_v59 = vld [vmem:[#allocation2 + $0x14] sm:$0x8] }
  0x49   : > { %v5156_v45 = vcombine.low %v6519_v1, %v6556_v23  ;;  %v6787_v24 = vcombine.low %v2023_v59, %v1035_v42 }
  0x4a   : > { %8667 = vst [vmem:[#allocation26_spill] sm:$0xff] %v6728_v12  ;;  %v5067_v12 = vcombine.low %v6714_v17, %v6716_v9  ;;  %v1466_v2 = vshll.u32 %v5152_v36, 16  ;;  %v1484_v63 = vshll.u32 %v5154_v38, 16 }
  0x4b   : > { %5678 = vmatmul.mubr.msk.bf16.gmra.mrb[20].mxu0 %vm644_vm1, %v5064_v7  ;;  %v6731_v7 = vld [vmem:[#allocation2 + $0x84] sm:$0xf] }
  0x4c   : > { %5642 = vmatmul.mubr.msk.bf16.gmra.mrb[20].mxu1 %vm644_vm1, %v5065_v37  ;;  %5681 = vmatprep.mubr.msk.bf16.mxu0 %vm644_vm1, %v5065_v37  ;;  %8668 = vst [vmem:[#allocation27_spill] sm:$0xff] %v6731_v7  ;;  %v6739_v3 = vcombine.low %v6731_v7, %v6733_v35  ;;  %v6743_v37 = vld [vmem:[#allocation2 + $0x90] sm:$0xf]  ;;  %v1439_v35 = vrot.slane %v1437_v4, 3  ;;  %v1442_v7 = vrot.slane %v1440_v21, 4  ;;  %v5155_v4 = vcombine.low %v6507_v60, %v6517_v0 }
  0x4d   : > { %5645 = vmatprep.mubr.msk.bf16.mxu1 %vm644_vm1, %v5066_v34  ;;  %8672 = vst [vmem:[#allocation31_spill] sm:$0xff] %v6743_v37  ;;  %v6751_v6 = vcombine.low %v6741_v11, %v6743_v37  ;;  %v1463_v37 = vshrl.u32 %v5152_v36, 16  ;;  %v1472_v21 = vshrl.u32 %v5153_v10, 16  ;;  %v1481_v0 = vshrl.u32 %v5154_v38, 16 }
  0x4e   : > { %8670 = vst [vmem:[#allocation29_spill] sm:$0xff] %v6739_v3  ;;  %v1456_v3 = vrot.slane %v1454_v19, 3  ;;  %v6765_v19 = vld [vmem:[#allocation2 + $0x88] sm:$0xf]  ;;  %v1443_v44 = vor.u32 %v1442_v7, %v1439_v35  ;;  %v1490_v35 = vshrl.u32 %v5155_v4, 16  ;;  %v5158_v36 = vcombine.low %v6563_v26, %v6621_v53 }
  0x4f   : > { %8673 = vst [vmem:[#allocation32_spill] sm:$0xff] %v6751_v6  ;;  %v5111_v6 = vcombine.low %v1035_v42, %v6543_v15  ;;  %v1465_v60 = vrot.slane %v1463_v37, 3  ;;  %v1468_v23 = vrot.slane %v1466_v2, 4  ;;  %v6782_v7 = vcombine.low %v6628_v55, %v6634_v58 }
  0x50   : > { %v1460_v11 = vor.u32 %v1459_v29, %v1456_v3  ;;  %v1452_v1 = vsel %vm1435_vm2, %v1443_v44, %v6567_v28  ;;  %v5112_v15 = vcombine.low %v6545_v16, %v6565_v27  ;;  %v6792_v26 = vcombine.low %v6636_v61, %v6670_v14  ;;  %v6242_v44 = vld [vmem:[%s8605_s2 + $0x58] sm:$0xff]  }
  0x51   : > { %v6796_v53 = vcombine.low %v6677_v18, %v6685_v22  ;;  %v2069_v55 = vshll.u32 %v6592_v40, 16  ;;  %v1474_v58 = vrot.slane %v1472_v21, 3  ;;  %v1483_v27 = vrot.slane %v1481_v0, 3  ;;  %v6805_v18 = vld [vmem:[%s8604_s1 + $0x10] sm:$0xff] }
  0x52   : > { %v1492_v3 = vrot.slane %v1490_v35, 3  ;;  %v1469_v37 = vor.u32 %v1468_v23, %v1465_v60  ;;  %v1499_v14 = vshrl.u32 %v5156_v45, 16  ;;  %v1502_v29 = vshll.u32 %v5156_v45, 16  ;;  %2465 = vperm.xlu1 %6180, %v6805_v18  }
  0x53   : > { %5682 = vmatmul.mubr.msk.bf16.gmra.mrb[24].mxu0 %vm644_vm1, %v5066_v34  ;;  %v1475_v34 = vshll.u32 %v5153_v10, 16  ;;  %v1493_v10 = vshll.u32 %v5155_v4, 16  ;;  %v6809_v22 = vcombine.low %v6687_v39, %v6714_v17  ;;  %v5163_v40 = vcombine.low %v6716_v9, %v6724_v13 }
  0x54   : > { %5646 = vmatmul.mubr.msk.bf16.gmra.mrb[24].mxu1 %vm644_vm1, %v5067_v12  ;;  %5685 = vmatprep.mubr.msk.bf16.mxu0 %vm644_vm1, %v5067_v12  ;;  %v5069_v12 = vcombine.low %v6765_v19, %v6767_v43  ;;  %v1511_v38 = vshll.u32 %v5157_v5, 16  ;;  %v6816_v42 = vrot.slane %v2066_v25, 3  ;;  %v6818_v4 = vrot.slane %v2069_v55, 4 }
  0x55   : > { %5649 = vmatprep.mubr.msk.bf16.mxu1 %vm644_vm1, %v5068_v8  ;;  %v1477_v16 = vrot.slane %v1475_v34, 4  ;;  %v1495_v61 = vrot.slane %v1493_v10, 4  ;;  %v1517_v17 = vshrl.u32 %v5158_v36, 16  ;;  %v6825_v39 = vsel %vm1435_vm2, %v6567_v28, %v1460_v11  ;;  %v6259_v34 = vld [vmem:[%s8605_s2 + $0x8] sm:$0xff]  }
  0x56   : > { %v1520_v9 = vshll.u32 %v5158_v36, 16  ;;  %v1526_v13 = vshrl.u32 %v6782_v7, 16  ;;  %v6831_v2 = vsel %vm1435_vm2, %v1460_v11, %v1469_v37  ;;  %v1501_v28 = vrot.slane %v1499_v14, 3 }
  0x57   : > { %v1478_v45 = vor.u32 %v1477_v16, %v1474_v58  ;;  %v1496_v21 = vor.u32 %v1495_v61, %v1492_v3  ;;  %v1513_v0 = vrot.slane %v1511_v38, 4  ;;  %v1562_v11 = vshrl.u32 %v5163_v40, 16  ;;  %v6875_v58 = vld [vmem:[%s8605_s2 + $0x60] sm:$0xff]   ;;  %v6892_v38 = vld [vmem:[%s8604_s1 + $0x18] sm:$0xff] }
  0x58   : > { %v1565_v35 = vshll.u32 %v5163_v40, 16  ;;  %v1519_v36 = vrot.slane %v1517_v17, 3  ;;  %v6847_v23 = vrot.slane %v1526_v13, 3  ;;  %v1538_v10 = vshll.u32 %v6792_v26, 16  ;;  %2470 = vperm.xlu1 %6180, %v6892_v38  }
  0x59   : > { %v1544_v55 = vshrl.u32 %v6796_v53, 16  ;;  %v1547_v61 = vshll.u32 %v6796_v53, 16  ;;  %v2052_v17 = vshll.u32 %v6787_v24, 16 }
  0x5b   : > { %5686 = vmatmul.mubr.msk.bf16.gmra.mrb[28].mxu0 %vm644_vm1, %v5068_v8  ;;  %v1486_v8 = vrot.slane %v1484_v63, 4  ;;  %v5186_v63 = vcombine.low %v6735_v47, %v6735_v47 }
  0x5c   : > { %5650 = vmatmul.mubr.msk.bf16.gmra.mrb[28].mxu1 %vm644_vm1, %v5069_v12  ;;  %5693 = vmatprep.mubr.msk.bf16.mxu0 %vm644_vm1, %v5111_v6  ;;  %v1508_v6 = vshrl.u32 %v5157_v5, 16  ;;  %v5113_v5 = vcombine.low %v6574_v31, %v6576_v32  ;;  %v1504_v12 = vrot.slane %v1502_v29, 4  ;;  %v5114_v31 = vcombine.low %v6578_v33, %v6605_v48  ;;  %v6853_v33 = vld [vmem:[%s8605_s2 + $0x20] sm:$0xff]  }
  0x5d   : > { %5729 = vmatprep.mubr.msk.bf16.mxu1 %vm644_vm1, %v1452_v1  ;;  %v1487_v59 = vor.u32 %v1486_v8, %v1483_v27  ;;  %v5115_v32 = vcombine.low %v6607_v49, %v6611_v50  ;;  %v1522_v1 = vrot.slane %v1520_v9, 4  ;;  %v5116_v48 = vcombine.low %v6617_v52, %v6630_v56 }
  0x5e   : > { %v1510_v60 = vrot.slane %v1508_v6, 3  ;;  %v5117_v49 = vcombine.low %v6632_v57, %v6638_v62  ;;  %v1535_v50 = vshrl.u32 %v6792_v26, 16  ;;  %v1564_v26 = vrot.slane %v1562_v11, 3  ;;  %v6973_v57 = vld [vmem:[%s8604_s1 + $0x48] sm:$0xff] }
  0x5f   : > { %v6869_v25 = vsel %vm1435_vm2, %v1487_v59, %v1496_v21  ;;  %v1833_v16 = vshrl.u32 %v5186_v63, 16  ;;  %v1836_v27 = vshll.u32 %v5186_v63, 16  ;;  %v6877_v8 = vor.u32 %v1504_v12, %v1501_v28 }
  0x60   : > { %v6879_v3 = vor.u32 %v1513_v0, %v1510_v60  ;;  %v6885_v14 = vrot.slane %v1535_v50, 3  ;;  %v6887_v29 = vrot.slane %v1538_v10, 4  ;;  %v6895_v63 = vrot.slane %v1544_v55, 3  ;;  %v6918_v60 = vld [vmem:[%s8604_s1 + $0x28] sm:$0xff] }
  0x61   : > { %v1835_v40 = vrot.slane %v1833_v16, 3  ;;  %v1838_v6 = vrot.slane %v1836_v27, 4  ;;  %v1553_v9 = vshrl.u32 %v6809_v22, 16  ;;  %v2054_v28 = vrot.slane %v2052_v17, 4  ;;  %2480 = vperm.xlu1 %6180, %v6918_v60   ;;  %v8674_v27 = vld [vmem:[#allocation6_spill] sm:$0xff] }
  0x62   : > { %v2078_v11 = vshll.u32 %v6596_v41, 16  ;;  %v6930_v50 = vor.u32 %v1522_v1, %v1519_v36  ;;  %v2096_v16 = vshll.u32 %v6625_v54, 16 }
  0x63   : > { %5694 = vmatmul.mubr.msk.bf16.vlgmr.msra.gmra.mrb[0].mxu0 %vm644_vm1, %v5112_v15  ;;  %v6866_v15 = vsel %vm1435_vm2, %v1478_v45, %v1487_v59  ;;  %v2060_v59 = vshll.u32 %v6551_v20, 16 }
  0x64   : > { %5834 = vmatpush3.bf16.msra.mxu0 %v6572_v30  ;;  %5730 = vmatmul.mubr.msk.bf16.vlgmr.msra.gmra.mrb[32].mxu1 %vm644_vm1, %v6825_v39  ;;  %v1529_v30 = vshll.u32 %v6782_v7, 16  ;;  %v6863_v7 = vsel %vm1435_vm2, %v1469_v37, %v1478_v45  ;;  %v1839_v45 = vor.u32 %v1838_v6, %v1835_v40  ;;  %v2102_v40 = vshrl.u32 %v8674_v27, 16 }
  0x65   : > { %5697 = vmatprep.mubr.msk.bf16.mxu0 %vm644_vm1, %v5113_v5  ;;  %5733 = vmatprep.mubr.msk.bf16.mxu1 %vm644_vm1, %v6831_v2  ;;  %v2057_v5 = vshrl.u32 %v6551_v20, 16  ;;  %v2062_v0 = vrot.slane %v2060_v59, 4  ;;  %v2098_v17 = vrot.slane %v2096_v16, 4  ;;  %v8675_v59 = vld [vmem:[#allocation8_spill] sm:$0xff] }
  0x66   : > { %5835 = vmatprep.subr.bf16.mxu0 %v6242_v44  ;;  %5762 = vmatpush3.bf16.msra.mxu1 %v6601_v46  ;;  %v1567_v46 = vrot.slane %v1565_v35, 4  ;;  %v6881_v37 = vrot.slane %v1529_v30, 4  ;;  %v2084_v35 = vshrl.u32 %v6615_v51, 16  ;;  %v2087_v30 = vshll.u32 %v6615_v51, 16 }
  0x67   : > { %5763 = vmatprep.subr.bf16.mxu1 %v6259_v34  ;;  %v2059_v12 = vrot.slane %v2057_v5, 3  ;;  %v2105_v5 = vshll.u32 %v8674_v27, 16  ;;  %v2111_v52 = vshrl.u32 %v8675_v59, 16  ;;  %v2114_v56 = vshll.u32 %v8675_v59, 16 }
  0x68   : > { %5836 = vmatpush3.bf16.msra.mxu0 %v6242_v44  ;;  %v2049_v44 = vshrl.u32 %v6787_v24, 16  ;;  %v6905_v13 = vor.u32 %v1567_v46, %v1564_v26  ;;  %v6912_v24 = vsel %vm1435_vm2, %v1496_v21, %v6877_v8  ;;  %v2075_v21 = vshrl.u32 %v6596_v41, 16  ;;  %v6935_v26 = vld [vmem:[%s8604_s1 + $0x38] sm:$0xff] }
  0x69   : > { %5869 = vmatprep.subr.bf16.mxu0 %v6853_v33  ;;  %v2063_v10 = vor.u32 %v2062_v0, %v2059_v12  ;;  %v2086_v46 = vrot.slane %v2084_v35, 3  ;;  %v2089_v41 = vrot.slane %v2087_v30, 4  ;;  %2490 = vperm.xlu1 %6180, %v6935_v26   ;;  %v2116_v12 = vrot.slane %v2114_v56, 4  ;;  %v8676_v0 = vld [vmem:[#allocation11_spill] sm:$0xff] }
  0x6a   : > { %5764 = vmatpush3.bf16.msra.mxu1 %v6259_v34  ;;  %v2051_v34 = vrot.slane %v2049_v44, 3  ;;  %v6922_v20 = vsel %vm1435_vm2, %v6905_v13, %v1839_v45  ;;  %v2077_v55 = vrot.slane %v2075_v21, 3  ;;  %v2104_v45 = vrot.slane %v2102_v40, 3 }
  0x6b   : > { %5698 = vmatmul.mubr.msk.bf16.gmra.mrb[4].mxu0 %vm644_vm1, %v5114_v31  ;;  %5797 = vmatprep.subr.bf16.mxu1 %v6875_v58  ;;  %v2072_v31 = vor.u32 %v6818_v4, %v6816_v42  ;;  %v2093_v42 = vshrl.u32 %v6625_v54, 16  ;;  %v2080_v4 = vrot.slane %v2078_v11, 4  ;;  %v2090_v44 = vor.u32 %v2089_v41, %v2086_v46  ;;  %v8678_v11 = vld [vmem:[#allocation7_spill] sm:$0xff] }
  0x6c   : > { %5734 = vmatmul.mubr.msk.bf16.gmra.mrb[36].mxu1 %vm644_vm1, %v6863_v7  ;;  %5701 = vmatprep.mubr.msk.bf16.mxu0 %vm644_vm1, %v5115_v32  ;;  %v2055_v32 = vor.u32 %v2054_v28, %v2051_v34  ;;  %v1556_v54 = vshll.u32 %v6809_v22, 16  ;;  %v2113_v28 = vrot.slane %v2111_v52, 3  ;;  %v2120_v21 = vshrl.u32 %v8676_v0, 16  ;;  %v6987_v46 = vld [vmem:[%s8604_s1 + $0x58] sm:$0xff] }
  0x6d   : > { %5737 = vmatprep.mubr.msk.bf16.mxu1 %vm644_vm1, %v6866_v15  ;;  %v6944_v36 = vsel %vm1435_vm2, %v2063_v10, %v2072_v31  ;;  %v2095_v1 = vrot.slane %v2093_v42, 3  ;;  %v2081_v6 = vor.u32 %v2080_v4, %v2077_v55  ;;  %v8679_v55 = vld [vmem:[#allocation12_spill] sm:$0xff]  ;;  %v8680_v42 = vld [vmem:[#allocation10_spill] sm:$0xff]  ;;  %v6992_v27 = vsel %vm1435_vm2, %v6877_v8, %v6879_v3  ;;  %2500 = vperm.xlu1 %6180, %v6973_v57  }
  0x6e   : > { %v6941_v51 = vsel %vm1435_vm2, %v2055_v32, %v2063_v10  ;;  %v2123_v32 = vshll.u32 %v8676_v0, 16  ;;  %v5119_v4 = vcombine.low %v8680_v42, %v8679_v55  ;;  %v2117_v41 = vor.u32 %v2116_v12, %v2113_v28  ;;  %v8683_v12 = vld [vmem:[#allocation15_spill] sm:$0xff]  ;;  %v8684_v0 = vld [vmem:[#allocation13_spill] sm:$0xff]  ;;  %v8688_v22 = vld [vmem:[#allocation20_spill] sm:$0xff] }
  0x6f   : > { %v6968_v34 = vsel %vm1435_vm2, %v2081_v6, %v2090_v44  ;;  %v2099_v62 = vor.u32 %v2098_v17, %v2095_v1  ;;  %v2122_v16 = vrot.slane %v2120_v21, 3  ;;  %v1532_v8 = vor.u32 %v6881_v37, %v6847_v23  ;;  %v7023_v23 = vld [vmem:[%s8604_s1 + $0x8] sm:$0xff] }
  0x70   : > { %v2125_v1 = vrot.slane %v2123_v32, 4  ;;  %v8682_v37 = vld [vmem:[#allocation17_spill] sm:$0xff]  ;;  %v5120_v21 = vcombine.low %v8684_v0, %v8683_v12 }
  0x71   : > { %v6980_v30 = vsel %vm1435_vm2, %v2090_v44, %v2099_v62  ;;  %2510 = vperm.xlu1 %6180, %v6987_v46   ;;  %v2138_v52 = vshrl.u32 %v8682_v37, 16  ;;  %v2141_v56 = vshll.u32 %v8682_v37, 16  ;;  %v7071_v12 = vld [vmem:[%s8604_s1 + $0x20] sm:$0xff] }
  0x72   : > { %v2126_v17 = vor.u32 %v2125_v1, %v2122_v16  ;;  %v5164_v1 = vcombine.low %v6735_v47, %v6765_v19  ;;  %v2147_v47 = vshrl.u32 %v8688_v22, 16  ;;  %v2150_v19 = vshll.u32 %v8688_v22, 16 }
  0x73   : > { %5702 = vmatmul.mubr.msk.bf16.gmra.mrb[8].mxu0 %vm644_vm1, %v5116_v48  ;;  %v6964_v48 = vsel %vm1435_vm2, %v2072_v31, %v2081_v6  ;;  %v8677_v31 = vld [vmem:[#allocation9_spill] sm:$0xff]  ;;  %v7001_v6 = vsel %vm1435_vm2, %v6879_v3, %v6930_v50  ;;  %v2140_v32 = vrot.slane %v2138_v52, 3 }
  0x74   : > { %5738 = vmatmul.mubr.msk.bf16.gmra.mrb[40].mxu1 %vm644_vm1, %v6869_v25  ;;  %5705 = vmatprep.mubr.msk.bf16.mxu0 %vm644_vm1, %v5117_v49  ;;  %v2107_v49 = vrot.slane %v2105_v5, 4  ;;  %v5118_v35 = vcombine.low %v8678_v11, %v8677_v31  ;;  %v7013_v5 = vsel %vm1435_vm2, %v2117_v41, %v2126_v17  ;;  %v2143_v31 = vrot.slane %v2141_v56, 4  ;;  %v8690_v56 = vld [vmem:[#allocation21_spill] sm:$0xff] }
  0x75   : > { %5741 = vmatprep.mubr.msk.bf16.mxu1 %vm644_vm1, %v6912_v24  ;;  %v7033_v11 = vsel %vm1435_vm2, %v6930_v50, %v1532_v8  ;;  %v2149_v37 = vrot.slane %v2147_v47, 3  ;;  %v2152_v52 = vrot.slane %v2150_v19, 4  ;;  %v8696_v19 = vld [vmem:[#allocation26_spill] sm:$0xff] }
  0x76   : > { %v2108_v10 = vor.u32 %v2107_v49, %v2104_v45  ;;  %v8681_v45 = vld [vmem:[#allocation14_spill] sm:$0xff]  ;;  %v2144_v16 = vor.u32 %v2143_v31, %v2140_v32  ;;  %v8692_v32 = vld [vmem:[#allocation24_spill] sm:$0xff] }
  0x77   : > { %v2129_v3 = vshrl.u32 %v8681_v45, 16  ;;  %v2132_v59 = vshll.u32 %v8681_v45, 16  ;;  %v8693_v31 = vld [vmem:[#allocation22_spill] sm:$0xff] }
  0x78   : > { %v6996_v40 = vsel %vm1435_vm2, %v2099_v62, %v2108_v10  ;;  %v7004_v44 = vsel %vm1435_vm2, %v2108_v10, %v2117_v41  ;;  %v1541_v62 = vor.u32 %v6887_v29, %v6885_v14  ;;  %v8686_v10 = vld [vmem:[#allocation16_spill] sm:$0xff]  ;;  %v1555_v14 = vrot.slane %v1553_v9, 3 }
  0x79   : > { %v2131_v49 = vrot.slane %v2129_v3, 3  ;;  %v2134_v28 = vrot.slane %v2132_v59, 4  ;;  %v1558_v29 = vrot.slane %v1556_v54, 4  ;;  %v8643_v41 = vmov 1   ;;  %v8689_v54 = vld [vmem:[#allocation23_spill] sm:$0xff] }
  0x7a   : > { %6181 = vset.pattern.permute.xlu1 %v8643_v41  ;;  %v7045_v50 = vsel %vm1435_vm2, %v1532_v8, %v1541_v62  ;;  %v2159_v8 = vshll.u32 %v8689_v54, 16  ;;  %v1571_v3 = vshrl.u32 %v5164_v1, 16  ;;  %v1574_v59 = vshll.u32 %v5164_v1, 16 }
  0x7b   : > { %5706 = vmatmul.mubr.msk.bf16.gmra.mrb[12].mxu0 %vm644_vm1, %v5118_v35  ;;  %v8685_v35 = vld [vmem:[#allocation18_spill] sm:$0xff]  ;;  %v2135_v42 = vor.u32 %v2134_v28, %v2131_v49  ;;  %3871 = vperm.xlu1 %6181, %v7023_v23   ;;  %v1559_v9 = vor.u32 %v1558_v29, %v1555_v14  ;;  %v8691_v49 = vld [vmem:[#allocation19_spill] sm:$0xff] }
  0x7c   : > { %5742 = vmatmul.mubr.msk.bf16.gmra.mrb[44].mxu1 %vm644_vm1, %v6992_v27  ;;  %5709 = vmatprep.mubr.msk.bf16.mxu0 %vm644_vm1, %v5119_v4  ;;  %v5121_v55 = vcombine.low %v8686_v10, %v8685_v35  ;;  %v1549_v4 = vrot.slane %v1547_v61, 4  ;;  %v5122_v28 = vcombine.low %v8691_v49, %v8690_v56  ;;  %v2161_v0 = vrot.slane %v2159_v8, 4  ;;  %v8699_v56 = vld [vmem:[#allocation25_spill] sm:$0xff] }
  0x7d   : > { %5745 = vmatprep.mubr.msk.bf16.mxu1 %vm644_vm1, %v7001_v6  ;;  %v7049_v45 = vsel %vm1435_vm2, %v2126_v17, %v2135_v42  ;;  %v7053_v53 = vsel %vm1435_vm2, %v2135_v42, %v2144_v16  ;;  %v2156_v17 = vshrl.u32 %v8689_v54, 16  ;;  %v5123_v35 = vcombine.low %v8693_v31, %v8692_v32  ;;  %v8700_v32 = vld [vmem:[#allocation30_spill] sm:$0xff]  ;;  %v8701_v31 = vld [vmem:[#allocation28_spill] sm:$0xff] }
  0x7e   : > { %8687 = vst [vmem:[#allocation6_spill] sm:$0xff] %v7053_v53  ;;  %v1550_v61 = vor.u32 %v1549_v4, %v6895_v63  ;;  %v2153_v10 = vor.u32 %v2152_v52, %v2149_v37  ;;  %v1573_v14 = vrot.slane %v1571_v3, 3  ;;  %v1576_v29 = vrot.slane %v1574_v59, 4  ;;  %v8697_v3 = vld [vmem:[#allocation29_spill] sm:$0xff]  ;;  %v8698_v52 = vld [vmem:[#allocation27_spill] sm:$0xff] }
  0x7f   : > { %3875 = vperm.xlu1 %6181, %v6805_v18   ;;  %v2158_v63 = vrot.slane %v2156_v17, 3  ;;  %v2168_v54 = vshll.u32 %v8696_v19, 16  ;;  %v7108_v17 = vld [vmem:[#allocation2 + $0x18] sm:$0xff]   ;;  %v2174_v59 = vshrl.u32 %v8697_v3, 16  ;;  %v2177_v37 = vshll.u32 %v8697_v3, 16 }
  0x80   : > { %v7078_v18 = vsel %vm1435_vm2, %v1541_v62, %v1550_v61  ;;  %v7081_v4 = vsel %vm1435_vm2, %v1550_v61, %v1559_v9  ;;  %v7085_v1 = vsel %vm1435_vm2, %v2144_v16, %v2153_v10  ;;  %v7102_v16 = vld [vmem:[%s8604_s1] sm:$0xff]  ;;  %v2165_v61 = vshrl.u32 %v8696_v19, 16 }
  0x81   : > { %v2162_v42 = vor.u32 %v2161_v0, %v2158_v63  ;;  %8694 = vst [vmem:[#allocation8_spill] sm:$0xff] %v7085_v1  ;;  %2455 = vperm.xlu0 %6179, %v7102_v16   ;;  %v5124_v49 = vcombine.low %v8699_v56, %v8698_v52  ;;  %v1577_v63 = vor.u32 %v1576_v29, %v1573_v14  ;;  %v484_v19 = vld [vmem:[%s8604_s1 + $0x40] sm:$0xff]  ;;  %v2176_v41 = vrot.slane %v2174_v59, 3 }
  0x82   : > { %v2167_v0 = vrot.slane %v2165_v61, 3  ;;  %v7123_v14 = vsel %vm1435_vm2, %v1559_v9, %v6905_v13  ;;  %v2815_v61 = vshll.u32 %v7108_v17, 16  ;;  %v486_v9 = vld [vmem:[%s8604_s1 + $0x50] sm:$0xff] }
  0x83   : > { %5710 = vmatmul.mubr.msk.bf16.gmra.mrb[16].mxu0 %vm644_vm1, %v5120_v21  ;;  %v5165_v21 = vcombine.low %v6767_v43, %v6767_v43  ;;  %3883 = vperm.xlu1 %6181, %v7071_v12   ;;  %v7091_v43 = vld [vmem:[%s8604_s1 + $0x30] sm:$0xff]  ;;  %v7094_v62 = vsel %vm1435_vm2, %v2153_v10, %v2162_v42  ;;  %v1578_v56 = vsel %vm1435_vm2, %v6905_v13, %v1577_v63  ;;  %v6263_v13 = vld [vmem:[#allocation2 + $0x20] sm:$0xff]  }
  0x84   : > { %5746 = vmatmul.mubr.msk.bf16.gmra.mrb[48].mxu1 %vm644_vm1, %v7033_v11  ;;  %5713 = vmatprep.mubr.msk.bf16.mxu0 %vm644_vm1, %v5121_v55  ;;  %v6260_v55 = vld [vmem:[#allocation2 + $0x10] sm:$0xff]   ;;  %8695 = vst [vmem:[#allocation11_spill] sm:$0xff] %v7094_v62  ;;  %v2179_v62 = vrot.slane %v2177_v37, 4 }
  0x85   : > { %5749 = vmatprep.mubr.msk.bf16.mxu1 %vm644_vm1, %v7045_v50  ;;  %v1580_v22 = vshrl.u32 %v5165_v21, 16  ;;  %v1583_v47 = vshll.u32 %v5165_v21, 16  ;;  %v2810_v8 = vshll.u32 %v6260_v55, 16  ;;  %v2170_v21 = vrot.slane %v2168_v54, 4  ;;  %2460 = vperm.xlu0 %6179, %v7023_v23  }
  0x86   : > { %v2808_v53 = vshrl.u32 %v6260_v55, 16  ;;  %v2180_v54 = vor.u32 %v2179_v62, %v2176_v41  ;;  %v8702_v41 = vld [vmem:[#allocation32_spill] sm:$0xff] }
  0x87   : > { %3891 = vperm.xlu1 %6181, %v7091_v43   ;;  %v1582_v3 = vrot.slane %v1580_v22, 3  ;;  %v1585_v1 = vrot.slane %v1583_v47, 4  ;;  %v2171_v52 = vor.u32 %v2170_v21, %v2167_v0  ;;  %v7125_v29 = vrot.slane %v2810_v8, 1 }
  0x88   : > { %v2183_v62 = vshrl.u32 %v8702_v41, 16  ;;  %v2817_v8 = vrot.slane %v2815_v61, 1 }
  0x89   : > { %v7132_v22 = vsel %vm1435_vm2, %v2162_v42, %v2171_v52  ;;  %v7139_v55 = vsel %vm1435_vm2, %v2171_v52, %v2180_v54  ;;  %v1586_v23 = vor.u32 %v1585_v1, %v1582_v3  ;;  %v2186_v42 = vshll.u32 %v8702_v41, 16  ;;  %2475 = vperm.xlu0 %6179, %v7071_v12   ;;  %v8703_v1 = vld [vmem:[#allocation31_spill] sm:$0xff] }
  0x8a   : > { %v2813_v47 = vor.u32 %v7125_v29, %v2808_v53  ;;  %v2185_v0 = vrot.slane %v2183_v62, 3  ;;  %v2819_v3 = vshrl.u32 %v7108_v17, 16  ;;  %v2823_v52 = vshll.u32 %v6263_v13, 16  ;;  %v7154_v53 = vld [vmem:[%s8604_s1 + $0x60] sm:$0xff] }
  0x8b   : > { %5714 = vmatmul.mubr.msk.bf16.gmra.mrb[20].mxu0 %vm644_vm1, %v5122_v28  ;;  %v1066_v28 = vld [vmem:[#allocation2 + $0x94] sm:$0xf]  ;;  %3899 = vperm.xlu1 %6181, %v484_v19   ;;  %v2188_v21 = vrot.slane %v2186_v42, 4  ;;  %v8704_v62 = vmov 0  }
  0x8c   : > { %5750 = vmatmul.mubr.msk.bf16.gmra.mrb[52].mxu1 %vm644_vm1, %v7078_v18  ;;  %5717 = vmatprep.mubr.msk.bf16.mxu0 %vm644_vm1, %v5123_v35  ;;  %v5125_v35 = vcombine.low %v8701_v31, %v8700_v32  ;;  %v5225_v10 = vcombine.low %v1066_v28, %v1066_v28  ;;  %v5126_v32 = vcombine.low %v8703_v1, %v1066_v28  ;;  %v2827_v28 = vshrl.u32 %v6263_v13, 16  ;;  %v6265_v42 = vld [vmem:[#allocation2 + $0x30] sm:$0xff]   ;;  %v8705_v13 = vld [vmem:[#allocation4_spill] sm:$0xff] }
  0x8d   : > { %5753 = vmatprep.mubr.msk.bf16.mxu1 %vm644_vm1, %v7081_v4  ;;  %v2189_v12 = vor.u32 %v2188_v21, %v2185_v0  ;;  %v7158_v61 = vsel %vm2806_vm3, %v2813_v47, %v2817_v8  ;;  %2485 = vperm.xlu0 %6179, %v7091_v43   ;;  %v2825_v43 = vrot.slane %v2823_v52, 1  ;;  %v6266_v47 = vld [vmem:[#allocation2 + $0x38] sm:$0xff]   ;;  %v2839_v0 = vshll.u32 %v6265_v42, 16  ;;  %v6280_v52 = vld [vmem:[%s8605_s2 + $0x68] sm:$0xff]  }
  0x8e   : > { %v2192_v59 = vshrl.u32 %v5225_v10, 16  ;;  %v2195_v37 = vshll.u32 %v5225_v10, 16  ;;  %v1587_v10 = vsel %vm1435_vm2, %v1577_v63, %v1586_v23  ;;  %v2821_v23 = vor.u32 %v2819_v3, %v2817_v8  ;;  %v7184_v1 = vld [vmem:[%s8604_s1 + $0x78] sm:$0xff] }
  0x8f   : > { %3907 = vperm.xlu1 %6181, %v486_v9   ;;  %v7163_v17 = vsel %vm1435_vm2, %v2180_v54, %v2189_v12  ;;  %v490_v54 = vld [vmem:[%s8604_s1 + $0x70] sm:$0xff]  ;;  %v2841_v3 = vrot.slane %v2839_v0, 1 }
  0x90   : > { %v2194_v31 = vrot.slane %v2192_v59, 3  ;;  %v2829_v59 = vor.u32 %v2827_v28, %v2825_v43  ;;  %v7179_v21 = vsel %vm2806_vm3, %v2821_v23, %v2825_v43  ;;  %v6268_v28 = vld [vmem:[#allocation2 + $0x48] sm:$0xff]   ;;  %v8707_v23 = vmov 1   ;;  %v6269_v0 = vld [vmem:[#allocation2 + $0x50] sm:$0xff]  }
  0x91   : > { %2495 = vperm.xlu0 %6179, %v484_v19   ;;  %v6271_v19 = vld [vmem:[%s8605_s2 + $0x28] sm:$0xff]   ;;  %v2851_v43 = vshrl.u32 %v6266_v47, 16 }
  0x93   : > { %5718 = vmatmul.mubr.msk.bf16.gmra.mrb[24].mxu0 %vm644_vm1, %v5124_v49  ;;  %v6264_v49 = vld [vmem:[#allocation2 + $0x28] sm:$0xff]   ;;  %6182 = vset.pattern.permute.xlu1 %v8704_v62 }
  0x94   : > { %5754 = vmatmul.mubr.msk.bf16.gmra.mrb[56].mxu1 %vm644_vm1, %v7123_v14  ;;  %5721 = vmatprep.mubr.msk.bf16.mxu0 %vm644_vm1, %v5125_v35  ;;  %v2197_v35 = vrot.slane %v2195_v37, 4  ;;  %v2831_v41 = vshll.u32 %v6264_v49, 16  ;;  %v2835_v8 = vshrl.u32 %v6264_v49, 16  ;;  %v6267_v49 = vld [vmem:[#allocation2 + $0x40] sm:$0xff]  }
  0x95   : > { %5757 = vmatprep.mubr.msk.bf16.mxu1 %vm644_vm1, %v1578_v56  ;;  %2515 = vperm.xlu1 %6182, %v7154_v53  }
  0x96   : > { %v2198_v56 = vor.u32 %v2197_v35, %v2194_v31  ;;  %v2833_v37 = vrot.slane %v2831_v41, 1  ;;  %v2847_v31 = vshll.u32 %v6266_v47, 16  ;;  %2505 = vperm.xlu0 %6179, %v486_v9   ;;  %v8706_v9 = vld [vmem:[#allocation5_spill] sm:$0xff] }
  0x97   : > { %v7208_v41 = vld [vmem:[%s8605_s2 + $0x80] sm:$0xff]   ;;  %v493_v47 = vld [vmem:[%s8604_s1 + $0x88] sm:$0xff] }
  0x98   : > { %v7168_v63 = vsel %vm1435_vm2, %v2189_v12, %v2198_v56  ;;  %v7187_v35 = vsel %vm2806_vm3, %v2829_v59, %v2833_v37  ;;  %v2837_v12 = vor.u32 %v2835_v8, %v2833_v37  ;;  %v2849_v56 = vrot.slane %v2847_v31, 1 }
  0x99   : > { %2525 = vperm.xlu1 %6182, %v490_v54   ;;  %v2859_v59 = vshrl.u32 %v6267_v49, 16  ;;  %v2863_v37 = vshll.u32 %v6268_v28, 16 }
  0x9a   : > { %v2853_v8 = vor.u32 %v2851_v43, %v2849_v56 }
  0x9b   : > { %5722 = vmatmul.mubr.msk.bf16.gmra.mrb[28].mxu0 %vm644_vm1, %v5126_v32  ;;  %v2843_v32 = vshrl.u32 %v6265_v42, 16  ;;  %v2855_v42 = vshll.u32 %v6267_v49, 16  ;;  %v2865_v31 = vrot.slane %v2863_v37, 1  ;;  %v7236_v49 = vld [vmem:[%s8604_s1 + $0x80] sm:$0xff]  ;;  %v6273_v37 = vld [vmem:[#allocation2 + $0x68] sm:$0xff]  }
  0x9c   : > { %5758 = vmatmul.mubr.msk.bf16.gmra.mrb[60].mxu1 %vm644_vm1, %v1587_v10  ;;  %5837 = vmatprep.mubr.msk.bf16.mxu0 %vm644_vm1, %v7158_v61 }
  0x9d   : > { %5765 = vmatprep.mubr.msk.bf16.mxu1 %vm644_vm1, %v8705_v13  ;;  %2530 = vperm.xlu1 %6182, %v7184_v1   ;;  %v2845_v10 = vor.u32 %v2843_v32, %v2841_v3 }
  0x9f   : > { %v7219_v13 = vsel %vm2806_vm3, %v2845_v10, %v2849_v56  ;;  %v6272_v56 = vld [vmem:[#allocation2 + $0x60] sm:$0xff]  }
  0xa1   : > { %6183 = vset.pattern.permute.xlu1 %v8707_v23 }
  0xa3   : > { %5838 = vmatmul.mubr.msk.bf16.vlgmr.msra.gmra.mrb[32].mxu0 %vm644_vm1, %v7179_v21 }
  0xa4   : > { %5870 = vmatpush3.bf16.msra.mxu0 %v6853_v33  ;;  %5766 = vmatmul.mubr.msk.bf16.vlgmr.msra.gmra.mrb[32].mxu1 %vm644_vm1, %v8706_v9  ;;  %v489_v33 = vld [vmem:[%s8604_s1 + $0x68] sm:$0xff] }
  0xa5   : > { %5841 = vmatprep.mubr.msk.bf16.mxu0 %vm644_vm1, %v7187_v35  ;;  %5769 = vmatprep.mubr.msk.bf16.mxu1 %vm644_vm1, %v6825_v39  ;;  %v7216_v39 = vsel %vm2806_vm3, %v2837_v12, %v2841_v3  ;;  %v2871_v3 = vshll.u32 %v6269_v0, 16 }
  0xa6   : > { %5871 = vmatprep.subr.bf16.mxu0 %v6271_v19  ;;  %5798 = vmatpush3.bf16.msra.mxu1 %v6875_v58  ;;  %v2857_v58 = vrot.slane %v2855_v42, 1 }
  0xa7   : > { %5799 = vmatprep.subr.bf16.mxu1 %v6280_v52  ;;  %3919 = vperm.xlu1 %6183, %v489_v33   ;;  %v2873_v10 = vrot.slane %v2871_v3, 1  ;;  %v2895_v3 = vshll.u32 %v6273_v37, 16 }
  0xa8   : > { %5872 = vmatpush3.bf16.msra.mxu0 %v6271_v19  ;;  %2520 = vperm.xlu0 %6179, %v489_v33   ;;  %v2861_v32 = vor.u32 %v2859_v59, %v2857_v58  ;;  %v6270_v19 = vld [vmem:[#allocation2 + $0x58] sm:$0xff]   ;;  %v7260_v33 = vld [vmem:[%s8604_s1 + $0xc8] sm:$0xff] }
  0xa9   : > { %5905 = vmatprep.subr.bf16.mxu0 %v7208_v41  ;;  %v2879_v12 = vshll.u32 %v6270_v19, 16 }
  0xaa   : > { %5800 = vmatpush3.bf16.msra.mxu1 %v6280_v52  ;;  %v7244_v52 = vsel %vm2806_vm3, %v2853_v8, %v2857_v58  ;;  %v7247_v9 = vsel %vm2806_vm3, %v2861_v32, %v2865_v31  ;;  %v2887_v58 = vshll.u32 %v6272_v56, 16 }
  0xab   : > { %5842 = vmatmul.mubr.msk.bf16.gmra.mrb[36].mxu0 %vm644_vm1, %v7216_v39  ;;  %3923 = vperm.xlu1 %6183, %v490_v54   ;;  %v2875_v54 = vshrl.u32 %v6269_v0, 16  ;;  %v2881_v59 = vrot.slane %v2879_v12, 1  ;;  %v7272_v0 = vld [vmem:[%s8604_s1 + $0x98] sm:$0xff] }
  0xac   : > { %5770 = vmatmul.mubr.msk.bf16.gmra.mrb[36].mxu1 %vm644_vm1, %v6831_v2  ;;  %5845 = vmatprep.mubr.msk.bf16.mxu0 %vm644_vm1, %v7219_v13  ;;  %v7241_v2 = vld [vmem:[%s8604_s1 + $0xa8] sm:$0xff] }
  0xad   : > { %5773 = vmatprep.mubr.msk.bf16.mxu1 %vm644_vm1, %v6863_v7  ;;  %2540 = vperm.xlu0 %6179, %v493_v47   ;;  %v2867_v7 = vshrl.u32 %v6268_v28, 16  ;;  %v494_v28 = vld [vmem:[%s8604_s1 + $0x90] sm:$0xff]  ;;  %v2877_v43 = vor.u32 %v2875_v54, %v2873_v10 }
  0xae   : > { %v6274_v54 = vld [vmem:[#allocation2 + $0x70] sm:$0xff]  }
  0xaf   : > { %6184 = vset.pattern.permute.xlu1 %v8704_v62  ;;  %v2869_v42 = vor.u32 %v2867_v7, %v2865_v31  ;;  %v7283_v32 = vsel %vm2806_vm3, %v2877_v43, %v2881_v59  ;;  %v2891_v31 = vshrl.u32 %v6272_v56, 16  ;;  %v2889_v7 = vrot.slane %v2887_v58, 1  ;;  %v6275_v56 = vld [vmem:[#allocation2 + $0x78] sm:$0xff]  }
  0xb0   : > { %2535 = vperm.xlu1 %6184, %v7236_v49   ;;  %v2899_v43 = vshrl.u32 %v6273_v37, 16  ;;  %v2907_v58 = vshrl.u32 %v6274_v54, 16 }
  0xb1   : > { %2560 = vperm.xlu0 %6179, %v7241_v2   ;;  %v7280_v8 = vsel %vm2806_vm3, %v2869_v42, %v2873_v10  ;;  %v2893_v12 = vor.u32 %v2891_v31, %v2889_v7  ;;  %v2897_v10 = vrot.slane %v2895_v3, 1  ;;  %v2903_v42 = vshll.u32 %v6274_v54, 16  ;;  %v6276_v31 = vld [vmem:[#allocation2 + $0x80] sm:$0xff]   ;;  %v6277_v3 = vld [vmem:[#allocation2 + $0x88] sm:$0xff]  }
  0xb2   : > { %v2915_v54 = vshrl.u32 %v6275_v56, 16 }
  0xb3   : > { %5846 = vmatmul.mubr.msk.bf16.gmra.mrb[40].mxu0 %vm644_vm1, %v7244_v52 }
  0xb4   : > { %5774 = vmatmul.mubr.msk.bf16.gmra.mrb[40].mxu1 %vm644_vm1, %v6866_v15  ;;  %5849 = vmatprep.mubr.msk.bf16.mxu0 %vm644_vm1, %v7247_v9  ;;  %v7277_v15 = vld [vmem:[%s8604_s1 + $0xe8] sm:$0xff] }
  0xb5   : > { %5777 = vmatprep.mubr.msk.bf16.mxu1 %vm644_vm1, %v6869_v25  ;;  %2545 = vperm.xlu1 %6184, %v494_v28   ;;  %v2883_v25 = vshrl.u32 %v6270_v19, 16 }
  0xb6   : > { %2580 = vperm.xlu0 %6179, %v7260_v33  }
  0xb7   : > { %v2885_v19 = vor.u32 %v2883_v25, %v2881_v59  ;;  %v7302_v59 = vsel %vm2806_vm3, %v2893_v12, %v2897_v10  ;;  %v2905_v25 = vrot.slane %v2903_v42, 1  ;;  %v2927_v12 = vshll.u32 %v6277_v3, 16  ;;  %v409_v42 = vld [vmem:[#allocation2 + $0x98] sm:$0x1] }
  0xb9   : > { %2550 = vperm.xlu1 %6184, %v7272_v0  }
  0xba   : > { %2600 = vperm.xlu0 %6179, %v7277_v15  }
  0xbb   : > { %5850 = vmatmul.mubr.msk.bf16.gmra.mrb[44].mxu0 %vm644_vm1, %v7280_v8 }
  0xbc   : > { %5778 = vmatmul.mubr.msk.bf16.gmra.mrb[44].mxu1 %vm644_vm1, %v6912_v24  ;;  %5853 = vmatprep.mubr.msk.bf16.mxu0 %vm644_vm1, %v7283_v32  ;;  %v7299_v24 = vsel %vm2806_vm3, %v2885_v19, %v2889_v7  ;;  %v7315_v7 = vld [vmem:[%s8604_s1 + $0xa0] sm:$0xff]  ;;  %v2923_v19 = vshrl.u32 %v6276_v31, 16 }
  0xbd   : > { %5781 = vmatprep.mubr.msk.bf16.mxu1 %vm644_vm1, %v6992_v27  ;;  %6185 = vset.pattern.permute.xlu1 %v8707_v23  ;;  %v2911_v27 = vshll.u32 %v6275_v56, 16 }
  0xbe   : > { %6191 = vset.pattern.permute.xlu0 %v8707_v23  ;;  %3935 = vperm.xlu1 %6185, %v493_v47   ;;  %v2909_v47 = vor.u32 %v2907_v58, %v2905_v25  ;;  %v410_v58 = vsel %vm408_vm6, 0, %v409_v42 }
  0xbf   : > { %3867 = vperm.xlu0 %6191, %v7102_v16   ;;  %v2901_v16 = vor.u32 %v2899_v43, %v2897_v10  ;;  %v2913_v37 = vrot.slane %v2911_v27, 1  ;;  %v6281_v10 = vld [vmem:[#allocation2 + $0x8] sm:$0xff]   ;;  %411 = vst [vmem:[#allocation2 + $0x98] sm:$0x1] %v410_v58 }
  0xc1   : > { %v2917_v43 = vor.u32 %v2915_v54, %v2913_v37 }
  0xc2   : > { %3939 = vperm.xlu1 %6185, %v494_v28   ;;  %v2919_v28 = vshll.u32 %v6276_v31, 16  ;;  %v3171_v31 = vshll.u32 %v6281_v10, 16 }
  0xc3   : > { %5854 = vmatmul.mubr.msk.bf16.gmra.mrb[48].mxu0 %vm644_vm1, %v7299_v24  ;;  %3879 = vperm.xlu0 %6191, %v6892_v38   ;;  %v498_v38 = vld [vmem:[%s8604_s1 + $0xb0] sm:$0xff] }
  0xc4   : > { %5782 = vmatmul.mubr.msk.bf16.gmra.mrb[48].mxu1 %vm644_vm1, %v7001_v6  ;;  %5857 = vmatprep.mubr.msk.bf16.mxu0 %vm644_vm1, %v7302_v59  ;;  %v7320_v6 = vsel %vm2806_vm3, %v2901_v16, %v2905_v25  ;;  %v2921_v56 = vrot.slane %v2919_v28, 1  ;;  %v2929_v25 = vrot.slane %v2927_v12, 1  ;;  %v499_v16 = vld [vmem:[%s8604_s1 + $0xb8] sm:$0xff]  ;;  %v3169_v28 = vshrl.u32 %v6281_v10, 16  ;;  %v6288_v10 = vld [vmem:[#allocation2 + $0x30] sm:$0xff]  }
  0xc5   : > { %5785 = vmatprep.mubr.msk.bf16.mxu1 %vm644_vm1, %v7033_v11  ;;  %v7324_v11 = vsel %vm2806_vm3, %v2909_v47, %v2913_v37  ;;  %v2931_v47 = vshrl.u32 %v6277_v3, 16  ;;  %v3173_v54 = vrot.slane %v3171_v31, 1  ;;  %v3505_v58 = vshll.u32 %v6288_v10, 16 }
  0xc6   : > { %6186 = vset.pattern.permute.xlu1 %v8704_v62  ;;  %v7338_v27 = vor.u32 %v2923_v19, %v2921_v56 }
  0xc7   : > { %2555 = vperm.xlu1 %6186, %v7315_v7   ;;  %3887 = vperm.xlu0 %6191, %v6918_v60   ;;  %v6278_v60 = vld [vmem:[#allocation2 + $0x90] ss:$0 sps:$4 sm:$0x11]   ;;  %v3174_v3 = vor.u32 %v3173_v54, %v3169_v28 }
  0xc8   : > { %v2935_v37 = vshll.u32 %v6278_v60, 16 }
  0xc9   : > { %v3175_v12 = vsel %vm2806_vm3, %v3174_v3, %v7125_v29 }
  0xca   : > { %v2937_v19 = vrot.slane %v2935_v37, 1  ;;  %v6290_v37 = vld [vmem:[#allocation2 + $0x40] sm:$0xff]  }
  0xcb   : > { %5858 = vmatmul.mubr.msk.bf16.gmra.mrb[52].mxu0 %vm644_vm1, %v7320_v6  ;;  %2565 = vperm.xlu1 %6186, %v498_v38  }
  0xcc   : > { %5786 = vmatmul.mubr.msk.bf16.gmra.mrb[52].mxu1 %vm644_vm1, %v7045_v50  ;;  %5861 = vmatprep.mubr.msk.bf16.mxu0 %vm644_vm1, %v7324_v11  ;;  %v7345_v50 = vsel %vm2806_vm3, %v2917_v43, %v2921_v56 }
  0xcd   : > { %5789 = vmatprep.mubr.msk.bf16.mxu1 %vm644_vm1, %v7078_v18  ;;  %3895 = vperm.xlu0 %6191, %v6935_v26   ;;  %v2930_v18 = vsel %vm2806_vm3, %v7338_v27, %v2929_v25  ;;  %v2933_v26 = vor.u32 %v2931_v47, %v2929_v25  ;;  %v3507_v47 = vrot.slane %v3505_v58, 1 }
  0xcf   : > { %2570 = vperm.xlu1 %6186, %v499_v16  }
  0xd1   : > { %3903 = vperm.xlu0 %6191, %v6973_v57   ;;  %v2938_v57 = vsel %vm2806_vm3, %v2933_v26, %v2937_v19  ;;  %v3509_v26 = vshrl.u32 %v6288_v10, 16 }
  0xd3   : > { %5862 = vmatmul.mubr.msk.bf16.gmra.mrb[56].mxu0 %vm644_vm1, %v7345_v50  ;;  %6187 = vset.pattern.permute.xlu1 %v8707_v23 }
  0xd4   : > { %5790 = vmatmul.mubr.msk.bf16.gmra.mrb[56].mxu1 %vm644_vm1, %v7081_v4  ;;  %5865 = vmatprep.mubr.msk.bf16.mxu0 %vm644_vm1, %v2930_v18  ;;  %v500_v4 = vld [vmem:[%s8604_s1 + $0xc0] sm:$0xff] }
  0xd5   : > { %5793 = vmatprep.mubr.msk.bf16.mxu1 %vm644_vm1, %v7123_v14  ;;  %3951 = vperm.xlu1 %6187, %v7241_v2  }
  0xd6   : > { %3911 = vperm.xlu0 %6191, %v6987_v46   ;;  %v502_v46 = vld [vmem:[%s8604_s1 + $0xd0] sm:$0xff] }
  0xd9   : > { %3955 = vperm.xlu1 %6187, %v498_v38  }
  0xda   : > { %3915 = vperm.xlu0 %6191, %v7154_v53  }
  0xdb   : > { %5866 = vmatmul.mubr.msk.bf16.gmra.mrb[60].mxu0 %vm644_vm1, %v2938_v57 }
  0xdc   : > { %5794 = vmatmul.mubr.msk.bf16.gmra.mrb[60].mxu1 %vm644_vm1, %v6922_v20  ;;  %5873 = vmatprep.mubr.msk.bf16.mxu0 %vm644_vm1, %v3175_v12  ;;  %v6283_v20 = vld [vmem:[%s8605_s2 + $0x88] sm:$0xff]   ;;  %v3521_v12 = vshll.u32 %v6290_v37, 16 }
  0xdd   : > { %5801 = vmatprep.mubr.msk.bf16.mxu1 %vm644_vm1, %v6941_v51  ;;  %6188 = vset.pattern.permute.xlu1 %v8704_v62  ;;  %v503_v51 = vld [vmem:[%s8604_s1 + $0xd8] sm:$0xff] }
  0xde   : > { %3927 = vperm.xlu0 %6191, %v7184_v1   ;;  %2575 = vperm.xlu1 %6188, %v500_v4  }
  0xe2   : > { %3931 = vperm.xlu0 %6191, %v7236_v49   ;;  %2585 = vperm.xlu1 %6188, %v502_v46   ;;  %v6286_v49 = vld [vmem:[#allocation2 + $0x20] sm:$0xff]  }
  0xe3   : > { %5874 = vmatmul.mubr.msk.bf16.vlgmr.msra.gmra.mrb[32].mxu0 %vm644_vm1, %v7158_v61  ;;  %v3493_v42 = vshrl.u32 %v6286_v49, 16 }
  0xe4   : > { %5906 = vmatpush3.bf16.msra.mxu0 %v7208_v41  ;;  %5802 = vmatmul.mubr.msk.bf16.vlgmr.msra.gmra.mrb[32].mxu1 %vm644_vm1, %v6944_v36  ;;  %v504_v36 = vld [vmem:[%s8604_s1 + $0xe0] sm:$0xff] }
  0xe5   : > { %5877 = vmatprep.mubr.msk.bf16.mxu0 %vm644_vm1, %v7179_v21  ;;  %5805 = vmatprep.mubr.msk.bf16.mxu1 %vm644_vm1, %v6964_v48 }
  0xe6   : > { %5907 = vmatprep.subr.bf16.mxu0 %v6283_v20  ;;  %3943 = vperm.xlu0 %6191, %v7272_v0  }
  0xe7   : > { %2590 = vperm.xlu1 %6188, %v503_v51  }
  0xe8   : > { %5908 = vmatpush3.bf16.msra.mxu0 %v6283_v20  ;;  %v6291_v20 = vld [vmem:[#allocation2 + $0x48] sm:$0xff]  }
  0xea   : > { %3947 = vperm.xlu0 %6191, %v7315_v7  }
  0xeb   : > { %5878 = vmatmul.mubr.msk.bf16.gmra.mrb[36].mxu0 %vm644_vm1, %v7187_v35  ;;  %6189 = vset.pattern.permute.xlu1 %v8707_v23  ;;  %v6285_v35 = vld [vmem:[#allocation2 + $0x18] sm:$0xff]  }
  0xec   : > { %5806 = vmatmul.mubr.msk.bf16.gmra.mrb[36].mxu1 %vm644_vm1, %v6968_v34  ;;  %5881 = vmatprep.mubr.msk.bf16.mxu0 %vm644_vm1, %v7216_v39  ;;  %v506_v34 = vld [vmem:[%s8604_s1 + $0xf0] sm:$0xff]  ;;  %v3484_v2 = vshll.u32 %v6285_v35, 16  ;;  %v3482_v0 = vshrl.u32 %v6285_v35, 16 }
  0xed   : > { %5809 = vmatprep.mubr.msk.bf16.mxu1 %vm644_vm1, %v6980_v30  ;;  %3967 = vperm.xlu1 %6189, %v7260_v33   ;;  %v8710_v39 = vld [vmem:[#allocation11_spill] sm:$0xff] }
  0xee   : > { %3959 = vperm.xlu0 %6191, %v499_v16   ;;  %v6289_v16 = vld [vmem:[#allocation2 + $0x38] sm:$0xff]  }
  0xef   : > { %v3513_v18 = vshll.u32 %v6289_v16, 16  ;;  %v3517_v57 = vshrl.u32 %v6289_v16, 16 }
  0xf1   : > { %3971 = vperm.xlu1 %6189, %v502_v46   ;;  %v3515_v46 = vrot.slane %v3513_v18, 1 }
  0xf2   : > { %3963 = vperm.xlu0 %6191, %v500_v4  }
  0xf3   : > { %5882 = vmatmul.mubr.msk.bf16.gmra.mrb[40].mxu0 %vm644_vm1, %v7219_v13  ;;  %v6284_v13 = vld [vmem:[#allocation2 + $0x88] ss:$0 sps:$4 sm:$0x11]  }
  0xf4   : > { %5810 = vmatmul.mubr.msk.bf16.gmra.mrb[40].mxu1 %vm644_vm1, %v6996_v40  ;;  %5885 = vmatprep.mubr.msk.bf16.mxu0 %vm644_vm1, %v7244_v52 }
  0xf5   : > { %5813 = vmatprep.mubr.msk.bf16.mxu1 %vm644_vm1, %v7004_v44  ;;  %6190 = vset.pattern.permute.xlu1 %v8704_v62  ;;  %v507_v44 = vld [vmem:[%s8604_s1 + $0xf8] sm:$0xff] }
  0xf6   : > { %2595 = vperm.xlu1 %6190, %v504_v36   ;;  %3975 = vperm.xlu0 %6191, %v503_v51   ;;  %v7516_v51 = vpop.permute.xlu1 %2465 }
  0xf7   : > { %v7418_v48 = vpop.f32.mrb[0].mxu1 }
  0xf8   : > { %v7423_v30 = vpop.f32.mrb[1].mxu1 }
  0xf9   : > { %v7425_v14 = vpop.f32.mrb[2].mxu1 }
  0xfa   : > { %v7427_v40 = vpop.f32.mrb[3].mxu1  ;;  %2605 = vperm.xlu1 %6190, %v506_v34   ;;  %3979 = vperm.xlu0 %6191, %v504_v36   ;;  %v3511_v36 = vor.u32 %v3509_v26, %v3507_v47  ;;  %v6295_v26 = vld [vmem:[#allocation2 + $0x68] sm:$0xff]  }
  0xfb   : > { %5886 = vmatmul.mubr.msk.bf16.gmra.mrb[44].mxu0 %vm644_vm1, %v7247_v9  ;;  %v3177_v9 = vshll.u32 %v6284_v13, 16  ;;  %v3525_v13 = vshrl.u32 %v6290_v37, 16 }
  0xfc   : > { %5814 = vmatmul.mubr.msk.bf16.gmra.mrb[44].mxu1 %vm644_vm1, %v7013_v5  ;;  %5889 = vmatprep.mubr.msk.bf16.mxu0 %vm644_vm1, %v7280_v8  ;;  %v8708_v5 = vld [vmem:[#allocation6_spill] sm:$0xff]  ;;  %v3489_v8 = vshll.u32 %v6286_v49, 16 }
  0xfd   : > { %5817 = vmatprep.mubr.msk.bf16.mxu1 %vm644_vm1, %v7049_v45  ;;  %v8709_v45 = vld [vmem:[#allocation8_spill] sm:$0xff] }
  0xfe   : > { %2610 = vperm.xlu1 %6190, %v507_v44   ;;  %3991 = vperm.xlu0 %6191, %v507_v44   ;;  %v3523_v44 = vrot.slane %v3521_v12, 1 }
  0xff   : > { %v7440_v29 = vpop.f32.mrb[4].mxu1 }
 0x100   : > { %v7442_v53 = vpop.f32.mrb[5].mxu1 }
 0x101   : > { %v7444_v61 = vpop.f32.mrb[6].mxu1 }
 0x102   : > { %v7446_v62 = vpop.f32.mrb[7].mxu1  ;;  %6192 = vset.pattern.permute.xlu1 %v8707_v23 }
 0x103   : > { %5890 = vmatmul.mubr.msk.bf16.gmra.mrb[48].mxu0 %vm644_vm1, %v7283_v32  ;;  %3983 = vperm.xlu1 %6192, %v7277_v15   ;;  %v3486_v15 = vrot.slane %v3484_v2, 1 }
 0x104   : > { %5818 = vmatmul.mubr.msk.bf16.gmra.mrb[48].mxu1 %vm644_vm1, %v8708_v5  ;;  %5893 = vmatprep.mubr.msk.bf16.mxu0 %vm644_vm1, %v7299_v24  ;;  %v6292_v5 = vld [vmem:[#allocation2 + $0x50] sm:$0xff]  }
 0x105   : > { %5821 = vmatprep.mubr.msk.bf16.mxu1 %vm644_vm1, %v8709_v45  ;;  %v3487_v7 = vor.u32 %v3486_v15, %v3482_v0  ;;  %v3529_v45 = vshll.u32 %v6291_v20, 16  ;;  %v3537_v0 = vshll.u32 %v6292_v5, 16 }
 0x107   : > { %v7458_v21 = vpop.f32.mrb[8].mxu1  ;;  %3987 = vperm.xlu1 %6192, %v506_v34   ;;  %v3519_v34 = vor.u32 %v3517_v57, %v3515_v46 }
 0x108   : > { %v7460_v1 = vpop.f32.mrb[9].mxu1 }
 0x109   : > { %v7462_v41 = vpop.f32.mrb[10].mxu1  ;;  %v3524_v2 = vsel %vm2806_vm3, %v3519_v34, %v3523_v44 }
 0x10a   : > { %v7464_v23 = vpop.f32.mrb[11].mxu1 }
 0x10b   : > { %5894 = vmatmul.mubr.msk.bf16.gmra.mrb[52].mxu0 %vm644_vm1, %v7302_v59  ;;  %v6287_v59 = vld [vmem:[#allocation2 + $0x28] sm:$0xff]  }
 0x10c   : > { %5822 = vmatmul.mubr.msk.bf16.gmra.mrb[52].mxu1 %vm644_vm1, %v8710_v39  ;;  %5897 = vmatprep.mubr.msk.bf16.mxu0 %vm644_vm1, %v7320_v6  ;;  %v3491_v6 = vrot.slane %v3489_v8, 1  ;;  %v3497_v38 = vshll.u32 %v6287_v59, 16  ;;  %v3501_v60 = vshrl.u32 %v6287_v59, 16  ;;  %v3516_v39 = vsel %vm2806_vm3, %v3511_v36, %v3515_v46  ;;  %v7527_v8 = vpop.permute.xlu1 %2470  ;;  %v6296_v46 = vld [vmem:[#allocation2 + $0x70] sm:$0xff]  }
 0x10d   : > { %5825 = vmatprep.mubr.msk.bf16.mxu1 %vm644_vm1, %v7132_v22  ;;  %v3179_v22 = vrot.slane %v3177_v9, 1  ;;  %v3533_v9 = vshrl.u32 %v6291_v20, 16 }
 0x10f   : > { %v7474_v52 = vpop.f32.mrb[12].mxu1 }
 0x110   : > { %v7476_v33 = vpop.f32.mrb[13].mxu1 }
 0x111   : > { %v7478_v32 = vpop.f32.mrb[14].mxu1 }
 0x112   : > { %v7480_v24 = vpop.f32.mrb[15].mxu1 }
 0x113   : > { %5898 = vmatmul.mubr.msk.bf16.gmra.mrb[56].mxu0 %vm644_vm1, %v7324_v11  ;;  %v3180_v11 = vsel %vm2806_vm3, %v7338_v27, %v3179_v22  ;;  %v3531_v22 = vrot.slane %v3529_v45, 1 }
 0x114   : > { %5826 = vmatmul.mubr.msk.bf16.gmra.mrb[56].mxu1 %vm644_vm1, %v7139_v55  ;;  %5901 = vmatprep.mubr.msk.bf16.mxu0 %vm644_vm1, %v7345_v50  ;;  %v3492_v55 = vsel %vm2806_vm3, %v3487_v7, %v3491_v6  ;;  %v3495_v50 = vor.u32 %v3493_v42, %v3491_v6  ;;  %v6293_v7 = vld [vmem:[#allocation2 + $0x58] sm:$0xff]   ;;  %v3527_v6 = vor.u32 %v3525_v13, %v3523_v44 }
 0x115   : > { %5829 = vmatprep.mubr.msk.bf16.mxu1 %vm644_vm1, %v7163_v17  ;;  %v3499_v17 = vrot.slane %v3497_v38, 1  ;;  %v3535_v10 = vor.u32 %v3533_v9, %v3531_v22  ;;  %v3539_v38 = vrot.slane %v3537_v0, 1  ;;  %v3545_v42 = vshll.u32 %v6293_v7, 16 }
 0x116   : > { %v3532_v58 = vsel %vm2806_vm3, %v3527_v6, %v3531_v22  ;;  %v3569_v6 = vshll.u32 %v6296_v46, 16 }
 0x117   : > { %v7490_v56 = vpop.f32.mrb[16].mxu1  ;;  %v3503_v27 = vor.u32 %v3501_v60, %v3499_v17  ;;  %v3500_v54 = vsel %vm2806_vm3, %v3495_v50, %v3499_v17  ;;  %v7535_v60 = vpop.permute.xlu1 %2480  ;;  %v3541_v17 = vshrl.u32 %v6292_v5, 16  ;;  %v3540_v50 = vsel %vm2806_vm3, %v3535_v10, %v3539_v38 }
 0x118   : > { %v7494_v43 = vpop.f32.mrb[17].mxu1  ;;  %v3561_v5 = vshll.u32 %v6295_v26, 16 }
 0x119   : > { %v7497_v25 = vpop.f32.mrb[18].mxu1  ;;  %v3508_v3 = vsel %vm2806_vm3, %v3503_v27, %v3507_v47  ;;  %v3549_v27 = vshrl.u32 %v6293_v7, 16  ;;  %v3565_v7 = vshrl.u32 %v6295_v26, 16 }
 0x11a   : > { %v7499_v31 = vpop.f32.mrb[19].mxu1  ;;  %v3563_v10 = vrot.slane %v3561_v5, 1 }
 0x11b   : > { %5902 = vmatmul.mubr.msk.bf16.gmra.mrb[60].mxu0 %vm644_vm1, %v3180_v11  ;;  %v6294_v11 = vld [vmem:[#allocation2 + $0x60] sm:$0xff]   ;;  %v7547_v20 = vpop.permute.xlu1 %2490 }
 0x11c   : > { %5830 = vmatmul.mubr.msk.bf16.gmra.mrb[60].mxu1 %vm644_vm1, %v7168_v63  ;;  %5909 = vmatprep.mubr.msk.bf16.mxu0 %vm644_vm1, %v3492_v55  ;;  %v3553_v47 = vshll.u32 %v6294_v11, 16 }
 0x11e   : > { %v3555_v12 = vrot.slane %v3553_v47, 1 }
 0x11f   : > { %v7505_v28 = vpop.f32.mrb[20].mxu1 }
 0x120   : > { %v7508_v19 = vpop.f32.mrb[21].mxu1 }
 0x121   : > { %v7511_v4 = vpop.f32.mrb[22].mxu1 }
 0x122   : > { %v7513_v63 = vpop.f32.mrb[23].mxu1 }
 0x123   : > { %5910 = vmatmul.mubr.msk.bf16.vlgmr.msra.gmra.mrb[32].mxu0 %vm644_vm1, %v3500_v54  ;;  %v3547_v54 = vrot.slane %v3545_v42, 1  ;;  %v3567_v42 = vor.u32 %v3565_v7, %v3563_v10 }
 0x124   : > { %5913 = vmatprep.mubr.msk.bf16.mxu0 %vm644_vm1, %v3508_v3  ;;  %v3543_v3 = vor.u32 %v3541_v17, %v3539_v38  ;;  %v7564_v38 = vpop.permute.xlu1 %2500 }
 0x125   : > { %v3551_v57 = vor.u32 %v3549_v27, %v3547_v54 }
 0x126   : > { %v3548_v13 = vsel %vm2806_vm3, %v3543_v3, %v3547_v54  ;;  %v3573_v3 = vshrl.u32 %v6296_v46, 16 }
 0x127   : > { %v7519_v35 = vpop.f32.mrb[24].mxu1  ;;  %v3556_v22 = vsel %vm2806_vm3, %v3551_v57, %v3555_v12 }
 0x128   : > { %v7522_v49 = vpop.f32.mrb[25].mxu1 }
 0x129   : > { %v7525_v15 = vpop.f32.mrb[26].mxu1 }
 0x12a   : > { %v7529_v59 = vpop.f32.mrb[27].mxu1 }
 0x12b   : > { %5914 = vmatmul.mubr.msk.bf16.gmra.mrb[36].mxu0 %vm644_vm1, %v3516_v39 }
 0x12c   : > { %5917 = vmatprep.mubr.msk.bf16.mxu0 %vm644_vm1, %v3524_v2  ;;  %v3557_v2 = vshrl.u32 %v6294_v11, 16 }
 0x12e   : > { %v3559_v11 = vor.u32 %v3557_v2, %v3555_v12 }
 0x12f   : > { %v7533_v55 = vpop.f32.mrb[28].mxu1 }
 0x130   : > { %v7538_v16 = vpop.f32.mrb[29].mxu1  ;;  %v3564_v26 = vsel %vm2806_vm3, %v3559_v11, %v3563_v10 }
 0x131   : > { %v7541_v37 = vpop.f32.mrb[30].mxu1 }
 0x132   : > { %v7543_v18 = vpop.f32.mrb[31].mxu1 }
 0x133   : > { %5918 = vmatmul.mubr.msk.bf16.gmra.mrb[40].mxu0 %vm644_vm1, %v3532_v58  ;;  %v6298_v58 = vld [vmem:[#allocation2 + $0x80] sm:$0xff]  }
 0x134   : > { %5921 = vmatprep.mubr.msk.bf16.mxu0 %vm644_vm1, %v3540_v50  ;;  %v3585_v5 = vshll.u32 %v6298_v58, 16 }
 0x136   : > { %v5695_v36 = vpop.f32.mrb[0].mxu0 }
 0x137   : > { %v7550_v34 = vadd.f32 %v5695_v36, %v7418_v48  ;;  %v1246_v44 = vpop.f32.mrb[1].mxu0 }
 0x138   : > { %v7553_v45 = vadd.f32 %v1246_v44, %v7423_v30  ;;  %v5696_v39 = vpop.f32.mrb[2].mxu0  ;;  %v6297_v30 = vld [vmem:[#allocation2 + $0x78] sm:$0xff]  }
 0x139   : > { %v7557_v9 = vadd.f32 %v5696_v39, %v7425_v14  ;;  %v1249_v0 = vpop.f32.mrb[3].mxu0  ;;  %v3571_v14 = vrot.slane %v3569_v6, 1  ;;  %v3577_v47 = vshll.u32 %v6297_v30, 16  ;;  %v3581_v44 = vshrl.u32 %v6297_v30, 16  ;;  %v7578_v39 = vpop.permute.xlu1 %2510 }
 0x13a   : > { %v7561_v48 = vadd.f32 %v1249_v0, %v7427_v40  ;;  %v6300_v0 = vld [vmem:[#allocation2 + $0x90] sm:$0xff]  }
 0x13b   : > { %5922 = vmatmul.mubr.msk.bf16.gmra.mrb[44].mxu0 %vm644_vm1, %v3548_v13  ;;  %v3572_v36 = vsel %vm2806_vm3, %v3567_v42, %v3571_v14  ;;  %v6299_v13 = vld [vmem:[#allocation2 + $0x88] sm:$0xff]   ;;  %v3575_v46 = vor.u32 %v3573_v3, %v3571_v14 }
 0x13c   : > { %5925 = vmatprep.mubr.msk.bf16.mxu0 %vm644_vm1, %v3556_v22  ;;  %v6302_v22 = vld [vmem:[%s8608_s5] sm:$0xff]   ;;  %v3593_v10 = vshll.u32 %v6299_v13, 16 }
 0x13d   : > { %v7591_v30 = vpop.permute.xlu1 %3871  ;;  %5941 = vmatprep.subr.bf16.mxu1 %v6302_v22 }
 0x13e   : > { %v5699_v17 = vpop.f32.mrb[4].mxu0  ;;  %8711 = vst [vmem:[#allocation9_spill] sm:$0xff] %v7591_v30  ;;  %5942 = vmatpush3.bf16.msra.mxu1 %v6302_v22  ;;  %v3605_v22 = vshrl.u32 %v6300_v0, 16 }
 0x13f   : > { %v7568_v50 = vadd.f32 %v5699_v17, %v7440_v29  ;;  %v1262_v27 = vpop.f32.mrb[5].mxu0  ;;  %v3589_v17 = vshrl.u32 %v6298_v58, 16 }
 0x140   : > { %v7571_v40 = vadd.f32 %v1262_v27, %v7442_v53  ;;  %v5700_v54 = vpop.f32.mrb[6].mxu0  ;;  %v3579_v53 = vrot.slane %v3577_v47, 1 }
 0x141   : > { %v7575_v57 = vadd.f32 %v5700_v54, %v7444_v61  ;;  %v1265_v12 = vpop.f32.mrb[7].mxu0  ;;  %v3587_v61 = vrot.slane %v3585_v5, 1  ;;  %v3597_v54 = vshrl.u32 %v6299_v13, 16  ;;  %v7606_v5 = vpop.permute.xlu1 %3875 }
 0x142   : > { %v7581_v29 = vadd.f32 %v1265_v12, %v7446_v62  ;;  %v3583_v2 = vor.u32 %v3581_v44, %v3579_v53  ;;  %v3580_v14 = vsel %vm2806_vm3, %v3575_v46, %v3579_v53  ;;  %8712 = vst [vmem:[#allocation7_spill] sm:$0xff] %v7606_v5 }
 0x143   : > { %5926 = vmatmul.mubr.msk.bf16.gmra.mrb[48].mxu0 %vm644_vm1, %v3564_v26  ;;  %v3601_v26 = vshll.u32 %v6300_v0, 16  ;;  %v3591_v12 = vor.u32 %v3589_v17, %v3587_v61 }
 0x144   : > { %5929 = vmatprep.mubr.msk.bf16.mxu0 %vm644_vm1, %v3572_v36  ;;  %v6301_v36 = vld [vmem:[#allocation2 + $0x98] ss:$0 sps:$4 sm:$0x11]  }
 0x145   : > { %v3603_v44 = vrot.slane %v3601_v26, 1 }
 0x146   : > { %v5703_v7 = vpop.f32.mrb[8].mxu0 }
 0x147   : > { %v7589_v6 = vadd.f32 %v5703_v7, %v7458_v21  ;;  %v1278_v62 = vpop.f32.mrb[9].mxu0  ;;  %v3588_v21 = vsel %vm2806_vm3, %v3583_v2, %v3587_v61  ;;  %v3609_v7 = vshll.u32 %v6301_v36, 16 }
 0x148   : > { %v7594_v11 = vadd.f32 %v1278_v62, %v7460_v1  ;;  %v5704_v42 = vpop.f32.mrb[10].mxu0  ;;  %v3595_v1 = vrot.slane %v3593_v10, 1 }
 0x149   : > { %v7598_v27 = vadd.f32 %v5704_v42, %v7462_v41  ;;  %v1281_v47 = vpop.f32.mrb[11].mxu0 }
 0x14a   : > { %v7602_v3 = vadd.f32 %v1281_v47, %v7464_v23  ;;  %v3599_v58 = vor.u32 %v3597_v54, %v3595_v1  ;;  %v3596_v2 = vsel %vm2806_vm3, %v3591_v12, %v3595_v1 }
 0x14b   : > { %5930 = vmatmul.mubr.msk.bf16.gmra.mrb[52].mxu0 %vm644_vm1, %v3580_v14  ;;  %v3611_v14 = vrot.slane %v3609_v7, 1 }
 0x14c   : > { %5933 = vmatprep.mubr.msk.bf16.mxu0 %vm644_vm1, %v3588_v21  ;;  %v3604_v10 = vsel %vm2806_vm3, %v3599_v58, %v3603_v44 }
 0x14e   : > { %v5707_v41 = vpop.f32.mrb[12].mxu0 }
 0x14f   : > { %v7609_v53 = vadd.f32 %v5707_v41, %v7474_v52  ;;  %v1294_v13 = vpop.f32.mrb[13].mxu0  ;;  %v7623_v52 = vpop.permute.xlu1 %3883 }
 0x150   : > { %v7612_v46 = vadd.f32 %v1294_v13, %v7476_v33  ;;  %v5708_v23 = vpop.f32.mrb[14].mxu0  ;;  %8713 = vst [vmem:[#allocation12_spill] sm:$0xff] %v7623_v52  ;;  %v3607_v33 = vor.u32 %v3605_v22, %v3603_v44 }
 0x151   : > { %v7616_v61 = vadd.f32 %v5708_v23, %v7478_v32  ;;  %v1297_v62 = vpop.f32.mrb[15].mxu0 }
 0x152   : > { %v7620_v42 = vadd.f32 %v1297_v62, %v7480_v24  ;;  %v3612_v24 = vsel %vm2806_vm3, %v3607_v33, %v3611_v14 }
 0x153   : > { %5934 = vmatmul.mubr.msk.bf16.gmra.mrb[56].mxu0 %vm644_vm1, %v3596_v2  ;;  %v7636_v1 = vpop.permute.xlu1 %3891 }
 0x154   : > { %5937 = vmatprep.mubr.msk.bf16.mxu0 %vm644_vm1, %v3604_v10  ;;  %8714 = vst [vmem:[#allocation10_spill] sm:$0xff] %v7636_v1 }
 0x156   : > { %v5711_v17 = vpop.f32.mrb[16].mxu0 }
 0x157   : > { %v7627_v0 = vadd.f32 %v5711_v17, %v7490_v56  ;;  %v1310_v32 = vpop.f32.mrb[17].mxu0  ;;  %v7645_v58 = vpop.permute.xlu1 %3899 }
 0x158   : > { %v7630_v47 = vadd.f32 %v1310_v32, %v7494_v43  ;;  %v5712_v21 = vpop.f32.mrb[18].mxu0  ;;  %8715 = vst [vmem:[#allocation14_spill] sm:$0xff] %v7645_v58 }
 0x159   : > { %v7634_v54 = vadd.f32 %v5712_v21, %v7497_v25  ;;  %v1313_v26 = vpop.f32.mrb[19].mxu0 }
 0x15a   : > { %v7639_v12 = vadd.f32 %v1313_v26, %v7499_v31 }
 0x15b   : > { %5938 = vmatmul.mubr.msk.bf16.gmra.mrb[60].mxu0 %vm644_vm1, %v3612_v24  ;;  %v7656_v23 = vpop.permute.xlu1 %3907 }
 0x15c   : > { %8716 = vst [vmem:[#allocation17_spill] sm:$0xff] %v7656_v23 }
 0x15e   : > { %v5715_v56 = vpop.f32.mrb[20].mxu0 }
 0x15f   : > { %v7643_v36 = vadd.f32 %v5715_v56, %v7505_v28  ;;  %v1326_v43 = vpop.f32.mrb[21].mxu0  ;;  %v6303_v28 = vld [vmem:[%s8608_s5 + $0x8] sm:$0xff]   ;;  %v7673_v33 = vpop.permute.xlu1 %2515 }
 0x160   : > { %v7648_v44 = vadd.f32 %v1326_v43, %v7508_v19  ;;  %v5716_v25 = vpop.f32.mrb[22].mxu0  ;;  %5943 = vmatprep.subr.bf16.mxu1 %v6303_v28 }
 0x161   : > { %v7651_v41 = vadd.f32 %v5716_v25, %v7511_v4  ;;  %v1329_v13 = vpop.f32.mrb[23].mxu0  ;;  %5944 = vmatpush3.bf16.msra.mxu1 %v6303_v28  ;;  %v2456_v25 = vpop.permute.xlu0 %2455 }
 0x162   : > { %v7654_v31 = vadd.f32 %v1329_v13, %v7513_v63 }
 0x163   : > { %v7684_v24 = vpop.permute.xlu1 %2525 }
 0x166   : > { %v5719_v2 = vpop.f32.mrb[24].mxu0 }
 0x167   : > { %v7662_v22 = vadd.f32 %v5719_v2, %v7519_v35  ;;  %v1342_v19 = vpop.f32.mrb[25].mxu0  ;;  %v7689_v26 = vpop.permute.xlu1 %2530 }
 0x168   : > { %v7665_v7 = vadd.f32 %v1342_v19, %v7522_v49  ;;  %v5720_v4 = vpop.f32.mrb[26].mxu0 }
 0x169   : > { %v7668_v63 = vadd.f32 %v5720_v4, %v7525_v15  ;;  %v1345_v62 = vpop.f32.mrb[27].mxu0 }
 0x16a   : > { %v7671_v10 = vadd.f32 %v1345_v62, %v7529_v59 }
 0x16b   : > { %v7691_v56 = vpop.permute.xlu1 %3919 }
 0x16c   : > { %8719 = vst [vmem:[#allocation18_spill] sm:$0xff] %v7691_v56 }
 0x16e   : > { %v5723_v14 = vpop.f32.mrb[28].mxu0 }
 0x16f   : > { %v7676_v35 = vadd.f32 %v5723_v14, %v7533_v55  ;;  %v1358_v17 = vpop.f32.mrb[29].mxu0  ;;  %v7693_v55 = vpop.permute.xlu1 %3923 }
 0x170   : > { %v7679_v32 = vadd.f32 %v1358_v17, %v7538_v16  ;;  %v5724_v49 = vpop.f32.mrb[30].mxu0  ;;  %8720 = vst [vmem:[#allocation16_spill] sm:$0xff] %v7693_v55 }
 0x171   : > { %v7682_v21 = vadd.f32 %v5724_v49, %v7541_v37  ;;  %v1361_v15 = vpop.f32.mrb[31].mxu0  ;;  %v2461_v37 = vpop.permute.xlu0 %2460 }
 0x172   : > { %v7687_v59 = vadd.f32 %v1361_v15, %v7543_v18 }
 0x173   : > { %8717 = vst [vmem:[#allocation15_spill] sm:$0xff] %v7682_v21  ;;  %v7695_v43 = vpop.permute.xlu1 %2535 }
 0x174   : > { %8718 = vst [vmem:[#allocation13_spill] sm:$0xff] %v7687_v59 }
 0x175   : > { %v2476_v2 = vpop.permute.xlu0 %2475 }
 0x177   : > { %v7697_v16 = vpop.permute.xlu1 %2545 }
 0x179   : > { %v2486_v18 = vpop.permute.xlu0 %2485 }
 0x17b   : > { %v7699_v13 = vpop.permute.xlu1 %2550 }
 0x17d   : > { %v2496_v62 = vpop.permute.xlu0 %2495 }
 0x17f   : > { %v7701_v28 = vpop.permute.xlu1 %3935 }
 0x180   : > { %8721 = vst [vmem:[#allocation20_spill] sm:$0xff] %v7701_v28 }
 0x181   : > { %v2506_v17 = vpop.permute.xlu0 %2505 }
 0x183   : > { %v7703_v19 = vpop.permute.xlu1 %3939 }
 0x184   : > { %8722 = vst [vmem:[#allocation23_spill] sm:$0xff] %v7703_v19 }
 0x185   : > { %v2521_v56 = vpop.permute.xlu0 %2520 }
 0x187   : > { %v7705_v4 = vpop.permute.xlu1 %2555 }
 0x18b   : > { %v7707_v14 = vpop.permute.xlu1 %2565 }
 0x18f   : > { %v7709_v49 = vpop.permute.xlu1 %2570 }
 0x193   : > { %v7712_v28 = vpop.permute.xlu1 %3951 }
 0x194   : > { %8723 = vst [vmem:[#allocation21_spill] sm:$0xff] %v7712_v28 }
 0x1b7   : > { %v5803_v15 = vpop.f32.mrb[32].mxu1 }
 0x1b8   : > { %v2615_v55 = vmul.f32 %v5803_v15, %v7516_v51  ;;  %v2294_v58 = vpop.f32.mrb[33].mxu1  ;;  %v7727_v15 = vpop.permute.xlu1 %3955 }
 0x1b9   : > { %v2613_v23 = vmul.f32 %v2456_v25, %v2294_v58  ;;  %v5804_v52 = vpop.f32.mrb[34].mxu1  ;;  %v2541_v58 = vpop.permute.xlu0 %2540 }
 0x1ba   : > { %v7715_v19 = vadd.f32 %v7550_v34, %v2615_v55  ;;  %v2616_v1 = vmul.f32 %v5804_v52, %v7527_v8  ;;  %v2297_v30 = vpop.f32.mrb[35].mxu1 }
 0x1bb   : > { %v7719_v5 = vadd.f32 %v7553_v45, %v2613_v23  ;;  %v2614_v59 = vmul.f32 %v2461_v37, %v2297_v30 }
 0x1bc   : > { %8724 = vst [vmem:[#allocation19_spill] sm:$0xff] %v7715_v19  ;;  %v7722_v21 = vadd.f32 %v7557_v9, %v2616_v1 }
 0x1bd   : > { %v7725_v51 = vadd.f32 %v7561_v48, %v2614_v59  ;;  %v2561_v52 = vpop.permute.xlu0 %2560  ;;  %v7743_v59 = vpop.permute.xlu1 %2575 }
 0x1bf   : > { %v5807_v25 = vpop.f32.mrb[36].mxu1 }
 0x1c0   : > { %v2619_v28 = vmul.f32 %v5807_v25, %v2486_v18  ;;  %v2310_v34 = vpop.f32.mrb[37].mxu1 }
 0x1c1   : > { %v2617_v55 = vmul.f32 %v2476_v2, %v2310_v34  ;;  %v5808_v19 = vpop.f32.mrb[38].mxu1  ;;  %v2586_v25 = vpop.permute.xlu1 %2585 }
 0x1c2   : > { %v7730_v8 = vadd.f32 %v7568_v50, %v2619_v28  ;;  %v2620_v45 = vmul.f32 %v5808_v19, %v7547_v20  ;;  %v2313_v30 = vpop.f32.mrb[39].mxu1  ;;  %v7745_v19 = vpop.permute.xlu0 %2580 }
 0x1c3   : > { %v7734_v9 = vadd.f32 %v7571_v40, %v2617_v55  ;;  %v2618_v48 = vmul.f32 %v7535_v60, %v2313_v30 }
 0x1c4   : > { %v7738_v1 = vadd.f32 %v7575_v57, %v2620_v45 }
 0x1c5   : > { %v7741_v23 = vadd.f32 %v7581_v29, %v2618_v48 }
 0x1c6   : > { %v7761_v55 = vpop.permute.xlu0 %2600 }
 0x1c7   : > { %v5811_v37 = vpop.f32.mrb[40].mxu1 }
 0x1c8   : > { %v2623_v50 = vmul.f32 %v5811_v37, %v2506_v17  ;;  %v2326_v28 = vpop.f32.mrb[41].mxu1 }
 0x1c9   : > { %v2621_v2 = vmul.f32 %v2496_v62, %v2326_v28  ;;  %v5812_v20 = vpop.f32.mrb[42].mxu1 }
 0x1ca   : > { %v7748_v40 = vadd.f32 %v7589_v6, %v2623_v50  ;;  %v2624_v60 = vmul.f32 %v5812_v20, %v7578_v39  ;;  %v2329_v18 = vpop.f32.mrb[43].mxu1  ;;  %v7778_v28 = vpop.permute.xlu0 %3867 }
 0x1cb   : > { %v7752_v57 = vadd.f32 %v7594_v11, %v2621_v2  ;;  %v2622_v29 = vmul.f32 %v7564_v38, %v2329_v18  ;;  %v2591_v11 = vpop.permute.xlu1 %2590 }
 0x1cc   : > { %v7756_v34 = vadd.f32 %v7598_v27, %v2624_v60 }
 0x1cd   : > { %v7759_v62 = vadd.f32 %v7602_v3, %v2622_v29 }
 0x1ce   : > { %v3880_v29 = vpop.permute.xlu0 %3879 }
 0x1cf   : > { %v5815_v17 = vpop.f32.mrb[44].mxu1  ;;  %v7780_v2 = vpop.permute.xlu1 %3967 }
 0x1d0   : > { %v2627_v6 = vmul.f32 %v5815_v17, %v7684_v24  ;;  %v2342_v45 = vpop.f32.mrb[45].mxu1 }
 0x1d1   : > { %v2625_v39 = vmul.f32 %v7673_v33, %v2342_v45  ;;  %v5816_v30 = vpop.f32.mrb[46].mxu1 }
 0x1d2   : > { %v7766_v48 = vadd.f32 %v7609_v53, %v2627_v6  ;;  %v2628_v38 = vmul.f32 %v5816_v30, %v7689_v26  ;;  %v2345_v27 = vpop.f32.mrb[47].mxu1  ;;  %v7801_v30 = vpop.permute.xlu0 %3887 }
 0x1d3   : > { %v7770_v37 = vadd.f32 %v7612_v46, %v2625_v39  ;;  %v2626_v3 = vmul.f32 %v2521_v56, %v2345_v27  ;;  %v7797_v6 = vpop.permute.xlu1 %3971 }
 0x1d4   : > { %v7773_v50 = vadd.f32 %v7616_v61, %v2628_v38 }
 0x1d5   : > { %v7776_v24 = vadd.f32 %v7620_v42, %v2626_v3 }
 0x1d7   : > { %v5819_v33 = vpop.f32.mrb[48].mxu1  ;;  %v2596_v27 = vpop.permute.xlu1 %2595 }
 0x1d8   : > { %v2631_v53 = vmul.f32 %v5819_v33, %v7697_v16  ;;  %v2358_v20 = vpop.f32.mrb[49].mxu1  ;;  %v7816_v33 = vpop.permute.xlu0 %3895 }
 0x1d9   : > { %v2629_v26 = vmul.f32 %v7695_v43, %v2358_v20  ;;  %v5820_v60 = vpop.f32.mrb[50].mxu1 }
 0x1da   : > { %v7785_v46 = vadd.f32 %v7627_v0, %v2631_v53  ;;  %v2632_v61 = vmul.f32 %v5820_v60, %v7699_v13  ;;  %v2361_v56 = vpop.f32.mrb[51].mxu1 }
 0x1db   : > { %v7789_v42 = vadd.f32 %v7630_v47, %v2629_v26  ;;  %v2630_v18 = vmul.f32 %v2541_v58, %v2361_v56  ;;  %v2606_v26 = vpop.permute.xlu1 %2605 }
 0x1dc   : > { %v7792_v17 = vadd.f32 %v7634_v54, %v2632_v61  ;;  %v7832_v56 = vpop.permute.xlu0 %3903 }
 0x1dd   : > { %v7795_v16 = vadd.f32 %v7639_v12, %v2630_v18 }
 0x1df   : > { %v5823_v43 = vpop.f32.mrb[52].mxu1  ;;  %v2611_v18 = vpop.permute.xlu1 %2610 }
 0x1e0   : > { %v2635_v0 = vmul.f32 %v5823_v43, %v7707_v14  ;;  %v2374_v45 = vpop.f32.mrb[53].mxu1 }
 0x1e1   : > { %v2633_v13 = vmul.f32 %v7705_v4, %v2374_v45  ;;  %v5824_v39 = vpop.f32.mrb[54].mxu1 }
 0x1e2   : > { %v7804_v47 = vadd.f32 %v7643_v36, %v2635_v0  ;;  %v2636_v54 = vmul.f32 %v5824_v39, %v7709_v49  ;;  %v2377_v58 = vpop.f32.mrb[55].mxu1  ;;  %v8725_v39 = vld [vmem:[#allocation15_spill] sm:$0xff] }
 0x1e3   : > { %v7808_v12 = vadd.f32 %v7648_v44, %v2633_v13  ;;  %v2634_v38 = vmul.f32 %v2561_v52, %v2377_v58  ;;  %v8726_v58 = vld [vmem:[#allocation13_spill] sm:$0xff] }
 0x1e4   : > { %v7811_v3 = vadd.f32 %v7651_v41, %v2636_v54 }
 0x1e5   : > { %v7814_v14 = vadd.f32 %v7654_v31, %v2634_v38 }
 0x1e7   : > { %v5827_v4 = vpop.f32.mrb[56].mxu1 }
 0x1e8   : > { %v2639_v53 = vmul.f32 %v5827_v4, %v2586_v25  ;;  %v2390_v36 = vpop.f32.mrb[57].mxu1  ;;  %v8727_v4 = vld [vmem:[#allocation7_spill] sm:$0xff] }
 0x1e9   : > { %v2637_v20 = vmul.f32 %v7743_v59, %v2390_v36  ;;  %v5828_v49 = vpop.f32.mrb[58].mxu1  ;;  %v7853_v36 = vld [vmem:[%s8606_s3] ss:$0 sm:$0xff] }
 0x1ea   : > { %v7820_v44 = vadd.f32 %v7662_v22, %v2639_v53  ;;  %v2640_v52 = vmul.f32 %v5828_v49, %v2591_v11  ;;  %v2393_v60 = vpop.f32.mrb[59].mxu1 }
 0x1eb   : > { %v7823_v41 = vadd.f32 %v7665_v7, %v2637_v20  ;;  %v2638_v31 = vmul.f32 %v7745_v19, %v2393_v60  ;;  %v8728_v20 = vld [vmem:[#allocation19_spill] sm:$0xff] }
 0x1ec   : > { %v7827_v61 = vadd.f32 %v7668_v63, %v2640_v52 }
 0x1ed   : > { %v7830_v25 = vadd.f32 %v7671_v10, %v2638_v31  ;;  %v7841_v10 = vpop.permute.xlu0 %3911  ;;  %v7862_v31 = vld [vmem:[%s8607_s4] ss:$0 sm:$0xff] }
 0x1ef   : > { %v5831_v59 = vpop.f32.mrb[60].mxu1 }
 0x1f0   : > { %v2643_v43 = vmul.f32 %v5831_v59, %v2606_v26  ;;  %v2406_v22 = vpop.f32.mrb[61].mxu1 }
 0x1f1   : > { %v2641_v0 = vmul.f32 %v2596_v27, %v2406_v22  ;;  %v5832_v11 = vpop.f32.mrb[62].mxu1  ;;  %v7857_v60 = vpop.permute.xlu0 %3915 }
 0x1f2   : > { %v7835_v45 = vadd.f32 %v7676_v35, %v2643_v43  ;;  %v2644_v7 = vmul.f32 %v5832_v11, %v2611_v18  ;;  %v2409_v13 = vpop.f32.mrb[63].mxu1  ;;  %v8729_v18 = vld [vmem:[#allocation9_spill] sm:$0xff] }
 0x1f3   : > { %v7838_v19 = vadd.f32 %v7679_v32, %v2641_v0  ;;  %v2642_v63 = vmul.f32 %v7761_v55, %v2409_v13 }
 0x1f4   : > { %v7844_v54 = vadd.f32 %v8725_v39, %v2644_v7 }
 0x1f5   : > { %v7847_v38 = vadd.f32 %v8726_v58, %v2642_v63 }
 0x1f6   : > { %v5911_v27 = vpop.f32.mrb[32].mxu0 }
 0x1f7   : > { %v3996_v53 = vmul.f32 %v5911_v27, %v8727_v4  ;;  %v3707_v35 = vpop.f32.mrb[33].mxu0  ;;  %v8730_v27 = vld [vmem:[#allocation10_spill] sm:$0xff] }
 0x1f8   : > { %v3994_v32 = vmul.f32 %v7778_v28, %v3707_v35  ;;  %v5912_v55 = vpop.f32.mrb[34].mxu0 }
 0x1f9   : > { %v4028_v49 = vadd.f32 %v3996_v53, %v8728_v20  ;;  %v3997_v26 = vmul.f32 %v5912_v55, %v3880_v29  ;;  %v3710_v52 = vpop.f32.mrb[35].mxu0 }
 0x1fa   : > { %v4026_v59 = vadd.f32 %v3994_v32, %v7719_v5  ;;  %v3995_v43 = vmul.f32 %v8729_v18, %v3710_v52  ;;  %v8731_v32 = vld [vmem:[#allocation12_spill] sm:$0xff] }
 0x1fb   : > { %v4067_v22 = vmul.f32 %v7853_v36, %v4028_v49  ;;  %v4029_v28 = vadd.f32 %v3997_v26, %v7722_v21  ;;  %v7876_v21 = vpop.permute.xlu0 %3927 }
 0x1fc   : > { %v4065_v0 = vmul.f32 %v7853_v36, %v4026_v59  ;;  %v4027_v29 = vadd.f32 %v3995_v43, %v7725_v51 }
 0x1fd   : > { %v4106_v11 = vadd.f32 %v7862_v31, %v4067_v22  ;;  %v4068_v7 = vmul.f32 %v7853_v36, %v4029_v28 }
 0x1fe   : > { %v4104_v13 = vadd.f32 %v7862_v31, %v4065_v0  ;;  %v4066_v63 = vmul.f32 %v7853_v36, %v4027_v29  ;;  %v5915_v5 = vpop.f32.mrb[36].mxu0 }
 0x1ff   : > { %v4138_v39 = vmax.f32 %v4106_v11, 0.0  ;;  %v4107_v58 = vadd.f32 %v7862_v31, %v4068_v7  ;;  %v4000_v4 = vmul.f32 %v5915_v5, %v8730_v27  ;;  %v3723_v53 = vpop.f32.mrb[37].mxu0 }
 0x200   : > { %v4136_v51 = vmax.f32 %v4104_v13, 0.0  ;;  %v4105_v35 = vadd.f32 %v7862_v31, %v4066_v63  ;;  %v3998_v55 = vmul.f32 %v8731_v32, %v3723_v53  ;;  %v5916_v20 = vpop.f32.mrb[38].mxu0 }
 0x201   : > { %v5407_v49 = vpack.c.bf16 %v4138_v39, %v4138_v39  ;;  %v7887_v26 = vmax.f32 %v4107_v58, 0.0  ;;  %v4032_v52 = vadd.f32 %v4000_v4, %v7730_v8  ;;  %v4001_v59 = vmul.f32 %v5916_v20, %v7816_v33  ;;  %v3726_v18 = vpop.f32.mrb[39].mxu0  ;;  %v7914_v58 = vpop.permute.xlu0 %3931 }
 0x202   : > { %v5405_v43 = vpack.c.bf16 %v4136_v51, %v4136_v51  ;;  %v7891_v22 = vmax.f32 %v4105_v35, 0.0  ;;  %v4030_v28 = vadd.f32 %v3998_v55, %v7734_v9  ;;  %v3999_v0 = vmul.f32 %v7801_v30, %v3726_v18  ;;  %v8732_v55 = vld [vmem:[#allocation17_spill] sm:$0xff] }
 0x203   : > { %4298 = vst.msk [vmem:[%s7883_s21 + $0x8] sm:$0xf] %vm399_vm0, %v5407_v49  ;;  %v4169_v29 = vpack.c.bf16 %v7887_v26, %v4138_v39  ;;  %v5408_v11 = vpack.c.bf16 %v7887_v26, %v7887_v26  ;;  %v4071_v8 = vmul.f32 %v7853_v36, %v4032_v52  ;;  %v4033_v33 = vadd.f32 %v4001_v59, %v7738_v1 }
 0x204   : > { %4296 = vst.msk [vmem:[%s7883_s21] sm:$0xf] %vm399_vm0, %v5405_v43  ;;  %v5406_v7 = vpack.c.bf16 %v7891_v22, %v7891_v22  ;;  %v4069_v9 = vmul.f32 %v7853_v36, %v4030_v28  ;;  %v4031_v30 = vadd.f32 %v3999_v0, %v7741_v23  ;;  %v4334_v13 = vsel %vm644_vm1, %v4138_v39, 0.0  ;;  %v8733_v43 = vld [vmem:[#allocation14_spill] sm:$0xff] }
 0x205   : > { %4299 = vst.msk [vmem:[%s7883_s21 + $0xc] sm:$0xf] %vm399_vm0, %v5408_v11  ;;  %v4110_v63 = vadd.f32 %v7862_v31, %v4071_v8  ;;  %v4072_v5 = vmul.f32 %v7853_v36, %v4033_v33  ;;  %4335 = vadd.xlane.f32.xlu0 %v4334_v13  ;;  %v4328_v1 = vsel %vm644_vm1, %v4136_v51, 0.0  ;;  %v4168_v53 = vpack.c.bf16 %v7891_v22, %v4136_v51 }
 0x206   : > { %4297 = vst.msk [vmem:[%s7883_s21 + $0x4] sm:$0xf] %vm399_vm0, %v5406_v7  ;;  %v4108_v27 = vadd.f32 %v7862_v31, %v4069_v9  ;;  %v4070_v4 = vmul.f32 %v7853_v36, %v4031_v30  ;;  %4329 = vadd.xlane.f32.xlu1 %v4328_v1  ;;  %v5919_v23 = vpop.f32.mrb[40].mxu0  ;;  %v4496_v49 = vsel %vm644_vm1, %v4138_v39, -inf  ;;  %v4337_v0 = vsel %vm644_vm1, %v7887_v26, 0.0 }
 0x207   : > { %v7921_v35 = vmax.f32 %v4110_v63, 0.0  ;;  %v4111_v32 = vadd.f32 %v7862_v31, %v4072_v5  ;;  %v4004_v20 = vmul.f32 %v5919_v23, %v8732_v55  ;;  %v3739_v52 = vpop.f32.mrb[41].mxu0  ;;  %5945 = vmatprep.mubr.msk.bf16.mxu1 %vm644_vm1, %v4168_v53  ;;  %v4490_v1 = vsel %vm644_vm1, %v4136_v51, -inf }
 0x208   : > { %v7926_v59 = vmax.f32 %v4108_v27, 0.0  ;;  %v4109_v18 = vadd.f32 %v7862_v31, %v4070_v4  ;;  %v4002_v28 = vmul.f32 %v8733_v43, %v3739_v52  ;;  %v5920_v11 = vpop.f32.mrb[42].mxu0  ;;  %5946 = vmatmul.mubr.msk.bf16.vlgmr.msra.gmra.mrb[64].mxu1 %vm644_vm1, %v4169_v29  ;;  %v7953_v27 = vpop.permute.xlu0 %3943  ;;  %v4499_v53 = vsel %vm644_vm1, %v7887_v26, -inf }
 0x209   : > { %v5411_v8 = vpack.c.bf16 %v7921_v35, %v7921_v35  ;;  %v7935_v33 = vmax.f32 %v4111_v32, 0.0  ;;  %v4036_v39 = vadd.f32 %v4004_v20, %v7748_v40  ;;  %4497 = vmax.xlane.f32.xlu0 %v4496_v49  ;;  %v4005_v7 = vmul.f32 %v5920_v11, %v7841_v10  ;;  %v3742_v9 = vpop.f32.mrb[43].mxu0 }
 0x20a   : > { %v5409_v30 = vpack.c.bf16 %v7926_v59, %v7926_v59  ;;  %v7942_v13 = vmax.f32 %v4109_v18, 0.0  ;;  %v4034_v63 = vadd.f32 %v4002_v28, %v7752_v57  ;;  %4338 = vadd.xlane.f32.xlu1 %v4337_v0  ;;  %v4003_v5 = vmul.f32 %v7832_v56, %v3742_v9  ;;  %v8734_v18 = vld [vmem:[#allocation16_spill] sm:$0xff] }
 0x20b   : > { %4302 = vst.msk [vmem:[%s7883_s21 + $0x18] sm:$0xf] %vm399_vm0, %v5411_v8  ;;  %v5412_v40 = vpack.c.bf16 %v7935_v33, %v7935_v33  ;;  %v4075_v10 = vmul.f32 %v7853_v36, %v4036_v39  ;;  %v4037_v29 = vadd.f32 %v4005_v7, %v7756_v34  ;;  %v4171_v32 = vpack.c.bf16 %v7935_v33, %v7921_v35 }
 0x20c   : > { %4300 = vst.msk [vmem:[%s7883_s21 + $0x10] sm:$0xf] %vm399_vm0, %v5409_v30  ;;  %v5410_v57 = vpack.c.bf16 %v7942_v13, %v7942_v13  ;;  %v4073_v56 = vmul.f32 %v7853_v36, %v4034_v63  ;;  %v4035_v4 = vadd.f32 %v4003_v5, %v7759_v62  ;;  %v4170_v23 = vpack.c.bf16 %v7942_v13, %v7926_v59 }
 0x20d   : > { %4303 = vst.msk [vmem:[%s7883_s21 + $0x1c] sm:$0xf] %vm399_vm0, %v5412_v40  ;;  %v4114_v34 = vadd.f32 %v7862_v31, %v4075_v10  ;;  %v4076_v51 = vmul.f32 %v7853_v36, %v4037_v29  ;;  %4491 = vmax.xlane.f32.xlu0 %v4490_v1  ;;  %v4331_v49 = vsel %vm644_vm1, %v7891_v22, 0.0  ;;  %v4493_v0 = vsel %vm644_vm1, %v7891_v22, -inf }
 0x20e   : > { %4301 = vst.msk [vmem:[%s7883_s21 + $0x14] sm:$0xf] %vm399_vm0, %v5410_v57  ;;  %v4112_v62 = vadd.f32 %v7862_v31, %v4073_v56  ;;  %v4074_v55 = vmul.f32 %v7853_v36, %v4035_v4  ;;  %4500 = vmax.xlane.f32.xlu1 %v4499_v53  ;;  %v5923_v20 = vpop.f32.mrb[44].mxu0  ;;  %5949 = vmatprep.mubr.msk.bf16.mxu1 %vm644_vm1, %v4170_v23  ;;  %v4346_v9 = vsel %vm644_vm1, %v7921_v35, 0.0  ;;  %v8735_v57 = vld [vmem:[#allocation18_spill] sm:$0xff] }
 0x20f   : > { %v7978_v52 = vmax.f32 %v4114_v34, 0.0  ;;  %v4115_v26 = vadd.f32 %v7862_v31, %v4076_v51  ;;  %v4008_v43 = vmul.f32 %v5923_v20, %v8734_v18  ;;  %v3755_v28 = vpop.f32.mrb[45].mxu0 }
 0x210   : > { %v7984_v11 = vmax.f32 %v4112_v62, 0.0  ;;  %v4113_v8 = vadd.f32 %v7862_v31, %v4074_v55  ;;  %v4006_v39 = vmul.f32 %v7857_v60, %v3755_v28  ;;  %v5924_v7 = vpop.f32.mrb[46].mxu0  ;;  %5950 = vmatmul.mubr.msk.bf16.gmra.mrb[68].mxu1 %vm644_vm1, %v4171_v32  ;;  %v7997_v60 = vpop.permute.xlu0 %3947  ;;  %v4349_v62 = vsel %vm644_vm1, %v7935_v33, 0.0 }
 0x211   : > { %v5415_v30 = vpack.c.bf16 %v7978_v52, %v7978_v52  ;;  %v7992_v63 = vmax.f32 %v4115_v26, 0.0  ;;  %v4040_v5 = vadd.f32 %v4008_v43, %v7766_v48  ;;  %4332 = vadd.xlane.f32.xlu0 %v4331_v49  ;;  %v4009_v22 = vmul.f32 %v5924_v7, %v7876_v21  ;;  %v3758_v40 = vpop.f32.mrb[47].mxu0  ;;  %v8736_v43 = vld [vmem:[#allocation23_spill] sm:$0xff] }
 0x212   : > { %v5413_v10 = vpack.c.bf16 %v7984_v11, %v7984_v11  ;;  %v8001_v29 = vmax.f32 %v4113_v8, 0.0  ;;  %v4038_v1 = vadd.f32 %v4006_v39, %v7770_v37  ;;  %4494 = vmax.xlane.f32.xlu1 %v4493_v0  ;;  %v4007_v48 = vmul.f32 %v8735_v57, %v3758_v40 }
 0x213   : > { %4306 = vst.msk [vmem:[%s7883_s21 + $0x28] sm:$0xf] %vm399_vm0, %v5415_v30  ;;  %v5416_v21 = vpack.c.bf16 %v7992_v63, %v7992_v63  ;;  %v4079_v56 = vmul.f32 %v7853_v36, %v4040_v5  ;;  %v4041_v4 = vadd.f32 %v4009_v22, %v7773_v50  ;;  %v4173_v23 = vpack.c.bf16 %v7992_v63, %v7978_v52 }
 0x214   : > { %4304 = vst.msk [vmem:[%s7883_s21 + $0x20] sm:$0xf] %vm399_vm0, %v5413_v10  ;;  %v5414_v37 = vpack.c.bf16 %v8001_v29, %v8001_v29  ;;  %v4077_v34 = vmul.f32 %v7853_v36, %v4038_v1  ;;  %v4039_v51 = vadd.f32 %v4007_v48, %v7776_v24  ;;  %v4172_v53 = vpack.c.bf16 %v8001_v29, %v7984_v11  ;;  %v3960_v39 = vpop.permute.xlu0 %3959 }
 0x215   : > { %4307 = vst.msk [vmem:[%s7883_s21 + $0x2c] sm:$0xf] %vm399_vm0, %v5416_v21  ;;  %v4118_v32 = vadd.f32 %v7862_v31, %v4079_v56  ;;  %v4080_v50 = vmul.f32 %v7853_v36, %v4041_v4  ;;  %4347 = vadd.xlane.f32.xlu0 %v4346_v9  ;;  %v4508_v49 = vsel %vm644_vm1, %v7921_v35, -inf  ;;  %v4511_v8 = vsel %vm644_vm1, %v7935_v33, -inf  ;;  %v8737_v21 = vld [vmem:[#allocation20_spill] sm:$0xff] }
 0x216   : > { %4305 = vst.msk [vmem:[%s7883_s21 + $0x24] sm:$0xf] %vm399_vm0, %v5414_v37  ;;  %v4116_v55 = vadd.f32 %v7862_v31, %v4077_v34  ;;  %v4078_v20 = vmul.f32 %v7853_v36, %v4039_v51  ;;  %4350 = vadd.xlane.f32.xlu1 %v4349_v62  ;;  %v5927_v24 = vpop.f32.mrb[48].mxu0  ;;  %5953 = vmatprep.mubr.msk.bf16.mxu1 %vm644_vm1, %v4172_v53  ;;  %v4340_v5 = vsel %vm644_vm1, %v7926_v59, 0.0 }
 0x217   : > { %v8034_v26 = vmax.f32 %v4118_v32, 0.0  ;;  %v4119_v18 = vadd.f32 %v7862_v31, %v4080_v50  ;;  %v4012_v28 = vmul.f32 %v5927_v24, %v8736_v43  ;;  %v3771_v0 = vpop.f32.mrb[49].mxu0  ;;  %v4343_v32 = vsel %vm644_vm1, %v7942_v13, 0.0 }
 0x218   : > { %v8040_v7 = vmax.f32 %v4116_v55, 0.0  ;;  %v4117_v9 = vadd.f32 %v7862_v31, %v4078_v20  ;;  %v4010_v35 = vmul.f32 %v7914_v58, %v3771_v0  ;;  %v5928_v30 = vpop.f32.mrb[50].mxu0  ;;  %5954 = vmatmul.mubr.msk.bf16.gmra.mrb[72].mxu1 %vm644_vm1, %v4173_v23  ;;  %v3964_v50 = vpop.permute.xlu0 %3963  ;;  %v4502_v20 = vsel %vm644_vm1, %v7926_v59, -inf }
 0x219   : > { %v5419_v22 = vpack.c.bf16 %v8034_v26, %v8034_v26  ;;  %v8048_v40 = vmax.f32 %v4119_v18, 0.0  ;;  %v4044_v33 = vadd.f32 %v4012_v28, %v7785_v46  ;;  %4509 = vmax.xlane.f32.xlu0 %v4508_v49  ;;  %v4013_v10 = vmul.f32 %v5928_v30, %v7953_v27  ;;  %v3774_v1 = vpop.f32.mrb[51].mxu0 }
 0x21a   : > { %v5417_v58 = vpack.c.bf16 %v8040_v7, %v8040_v7  ;;  %v8055_v57 = vmax.f32 %v4117_v9, 0.0  ;;  %v4042_v48 = vadd.f32 %v4010_v35, %v7789_v42  ;;  %4512 = vmax.xlane.f32.xlu1 %v4511_v8  ;;  %v4011_v56 = vmul.f32 %v8737_v21, %v3774_v1  ;;  %v8738_v1 = vld [vmem:[#allocation21_spill] sm:$0xff] }
 0x21b   : > { %4310 = vst.msk [vmem:[%s7883_s21 + $0x38] sm:$0xf] %vm399_vm0, %v5419_v22  ;;  %v5420_v46 = vpack.c.bf16 %v8048_v40, %v8048_v40  ;;  %v4083_v27 = vmul.f32 %v7853_v36, %v4044_v33  ;;  %v4045_v4 = vadd.f32 %v4013_v10, %v7792_v17  ;;  %v4175_v23 = vpack.c.bf16 %v8048_v40, %v8034_v26 }
 0x21c   : > { %4308 = vst.msk [vmem:[%s7883_s21 + $0x30] sm:$0xf] %vm399_vm0, %v5417_v58  ;;  %v5418_v42 = vpack.c.bf16 %v8055_v57, %v8055_v57  ;;  %v4081_v37 = vmul.f32 %v7853_v36, %v4042_v48  ;;  %v4043_v34 = vadd.f32 %v4011_v56, %v7795_v16  ;;  %v4174_v51 = vpack.c.bf16 %v8055_v57, %v8040_v7  ;;  %v3976_v56 = vpop.permute.xlu0 %3975 }
 0x21d   : > { %4311 = vst.msk [vmem:[%s7883_s21 + $0x3c] sm:$0xf] %vm399_vm0, %v5420_v46  ;;  %v4122_v53 = vadd.f32 %v7862_v31, %v4083_v27  ;;  %v4084_v17 = vmul.f32 %v7853_v36, %v4045_v4  ;;  %4341 = vadd.xlane.f32.xlu0 %v4340_v5  ;;  %v4505_v28 = vsel %vm644_vm1, %v7942_v13, -inf  ;;  %v4358_v35 = vsel %vm644_vm1, %v7978_v52, 0.0 }
 0x21e   : > { %4309 = vst.msk [vmem:[%s7883_s21 + $0x34] sm:$0xf] %vm399_vm0, %v5418_v42  ;;  %v4120_v62 = vadd.f32 %v7862_v31, %v4081_v37  ;;  %v4082_v16 = vmul.f32 %v7853_v36, %v4043_v34  ;;  %4344 = vadd.xlane.f32.xlu1 %v4343_v32  ;;  %v5931_v55 = vpop.f32.mrb[52].mxu0  ;;  %5957 = vmatprep.mubr.msk.bf16.mxu1 %vm644_vm1, %v4174_v51  ;;  %v4361_v42 = vsel %vm644_vm1, %v7992_v63, 0.0  ;;  %v4520_v51 = vsel %vm644_vm1, %v7978_v52, -inf }
 0x21f   : > { %v8088_v24 = vmax.f32 %v4122_v53, 0.0  ;;  %v4123_v49 = vadd.f32 %v7862_v31, %v4084_v17  ;;  %v4016_v18 = vmul.f32 %v5931_v55, %v7727_v15  ;;  %v3787_v43 = vpop.f32.mrb[53].mxu0  ;;  %v8141_v53 = vpop.permute.xlu1 %3983  ;;  %v4523_v55 = vsel %vm644_vm1, %v7992_v63, -inf }
 0x220   : > { %v8094_v0 = vmax.f32 %v4120_v62, 0.0  ;;  %v4121_v8 = vadd.f32 %v7862_v31, %v4082_v16  ;;  %v4014_v9 = vmul.f32 %v7997_v60, %v3787_v43  ;;  %v5932_v59 = vpop.f32.mrb[54].mxu0  ;;  %5958 = vmatmul.mubr.msk.bf16.gmra.mrb[76].mxu1 %vm644_vm1, %v4175_v23  ;;  %v4352_v43 = vsel %vm644_vm1, %v7984_v11, 0.0 }
 0x221   : > { %v5423_v30 = vpack.c.bf16 %v8088_v24, %v8088_v24  ;;  %v8102_v5 = vmax.f32 %v4123_v49, 0.0  ;;  %v4048_v15 = vadd.f32 %v4016_v18, %v7804_v47  ;;  %4503 = vmax.xlane.f32.xlu0 %v4502_v20  ;;  %v4017_v13 = vmul.f32 %v5932_v59, %v3960_v39  ;;  %v3790_v22 = vpop.f32.mrb[55].mxu0  ;;  %v3980_v59 = vpop.permute.xlu0 %3979 }
 0x222   : > { %v5421_v60 = vpack.c.bf16 %v8094_v0, %v8094_v0  ;;  %v8108_v33 = vmax.f32 %v4121_v8, 0.0  ;;  %v4046_v10 = vadd.f32 %v4014_v9, %v7808_v12  ;;  %4506 = vmax.xlane.f32.xlu1 %v4505_v28  ;;  %v4015_v58 = vmul.f32 %v8738_v1, %v3790_v22 }
 0x223   : > { %4314 = vst.msk [vmem:[%s7883_s21 + $0x48] sm:$0xf] %vm399_vm0, %v5423_v30  ;;  %v5424_v47 = vpack.c.bf16 %v8102_v5, %v8102_v5  ;;  %v4087_v39 = vmul.f32 %v7853_v36, %v4048_v15  ;;  %v4049_v48 = vadd.f32 %v4017_v13, %v7811_v3  ;;  %v4177_v21 = vpack.c.bf16 %v8102_v5, %v8088_v24  ;;  %v3988_v1 = vpop.permute.xlu1 %3987 }
 0x224   : > { %4312 = vst.msk [vmem:[%s7883_s21 + $0x40] sm:$0xf] %vm399_vm0, %v5421_v60  ;;  %v5422_v12 = vpack.c.bf16 %v8108_v33, %v8108_v33  ;;  %v4085_v46 = vmul.f32 %v7853_v36, %v4046_v10  ;;  %v4047_v27 = vadd.f32 %v4015_v58, %v7814_v14  ;;  %v4176_v4 = vpack.c.bf16 %v8108_v33, %v8094_v0 }
 0x225   : > { %4315 = vst.msk [vmem:[%s7883_s21 + $0x4c] sm:$0xf] %vm399_vm0, %v5424_v47  ;;  %v4126_v3 = vadd.f32 %v7862_v31, %v4087_v39  ;;  %v4088_v23 = vmul.f32 %v7853_v36, %v4049_v48  ;;  %4359 = vadd.xlane.f32.xlu0 %v4358_v35  ;;  %v4355_v39 = vsel %vm644_vm1, %v8001_v29, 0.0 }
 0x226   : > { %4313 = vst.msk [vmem:[%s7883_s21 + $0x44] sm:$0xf] %vm399_vm0, %v5422_v12  ;;  %v4124_v37 = vadd.f32 %v7862_v31, %v4085_v46  ;;  %v4086_v34 = vmul.f32 %v7853_v36, %v4047_v27  ;;  %4362 = vadd.xlane.f32.xlu1 %v4361_v42  ;;  %v5935_v14 = vpop.f32.mrb[56].mxu0  ;;  %5961 = vmatprep.mubr.msk.bf16.mxu1 %vm644_vm1, %v4176_v4 }
 0x227   : > { %v8143_v17 = vmax.f32 %v4126_v3, 0.0  ;;  %v4127_v32 = vadd.f32 %v7862_v31, %v4088_v23  ;;  %v4020_v62 = vmul.f32 %v5935_v14, %v7797_v6  ;;  %v3803_v16 = vpop.f32.mrb[57].mxu0  ;;  %v4517_v3 = vsel %vm644_vm1, %v8001_v29, -inf  ;;  %v3992_v23 = vpop.permute.xlu0 %3991 }
 0x228   : > { %v8149_v20 = vmax.f32 %v4124_v37, 0.0  ;;  %v4125_v49 = vadd.f32 %v7862_v31, %v4086_v34  ;;  %v4018_v18 = vmul.f32 %v3964_v50, %v3803_v16  ;;  %v5936_v52 = vpop.f32.mrb[58].mxu0  ;;  %5962 = vmatmul.mubr.msk.bf16.gmra.mrb[80].mxu1 %vm644_vm1, %v4177_v21 }
 0x229   : > { %v5427_v28 = vpack.c.bf16 %v8143_v17, %v8143_v17  ;;  %v8156_v8 = vmax.f32 %v4127_v32, 0.0  ;;  %v4052_v6 = vadd.f32 %v4020_v62, %v7820_v44  ;;  %4521 = vmax.xlane.f32.xlu0 %v4520_v51  ;;  %v4021_v63 = vmul.f32 %v5936_v52, %v3976_v56  ;;  %v3806_v9 = vpop.f32.mrb[59].mxu0 }
 0x22a   : > { %v5425_v50 = vpack.c.bf16 %v8149_v20, %v8149_v20  ;;  %v8162_v35 = vmax.f32 %v4125_v49, 0.0  ;;  %v4050_v30 = vadd.f32 %v4018_v18, %v7823_v41  ;;  %4524 = vmax.xlane.f32.xlu1 %v4523_v55  ;;  %v4019_v15 = vmul.f32 %v7780_v2, %v3806_v9 }
 0x22b   : > { %4318 = vst.msk [vmem:[%s7883_s21 + $0x58] sm:$0xf] %vm399_vm0, %v5427_v28  ;;  %v5428_v44 = vpack.c.bf16 %v8156_v8, %v8156_v8  ;;  %v4091_v13 = vmul.f32 %v7853_v36, %v4052_v6  ;;  %v4053_v22 = vadd.f32 %v4021_v63, %v7827_v61  ;;  %v4179_v60 = vpack.c.bf16 %v8156_v8, %v8143_v17 }
 0x22c   : > { %4316 = vst.msk [vmem:[%s7883_s21 + $0x50] sm:$0xf] %vm399_vm0, %v5425_v50  ;;  %v5426_v41 = vpack.c.bf16 %v8162_v35, %v8162_v35  ;;  %v4089_v2 = vmul.f32 %v7853_v36, %v4050_v30  ;;  %v4051_v10 = vadd.f32 %v4019_v15, %v7830_v25  ;;  %v4178_v58 = vpack.c.bf16 %v8162_v35, %v8149_v20 }
 0x22d   : > { %4319 = vst.msk [vmem:[%s7883_s21 + $0x5c] sm:$0xf] %vm399_vm0, %v5428_v44  ;;  %v4130_v61 = vadd.f32 %v7862_v31, %v4091_v13  ;;  %v4092_v47 = vmul.f32 %v7853_v36, %v4053_v22  ;;  %4353 = vadd.xlane.f32.xlu0 %v4352_v43  ;;  %v4514_v56 = vsel %vm644_vm1, %v7984_v11, -inf  ;;  %v4370_v11 = vsel %vm644_vm1, %v8034_v26, 0.0 }
 0x22e   : > { %4317 = vst.msk [vmem:[%s7883_s21 + $0x54] sm:$0xf] %vm399_vm0, %v5426_v41  ;;  %v4128_v48 = vadd.f32 %v7862_v31, %v4089_v2  ;;  %v4090_v25 = vmul.f32 %v7853_v36, %v4051_v10  ;;  %4356 = vadd.xlane.f32.xlu1 %v4355_v39  ;;  %v5939_v21 = vpop.f32.mrb[60].mxu0  ;;  %5965 = vmatprep.mubr.msk.bf16.mxu1 %vm644_vm1, %v4178_v58  ;;  %v4373_v50 = vsel %vm644_vm1, %v8048_v40, 0.0  ;;  %v4535_v2 = vsel %vm644_vm1, %v8048_v40, -inf }
 0x22f   : > { %v8195_v12 = vmax.f32 %v4130_v61, 0.0  ;;  %v4131_v46 = vadd.f32 %v7862_v31, %v4092_v47  ;;  %v4024_v27 = vmul.f32 %v5939_v21, %v3988_v1  ;;  %v3819_v4 = vpop.f32.mrb[61].mxu0  ;;  %v4364_v58 = vsel %vm644_vm1, %v8040_v7, 0.0 }
 0x230   : > { %v8200_v42 = vmax.f32 %v4128_v48, 0.0  ;;  %v4129_v37 = vadd.f32 %v7862_v31, %v4090_v25  ;;  %v4022_v34 = vmul.f32 %v3980_v59, %v3819_v4  ;;  %v5940_v14 = vpop.f32.mrb[62].mxu0  ;;  %5966 = vmatmul.mubr.msk.bf16.gmra.mrb[84].mxu1 %vm644_vm1, %v4179_v60  ;;  %v4532_v60 = vsel %vm644_vm1, %v8034_v26, -inf }
 0x231   : > { %v5431_v51 = vpack.c.bf16 %v8195_v12, %v8195_v12  ;;  %v8207_v32 = vmax.f32 %v4131_v46, 0.0  ;;  %v4056_v62 = vadd.f32 %v4024_v27, %v7835_v45  ;;  %4515 = vmax.xlane.f32.xlu0 %v4514_v56  ;;  %v4025_v29 = vmul.f32 %v5940_v14, %v3992_v23  ;;  %v3822_v16 = vpop.f32.mrb[63].mxu0 }
 0x232   : > { %v5429_v55 = vpack.c.bf16 %v8200_v42, %v8200_v42  ;;  %v8213_v49 = vmax.f32 %v4129_v37, 0.0  ;;  %v4054_v18 = vadd.f32 %v4022_v34, %v7838_v19  ;;  %4518 = vmax.xlane.f32.xlu1 %v4517_v3  ;;  %v4023_v52 = vmul.f32 %v8141_v53, %v3822_v16 }
 0x233   : > { %4322 = vst.msk [vmem:[%s7883_s21 + $0x68] sm:$0xf] %vm399_vm0, %v5431_v51  ;;  %v5432_v45 = vpack.c.bf16 %v8207_v32, %v8207_v32  ;;  %v4095_v43 = vmul.f32 %v7853_v36, %v4056_v62  ;;  %v4057_v28 = vadd.f32 %v4025_v29, %v7844_v54  ;;  %v4181_v6 = vpack.c.bf16 %v8207_v32, %v8195_v12 }
 0x234   : > { %4320 = vst.msk [vmem:[%s7883_s21 + $0x60] sm:$0xf] %vm399_vm0, %v5429_v55  ;;  %v5430_v19 = vpack.c.bf16 %v8213_v49, %v8213_v49  ;;  %v4093_v53 = vmul.f32 %v7853_v36, %v4054_v18  ;;  %v4055_v63 = vadd.f32 %v4023_v52, %v7847_v38  ;;  %v4180_v9 = vpack.c.bf16 %v8213_v49, %v8200_v42 }
 0x235   : > { %4323 = vst.msk [vmem:[%s7883_s21 + $0x6c] sm:$0xf] %vm399_vm0, %v5432_v45  ;;  %v4134_v59 = vadd.f32 %v7862_v31, %v4095_v43  ;;  %v4096_v54 = vmul.f32 %v7853_v36, %v4057_v28  ;;  %4371 = vadd.xlane.f32.xlu0 %v4370_v11  ;;  %v4367_v47 = vsel %vm644_vm1, %v8055_v57, 0.0  ;;  %v4526_v39 = vsel %vm644_vm1, %v8040_v7, -inf }
 0x236   : > { %4321 = vst.msk [vmem:[%s7883_s21 + $0x64] sm:$0xf] %vm399_vm0, %v5430_v19  ;;  %v4132_v30 = vadd.f32 %v7862_v31, %v4093_v53  ;;  %v4094_v15 = vmul.f32 %v7853_v36, %v4055_v63  ;;  %4374 = vadd.xlane.f32.xlu1 %v4373_v50  ;;  %5969 = vmatprep.mubr.msk.bf16.mxu1 %vm644_vm1, %v4180_v9  ;;  %v4529_v48 = vsel %vm644_vm1, %v8055_v57, -inf  ;;  %v4382_v25 = vsel %vm644_vm1, %v8088_v24, 0.0 }
 0x237   : > { %v8244_v38 = vmax.f32 %v4134_v59, 0.0  ;;  %v4135_v44 = vadd.f32 %v7862_v31, %v4096_v54  ;;  %v4385_v21 = vsel %vm644_vm1, %v8102_v5, 0.0  ;;  %v4544_v56 = vsel %vm644_vm1, %v8088_v24, -inf }
 0x238   : > { %v8247_v13 = vmax.f32 %v4132_v30, 0.0  ;;  %v4133_v22 = vadd.f32 %v7862_v31, %v4094_v15  ;;  %5970 = vmatmul.mubr.msk.bf16.gmra.mrb[88].mxu1 %vm644_vm1, %v4181_v6  ;;  %v4547_v7 = vsel %vm644_vm1, %v8102_v5, -inf  ;;  %v4376_v57 = vsel %vm644_vm1, %v8094_v0, 0.0 }
 0x239   : > { %v5435_v36 = vpack.c.bf16 %v8244_v38, %v8244_v38  ;;  %v8254_v41 = vmax.f32 %v4135_v44, 0.0  ;;  %4533 = vmax.xlane.f32.xlu0 %v4532_v60  ;;  %v4379_v46 = vsel %vm644_vm1, %v8108_v33, 0.0  ;;  %v4538_v27 = vsel %vm644_vm1, %v8094_v0, -inf }
 0x23a   : > { %v5433_v10 = vpack.c.bf16 %v8247_v13, %v8247_v13  ;;  %v8261_v31 = vmax.f32 %v4133_v22, 0.0  ;;  %4536 = vmax.xlane.f32.xlu1 %v4535_v2  ;;  %v4541_v24 = vsel %vm644_vm1, %v8108_v33, -inf  ;;  %v4394_v5 = vsel %vm644_vm1, %v8143_v17, 0.0 }
 0x23b   : > { %4326 = vst.msk [vmem:[%s7883_s21 + $0x78] sm:$0xf] %vm399_vm0, %v5435_v36  ;;  %v5436_v26 = vpack.c.bf16 %v8254_v41, %v8254_v41  ;;  %v4183_v1 = vpack.c.bf16 %v8254_v41, %v8244_v38  ;;  %v4397_v4 = vsel %vm644_vm1, %v8156_v8, 0.0  ;;  %v4556_v3 = vsel %vm644_vm1, %v8143_v17, -inf }
 0x23c   : > { %4324 = vst.msk [vmem:[%s7883_s21 + $0x70] sm:$0xf] %vm399_vm0, %v5433_v10  ;;  %v5434_v40 = vpack.c.bf16 %v8261_v31, %v8261_v31  ;;  %v4182_v61 = vpack.c.bf16 %v8261_v31, %v8247_v13  ;;  %v4559_v0 = vsel %vm644_vm1, %v8156_v8, -inf  ;;  %v4388_v33 = vsel %vm644_vm1, %v8149_v20, 0.0 }
 0x23d   : > { %4327 = vst.msk [vmem:[%s7883_s21 + $0x7c] sm:$0xf] %vm399_vm0, %v5436_v26  ;;  %4365 = vadd.xlane.f32.xlu0 %v4364_v58  ;;  %v4391_v23 = vsel %vm644_vm1, %v8162_v35, 0.0  ;;  %v4550_v37 = vsel %vm644_vm1, %v8149_v20, -inf  ;;  %v4553_v17 = vsel %vm644_vm1, %v8162_v35, -inf  ;;  %v4406_v8 = vsel %vm644_vm1, %v8195_v12, 0.0 }
 0x23e   : > { %4325 = vst.msk [vmem:[%s7883_s21 + $0x74] sm:$0xf] %vm399_vm0, %v5434_v40  ;;  %4368 = vadd.xlane.f32.xlu1 %v4367_v47  ;;  %5973 = vmatprep.mubr.msk.bf16.mxu1 %vm644_vm1, %v4182_v61  ;;  %v4409_v34 = vsel %vm644_vm1, %v8207_v32, 0.0  ;;  %v4568_v14 = vsel %vm644_vm1, %v8195_v12, -inf  ;;  %v4571_v20 = vsel %vm644_vm1, %v8207_v32, -inf  ;;  %v4400_v35 = vsel %vm644_vm1, %v8200_v42, 0.0 }
 0x23f   : > { %v4403_v11 = vsel %vm644_vm1, %v8213_v49, 0.0  ;;  %v4562_v51 = vsel %vm644_vm1, %v8200_v42, -inf  ;;  %v4565_v12 = vsel %vm644_vm1, %v8213_v49, -inf  ;;  %v4418_v32 = vsel %vm644_vm1, %v8244_v38, 0.0 }
 0x240   : > { %5974 = vmatmul.mubr.msk.bf16.gmra.mrb[92].mxu1 %vm644_vm1, %v4183_v1  ;;  %v4421_v62 = vsel %vm644_vm1, %v8254_v41, 0.0  ;;  %v4412_v29 = vsel %vm644_vm1, %v8247_v13, 0.0  ;;  %v4415_v42 = vsel %vm644_vm1, %v8261_v31, 0.0  ;;  %v4574_v16 = vsel %vm644_vm1, %v8247_v13, -inf }
 0x241   : > { %4527 = vmax.xlane.f32.xlu0 %v4526_v39  ;;  %v4577_v55 = vsel %vm644_vm1, %v8261_v31, -inf  ;;  %v4580_v49 = vsel %vm644_vm1, %v8244_v38, -inf  ;;  %v4583_v18 = vsel %vm644_vm1, %v8254_v41, -inf }
 0x242   : > { %4530 = vmax.xlane.f32.xlu1 %v4529_v48 }
 0x245   : > { %4383 = vadd.xlane.f32.xlu0 %v4382_v25 }
 0x246   : > { %4386 = vadd.xlane.f32.xlu1 %v4385_v21 }
 0x249   : > { %4545 = vmax.xlane.f32.xlu0 %v4544_v56 }
 0x24a   : > { %4548 = vmax.xlane.f32.xlu1 %v4547_v7 }
 0x24d   : > { %4377 = vadd.xlane.f32.xlu0 %v4376_v57 }
 0x24e   : > { %4380 = vadd.xlane.f32.xlu1 %v4379_v46 }
 0x251   : > { %4539 = vmax.xlane.f32.xlu0 %v4538_v27 }
 0x252   : > { %4542 = vmax.xlane.f32.xlu1 %v4541_v24 }
 0x255   : > { %4395 = vadd.xlane.f32.xlu0 %v4394_v5 }
 0x256   : > { %4398 = vadd.xlane.f32.xlu1 %v4397_v4 }
 0x259   : > { %4557 = vmax.xlane.f32.xlu0 %v4556_v3 }
 0x25a   : > { %4560 = vmax.xlane.f32.xlu1 %v4559_v0 }
 0x25d   : > { %4389 = vadd.xlane.f32.xlu0 %v4388_v33 }
 0x25e   : > { %4392 = vadd.xlane.f32.xlu1 %v4391_v23 }
 0x261   : > { %4551 = vmax.xlane.f32.xlu0 %v4550_v37 }
 0x262   : > { %4554 = vmax.xlane.f32.xlu1 %v4553_v17 }
 0x265   : > { %4407 = vadd.xlane.f32.xlu0 %v4406_v8 }
 0x266   : > { %4410 = vadd.xlane.f32.xlu1 %v4409_v34 }
 0x269   : > { %4569 = vmax.xlane.f32.xlu0 %v4568_v14 }
 0x26a   : > { %4572 = vmax.xlane.f32.xlu1 %v4571_v20 }
 0x26d   : > { %4401 = vadd.xlane.f32.xlu0 %v4400_v35 }
 0x26e   : > { %4404 = vadd.xlane.f32.xlu1 %v4403_v11 }
 0x271   : > { %4563 = vmax.xlane.f32.xlu0 %v4562_v51 }
 0x272   : > { %4566 = vmax.xlane.f32.xlu1 %v4565_v12  ;;  %v8440_v12 = vstv %s4622_s28 }
 0x275   : > { %4419 = vadd.xlane.f32.xlu0 %v4418_v32 }
 0x276   : > { %4422 = vadd.xlane.f32.xlu1 %v4421_v62 }
 0x279   : > { %4413 = vadd.xlane.f32.xlu0 %v4412_v29 }
 0x27a   : > { %4416 = vadd.xlane.f32.xlu1 %v4415_v42 }
 0x27d   : > { %4575 = vmax.xlane.f32.xlu0 %v4574_v16 }
 0x27e   : > { %4578 = vmax.xlane.f32.xlu1 %v4577_v55 }
 0x281   : > { %4581 = vmax.xlane.f32.xlu0 %v4580_v49 }
 0x282   : > { %4584 = vmax.xlane.f32.xlu1 %v4583_v18 }
 0x292   : > { %v4336_v52 = vpop.xlane.xlu0 %4335 }
 0x293   : > { %v4427_v45 = vmul.f32 0.03125, %v4336_v52  ;;  %v4330_v43 = vpop.xlane.xlu1 %4329 }
 0x294   : > { %v4425_v28 = vmul.f32 0.03125, %v4330_v43 }
 0x295   : > { %4460 = vst.msk [vmem:[%s8360_s25 + $0x10] sm:$0xff] %vm4457_vm7, %v4427_v45 }
 0x296   : > { %4458 = vst.msk [vmem:[%s8360_s25] sm:$0xff] %vm4457_vm7, %v4425_v28  ;;  %v4498_v6 = vpop.xlane.xlu0 %4497 }
 0x297   : > { %4588 = vst.msk [vmem:[%s8366_s16 + $0x10] sm:$0xff] %vm4457_vm7, %v4498_v6  ;;  %v4339_v19 = vpop.xlane.xlu1 %4338 }
 0x298   : > { %v4428_v53 = vmul.f32 0.03125, %v4339_v19 }
 0x29a   : > { %4461 = vst.msk [vmem:[%s8360_s25 + $0x18] sm:$0xff] %vm4457_vm7, %v4428_v53  ;;  %v4492_v63 = vpop.xlane.xlu0 %4491 }
 0x29b   : > { %4586 = vst.msk [vmem:[%s8366_s16] sm:$0xff] %vm4457_vm7, %v4492_v63  ;;  %v4501_v9 = vpop.xlane.xlu1 %4500 }
 0x29c   : > { %4589 = vst.msk [vmem:[%s8366_s16 + $0x18] sm:$0xff] %vm4457_vm7, %v4501_v9 }
 0x29e   : > { %v4333_v59 = vpop.xlane.xlu0 %4332 }
 0x29f   : > { %v4426_v54 = vmul.f32 0.03125, %v4333_v59  ;;  %v4495_v50 = vpop.xlane.xlu1 %4494 }
 0x2a0   : > { %4587 = vst.msk [vmem:[%s8366_s16 + $0x8] sm:$0xff] %vm4457_vm7, %v4495_v50 }
 0x2a1   : > { %4459 = vst.msk [vmem:[%s8360_s25 + $0x8] sm:$0xff] %vm4457_vm7, %v4426_v54 }
 0x2a2   : > { %v4348_v30 = vpop.xlane.xlu0 %4347 }
 0x2a3   : > { %v4431_v15 = vmul.f32 0.03125, %v4348_v30  ;;  %v4351_v38 = vpop.xlane.xlu1 %4350 }
 0x2a4   : > { %v4432_v44 = vmul.f32 0.03125, %v4351_v38 }
 0x2a5   : > { %4464 = vst.msk [vmem:[%s8360_s25 + $0x30] sm:$0xff] %vm4457_vm7, %v4431_v15 }
 0x2a6   : > { %4465 = vst.msk [vmem:[%s8360_s25 + $0x38] sm:$0xff] %vm4457_vm7, %v4432_v44  ;;  %v4510_v13 = vpop.xlane.xlu0 %4509 }
 0x2a7   : > { %4592 = vst.msk [vmem:[%s8366_s16 + $0x30] sm:$0xff] %vm4457_vm7, %v4510_v13  ;;  %v4513_v22 = vpop.xlane.xlu1 %4512 }
 0x2a8   : > { %4593 = vst.msk [vmem:[%s8366_s16 + $0x38] sm:$0xff] %vm4457_vm7, %v4513_v22 }
 0x2aa   : > { %v4342_v60 = vpop.xlane.xlu0 %4341 }
 0x2ab   : > { %v4429_v36 = vmul.f32 0.03125, %v4342_v60  ;;  %v4345_v41 = vpop.xlane.xlu1 %4344 }
 0x2ac   : > { %v4430_v2 = vmul.f32 0.03125, %v4345_v41 }
 0x2ad   : > { %4462 = vst.msk [vmem:[%s8360_s25 + $0x20] sm:$0xff] %vm4457_vm7, %v4429_v36 }
 0x2ae   : > { %4463 = vst.msk [vmem:[%s8360_s25 + $0x28] sm:$0xff] %vm4457_vm7, %v4430_v2  ;;  %v4504_v10 = vpop.xlane.xlu0 %4503 }
 0x2af   : > { %4590 = vst.msk [vmem:[%s8366_s16 + $0x20] sm:$0xff] %vm4457_vm7, %v4504_v10  ;;  %v4507_v31 = vpop.xlane.xlu1 %4506 }
 0x2b0   : > { %4591 = vst.msk [vmem:[%s8366_s16 + $0x28] sm:$0xff] %vm4457_vm7, %v4507_v31 }
 0x2b2   : > { %v4360_v26 = vpop.xlane.xlu0 %4359 }
 0x2b3   : > { %v4435_v1 = vmul.f32 0.03125, %v4360_v26  ;;  %v4363_v40 = vpop.xlane.xlu1 %4362 }
 0x2b4   : > { %v4436_v58 = vmul.f32 0.03125, %v4363_v40 }
 0x2b5   : > { %4468 = vst.msk [vmem:[%s8360_s25 + $0x50] sm:$0xff] %vm4457_vm7, %v4435_v1 }
 0x2b6   : > { %4469 = vst.msk [vmem:[%s8360_s25 + $0x58] sm:$0xff] %vm4457_vm7, %v4436_v58  ;;  %v4522_v61 = vpop.xlane.xlu0 %4521 }
 0x2b7   : > { %4596 = vst.msk [vmem:[%s8366_s16 + $0x50] sm:$0xff] %vm4457_vm7, %v4522_v61  ;;  %v4525_v47 = vpop.xlane.xlu1 %4524 }
 0x2b8   : > { %4597 = vst.msk [vmem:[%s8366_s16 + $0x58] sm:$0xff] %vm4457_vm7, %v4525_v47 }
 0x2ba   : > { %v4354_v39 = vpop.xlane.xlu0 %4353 }
 0x2bb   : > { %v4433_v48 = vmul.f32 0.03125, %v4354_v39  ;;  %v4357_v25 = vpop.xlane.xlu1 %4356 }
 0x2bc   : > { %v4434_v21 = vmul.f32 0.03125, %v4357_v25 }
 0x2bd   : > { %4466 = vst.msk [vmem:[%s8360_s25 + $0x40] sm:$0xff] %vm4457_vm7, %v4433_v48 }
 0x2be   : > { %4467 = vst.msk [vmem:[%s8360_s25 + $0x48] sm:$0xff] %vm4457_vm7, %v4434_v21  ;;  %v4516_v56 = vpop.xlane.xlu0 %4515 }
 0x2bf   : > { %4594 = vst.msk [vmem:[%s8366_s16 + $0x40] sm:$0xff] %vm4457_vm7, %v4516_v56  ;;  %v4519_v7 = vpop.xlane.xlu1 %4518 }
 0x2c0   : > { %4595 = vst.msk [vmem:[%s8366_s16 + $0x48] sm:$0xff] %vm4457_vm7, %v4519_v7 }
 0x2c2   : > { %v4372_v57 = vpop.xlane.xlu0 %4371 }
 0x2c3   : > { %v4439_v46 = vmul.f32 0.03125, %v4372_v57  ;;  %v4375_v27 = vpop.xlane.xlu1 %4374 }
 0x2c4   : > { %v4440_v24 = vmul.f32 0.03125, %v4375_v27 }
 0x2c5   : > { %4472 = vst.msk [vmem:[%s8360_s25 + $0x70] sm:$0xff] %vm4457_vm7, %v4439_v46 }
 0x2c6   : > { %4473 = vst.msk [vmem:[%s8360_s25 + $0x78] sm:$0xff] %vm4457_vm7, %v4440_v24  ;;  %v4534_v5 = vpop.xlane.xlu0 %4533 }
 0x2c7   : > { %4600 = vst.msk [vmem:[%s8366_s16 + $0x70] sm:$0xff] %vm4457_vm7, %v4534_v5  ;;  %v4537_v4 = vpop.xlane.xlu1 %4536 }
 0x2c8   : > { %4601 = vst.msk [vmem:[%s8366_s16 + $0x78] sm:$0xff] %vm4457_vm7, %v4537_v4 }
 0x2ca   : > { %v4366_v3 = vpop.xlane.xlu0 %4365 }
 0x2cb   : > { %v4437_v0 = vmul.f32 0.03125, %v4366_v3  ;;  %v4369_v33 = vpop.xlane.xlu1 %4368 }
 0x2cc   : > { %v4438_v23 = vmul.f32 0.03125, %v4369_v33 }
 0x2cd   : > { %4470 = vst.msk [vmem:[%s8360_s25 + $0x60] sm:$0xff] %vm4457_vm7, %v4437_v0 }
 0x2ce   : > { %4471 = vst.msk [vmem:[%s8360_s25 + $0x68] sm:$0xff] %vm4457_vm7, %v4438_v23  ;;  %v4528_v37 = vpop.xlane.xlu0 %4527 }
 0x2cf   : > { %4598 = vst.msk [vmem:[%s8366_s16 + $0x60] sm:$0xff] %vm4457_vm7, %v4528_v37  ;;  %v4531_v17 = vpop.xlane.xlu1 %4530 }
 0x2d0   : > { %4599 = vst.msk [vmem:[%s8366_s16 + $0x68] sm:$0xff] %vm4457_vm7, %v4531_v17 }
 0x2d2   : > { %v4384_v8 = vpop.xlane.xlu0 %4383 }
 0x2d3   : > { %v4443_v34 = vmul.f32 0.03125, %v4384_v8  ;;  %v4387_v14 = vpop.xlane.xlu1 %4386 }
 0x2d4   : > { %v4444_v20 = vmul.f32 0.03125, %v4387_v14 }
 0x2d5   : > { %4476 = vst.msk [vmem:[%s8360_s25 + $0x90] sm:$0xff] %vm4457_vm7, %v4443_v34 }
 0x2d6   : > { %4477 = vst.msk [vmem:[%s8360_s25 + $0x98] sm:$0xff] %vm4457_vm7, %v4444_v20  ;;  %v4546_v35 = vpop.xlane.xlu0 %4545 }
 0x2d7   : > { %4604 = vst.msk [vmem:[%s8366_s16 + $0x90] sm:$0xff] %vm4457_vm7, %v4546_v35  ;;  %v4549_v11 = vpop.xlane.xlu1 %4548 }
 0x2d8   : > { %4605 = vst.msk [vmem:[%s8366_s16 + $0x98] sm:$0xff] %vm4457_vm7, %v4549_v11 }
 0x2da   : > { %v4378_v51 = vpop.xlane.xlu0 %4377 }
 0x2db   : > { %v4441_v32 = vmul.f32 0.03125, %v4378_v51  ;;  %v4381_v62 = vpop.xlane.xlu1 %4380  ;;  %v5947_v42 = vpop.f32.mrb[64].mxu1 }
 0x2dc   : > { %v4442_v29 = vmul.f32 0.03125, %v4381_v62  ;;  %v4727_v16 = vadd.f32 %v5947_v42, %v8440_v12  ;;  %v4718_v55 = vpop.f32.mrb[65].mxu1 }
 0x2dd   : > { %4474 = vst.msk [vmem:[%s8360_s25 + $0x80] sm:$0xff] %vm4457_vm7, %v4441_v32  ;;  %v4719_v18 = vadd.f32 %v4718_v55, %v8440_v12  ;;  %v5948_v52 = vpop.f32.mrb[66].mxu1 }
 0x2de   : > { %4475 = vst.msk [vmem:[%s8360_s25 + $0x88] sm:$0xff] %vm4457_vm7, %v4442_v29  ;;  %v4540_v49 = vpop.xlane.xlu0 %4539  ;;  %4847 = vst.msk [vmem:[%s8446_s11 + $0x10] sm:$0xff] %vm4457_vm7, %v4727_v16  ;;  %v4730_v43 = vadd.f32 %v5948_v52, %v8440_v12  ;;  %v4721_v28 = vpop.f32.mrb[67].mxu1 }
 0x2df   : > { %4602 = vst.msk [vmem:[%s8366_s16 + $0x80] sm:$0xff] %vm4457_vm7, %v4540_v49  ;;  %v4543_v45 = vpop.xlane.xlu1 %4542  ;;  %4845 = vst.msk [vmem:[%s8446_s11] sm:$0xff] %vm4457_vm7, %v4719_v18  ;;  %v4722_v6 = vadd.f32 %v4721_v28, %v8440_v12 }
 0x2e0   : > { %4603 = vst.msk [vmem:[%s8366_s16 + $0x88] sm:$0xff] %vm4457_vm7, %v4543_v45  ;;  %4848 = vst.msk [vmem:[%s8446_s11 + $0x18] sm:$0xff] %vm4457_vm7, %v4730_v43 }
 0x2e1   : > { %4846 = vst.msk [vmem:[%s8446_s11 + $0x8] sm:$0xff] %vm4457_vm7, %v4722_v6 }
 0x2e2   : > { %v4396_v19 = vpop.xlane.xlu0 %4395 }
 0x2e3   : > { %v4447_v53 = vmul.f32 0.03125, %v4396_v19  ;;  %v4399_v63 = vpop.xlane.xlu1 %4398  ;;  %v5951_v59 = vpop.f32.mrb[68].mxu1 }
 0x2e4   : > { %v4448_v9 = vmul.f32 0.03125, %v4399_v63  ;;  %v4743_v54 = vadd.f32 %v5951_v59, %v8440_v12  ;;  %v4734_v50 = vpop.f32.mrb[69].mxu1 }
 0x2e5   : > { %4480 = vst.msk [vmem:[%s8360_s25 + $0xb0] sm:$0xff] %vm4457_vm7, %v4447_v53  ;;  %v4735_v15 = vadd.f32 %v4734_v50, %v8440_v12  ;;  %v5952_v38 = vpop.f32.mrb[70].mxu1 }
 0x2e6   : > { %4481 = vst.msk [vmem:[%s8360_s25 + $0xb8] sm:$0xff] %vm4457_vm7, %v4448_v9  ;;  %v4558_v30 = vpop.xlane.xlu0 %4557  ;;  %4851 = vst.msk [vmem:[%s8446_s11 + $0x30] sm:$0xff] %vm4457_vm7, %v4743_v54  ;;  %v4746_v13 = vadd.f32 %v5952_v38, %v8440_v12  ;;  %v4737_v22 = vpop.f32.mrb[71].mxu1 }
 0x2e7   : > { %4608 = vst.msk [vmem:[%s8366_s16 + $0xb0] sm:$0xff] %vm4457_vm7, %v4558_v30  ;;  %v4561_v44 = vpop.xlane.xlu1 %4560  ;;  %4849 = vst.msk [vmem:[%s8446_s11 + $0x20] sm:$0xff] %vm4457_vm7, %v4735_v15  ;;  %v4738_v60 = vadd.f32 %v4737_v22, %v8440_v12 }
 0x2e8   : > { %4609 = vst.msk [vmem:[%s8366_s16 + $0xb8] sm:$0xff] %vm4457_vm7, %v4561_v44  ;;  %4852 = vst.msk [vmem:[%s8446_s11 + $0x38] sm:$0xff] %vm4457_vm7, %v4746_v13 }
 0x2e9   : > { %4850 = vst.msk [vmem:[%s8446_s11 + $0x28] sm:$0xff] %vm4457_vm7, %v4738_v60 }
 0x2ea   : > { %v4390_v36 = vpop.xlane.xlu0 %4389 }
 0x2eb   : > { %v4445_v41 = vmul.f32 0.03125, %v4390_v36  ;;  %v4393_v2 = vpop.xlane.xlu1 %4392  ;;  %v5955_v31 = vpop.f32.mrb[72].mxu1 }
 0x2ec   : > { %v4446_v10 = vmul.f32 0.03125, %v4393_v2  ;;  %v4759_v26 = vadd.f32 %v5955_v31, %v8440_v12  ;;  %v4750_v1 = vpop.f32.mrb[73].mxu1 }
 0x2ed   : > { %4478 = vst.msk [vmem:[%s8360_s25 + $0xa0] sm:$0xff] %vm4457_vm7, %v4445_v41  ;;  %v4751_v58 = vadd.f32 %v4750_v1, %v8440_v12  ;;  %v5956_v61 = vpop.f32.mrb[74].mxu1 }
 0x2ee   : > { %4479 = vst.msk [vmem:[%s8360_s25 + $0xa8] sm:$0xff] %vm4457_vm7, %v4446_v10  ;;  %v4552_v40 = vpop.xlane.xlu0 %4551  ;;  %4855 = vst.msk [vmem:[%s8446_s11 + $0x50] sm:$0xff] %vm4457_vm7, %v4759_v26  ;;  %v4762_v39 = vadd.f32 %v5956_v61, %v8440_v12  ;;  %v4753_v48 = vpop.f32.mrb[75].mxu1 }
 0x2ef   : > { %4606 = vst.msk [vmem:[%s8366_s16 + $0xa0] sm:$0xff] %vm4457_vm7, %v4552_v40  ;;  %v4555_v47 = vpop.xlane.xlu1 %4554  ;;  %4853 = vst.msk [vmem:[%s8446_s11 + $0x40] sm:$0xff] %vm4457_vm7, %v4751_v58  ;;  %v4754_v25 = vadd.f32 %v4753_v48, %v8440_v12 }
 0x2f0   : > { %4607 = vst.msk [vmem:[%s8366_s16 + $0xa8] sm:$0xff] %vm4457_vm7, %v4555_v47  ;;  %4856 = vst.msk [vmem:[%s8446_s11 + $0x58] sm:$0xff] %vm4457_vm7, %v4762_v39 }
 0x2f1   : > { %4854 = vst.msk [vmem:[%s8446_s11 + $0x48] sm:$0xff] %vm4457_vm7, %v4754_v25 }
 0x2f2   : > { %v4408_v21 = vpop.xlane.xlu0 %4407 }
 0x2f3   : > { %v4451_v56 = vmul.f32 0.03125, %v4408_v21  ;;  %v4411_v7 = vpop.xlane.xlu1 %4410  ;;  %v5959_v46 = vpop.f32.mrb[76].mxu1 }
 0x2f4   : > { %v4452_v57 = vmul.f32 0.03125, %v4411_v7  ;;  %v4775_v27 = vadd.f32 %v5959_v46, %v8440_v12  ;;  %v4766_v24 = vpop.f32.mrb[77].mxu1 }
 0x2f5   : > { %4484 = vst.msk [vmem:[%s8360_s25 + $0xd0] sm:$0xff] %vm4457_vm7, %v4451_v56  ;;  %v4767_v4 = vadd.f32 %v4766_v24, %v8440_v12  ;;  %v5960_v3 = vpop.f32.mrb[78].mxu1 }
 0x2f6   : > { %4485 = vst.msk [vmem:[%s8360_s25 + $0xd8] sm:$0xff] %vm4457_vm7, %v4452_v57  ;;  %v4570_v5 = vpop.xlane.xlu0 %4569  ;;  %4859 = vst.msk [vmem:[%s8446_s11 + $0x70] sm:$0xff] %vm4457_vm7, %v4775_v27  ;;  %v4778_v33 = vadd.f32 %v5960_v3, %v8440_v12  ;;  %v4769_v23 = vpop.f32.mrb[79].mxu1 }
 0x2f7   : > { %4612 = vst.msk [vmem:[%s8366_s16 + $0xd0] sm:$0xff] %vm4457_vm7, %v4570_v5  ;;  %v4573_v0 = vpop.xlane.xlu1 %4572  ;;  %4857 = vst.msk [vmem:[%s8446_s11 + $0x60] sm:$0xff] %vm4457_vm7, %v4767_v4  ;;  %v4770_v37 = vadd.f32 %v4769_v23, %v8440_v12 }
 0x2f8   : > { %4613 = vst.msk [vmem:[%s8366_s16 + $0xd8] sm:$0xff] %vm4457_vm7, %v4573_v0  ;;  %4860 = vst.msk [vmem:[%s8446_s11 + $0x78] sm:$0xff] %vm4457_vm7, %v4778_v33 }
 0x2f9   : > { %4858 = vst.msk [vmem:[%s8446_s11 + $0x68] sm:$0xff] %vm4457_vm7, %v4770_v37 }
 0x2fa   : > { %v4402_v17 = vpop.xlane.xlu0 %4401 }
 0x2fb   : > { %v4449_v8 = vmul.f32 0.03125, %v4402_v17  ;;  %v4405_v34 = vpop.xlane.xlu1 %4404  ;;  %v5963_v20 = vpop.f32.mrb[80].mxu1 }
 0x2fc   : > { %v4450_v14 = vmul.f32 0.03125, %v4405_v34  ;;  %v4791_v35 = vadd.f32 %v5963_v20, %v8440_v12  ;;  %v4782_v11 = vpop.f32.mrb[81].mxu1 }
 0x2fd   : > { %4482 = vst.msk [vmem:[%s8360_s25 + $0xc0] sm:$0xff] %vm4457_vm7, %v4449_v8  ;;  %v4783_v32 = vadd.f32 %v4782_v11, %v8440_v12  ;;  %v5964_v62 = vpop.f32.mrb[82].mxu1 }
 0x2fe   : > { %4483 = vst.msk [vmem:[%s8360_s25 + $0xc8] sm:$0xff] %vm4457_vm7, %v4450_v14  ;;  %v4564_v51 = vpop.xlane.xlu0 %4563  ;;  %4863 = vst.msk [vmem:[%s8446_s11 + $0x90] sm:$0xff] %vm4457_vm7, %v4791_v35  ;;  %v4794_v42 = vadd.f32 %v5964_v62, %v8440_v12  ;;  %v4785_v16 = vpop.f32.mrb[83].mxu1 }
 0x2ff   : > { %4610 = vst.msk [vmem:[%s8366_s16 + $0xc0] sm:$0xff] %vm4457_vm7, %v4564_v51  ;;  %v4567_v29 = vpop.xlane.xlu1 %4566  ;;  %4861 = vst.msk [vmem:[%s8446_s11 + $0x80] sm:$0xff] %vm4457_vm7, %v4783_v32  ;;  %v4786_v55 = vadd.f32 %v4785_v16, %v8440_v12 }
 0x300   : > { %4611 = vst.msk [vmem:[%s8366_s16 + $0xc8] sm:$0xff] %vm4457_vm7, %v4567_v29  ;;  %4864 = vst.msk [vmem:[%s8446_s11 + $0x98] sm:$0xff] %vm4457_vm7, %v4794_v42 }
 0x301   : > { %4862 = vst.msk [vmem:[%s8446_s11 + $0x88] sm:$0xff] %vm4457_vm7, %v4786_v55 }
 0x302   : > { %v4420_v49 = vpop.xlane.xlu0 %4419 }
 0x303   : > { %v4455_v18 = vmul.f32 0.03125, %v4420_v49  ;;  %v4423_v52 = vpop.xlane.xlu1 %4422  ;;  %v5967_v43 = vpop.f32.mrb[84].mxu1 }
 0x304   : > { %v4456_v45 = vmul.f32 0.03125, %v4423_v52  ;;  %v4807_v28 = vadd.f32 %v5967_v43, %v8440_v12  ;;  %v4798_v6 = vpop.f32.mrb[85].mxu1 }
 0x305   : > { %4488 = vst.msk [vmem:[%s8360_s25 + $0xf0] sm:$0xff] %vm4457_vm7, %v4455_v18  ;;  %v4799_v53 = vadd.f32 %v4798_v6, %v8440_v12  ;;  %v5968_v63 = vpop.f32.mrb[86].mxu1 }
 0x306   : > { %4489 = vst.msk [vmem:[%s8360_s25 + $0xf8] sm:$0xff] %vm4457_vm7, %v4456_v45  ;;  %v4414_v19 = vpop.xlane.xlu0 %4413  ;;  %4867 = vst.msk [vmem:[%s8446_s11 + $0xb0] sm:$0xff] %vm4457_vm7, %v4807_v28  ;;  %v4810_v59 = vadd.f32 %v5968_v63, %v8440_v12  ;;  %v4801_v50 = vpop.f32.mrb[87].mxu1 }
 0x307   : > { %v4453_v9 = vmul.f32 0.03125, %v4414_v19  ;;  %v4417_v54 = vpop.xlane.xlu1 %4416  ;;  %4865 = vst.msk [vmem:[%s8446_s11 + $0xa0] sm:$0xff] %vm4457_vm7, %v4799_v53  ;;  %v4802_v15 = vadd.f32 %v4801_v50, %v8440_v12 }
 0x308   : > { %v4454_v30 = vmul.f32 0.03125, %v4417_v54  ;;  %4868 = vst.msk [vmem:[%s8446_s11 + $0xb8] sm:$0xff] %vm4457_vm7, %v4810_v59 }
 0x309   : > { %4486 = vst.msk [vmem:[%s8360_s25 + $0xe0] sm:$0xff] %vm4457_vm7, %v4453_v9  ;;  %4866 = vst.msk [vmem:[%s8446_s11 + $0xa8] sm:$0xff] %vm4457_vm7, %v4802_v15 }
 0x30a   : > { %4487 = vst.msk [vmem:[%s8360_s25 + $0xe8] sm:$0xff] %vm4457_vm7, %v4454_v30  ;;  %v4576_v38 = vpop.xlane.xlu0 %4575 }
 0x30b   : > { %4614 = vst.msk [vmem:[%s8366_s16 + $0xe0] sm:$0xff] %vm4457_vm7, %v4576_v38  ;;  %v4579_v44 = vpop.xlane.xlu1 %4578  ;;  %v5971_v13 = vpop.f32.mrb[88].mxu1 }
 0x30c   : > { %4615 = vst.msk [vmem:[%s8366_s16 + $0xe8] sm:$0xff] %vm4457_vm7, %v4579_v44  ;;  %v4823_v22 = vadd.f32 %v5971_v13, %v8440_v12  ;;  %v4814_v60 = vpop.f32.mrb[89].mxu1 }
 0x30d   : > { %v4815_v41 = vadd.f32 %v4814_v60, %v8440_v12  ;;  %v5972_v2 = vpop.f32.mrb[90].mxu1 }
 0x30e   : > { %v4582_v36 = vpop.xlane.xlu0 %4581  ;;  %4871 = vst.msk [vmem:[%s8446_s11 + $0xd0] sm:$0xff] %vm4457_vm7, %v4823_v22  ;;  %v4826_v10 = vadd.f32 %v5972_v2, %v8440_v12  ;;  %v4817_v26 = vpop.f32.mrb[91].mxu1 }
 0x30f   : > { %4616 = vst.msk [vmem:[%s8366_s16 + $0xf0] sm:$0xff] %vm4457_vm7, %v4582_v36  ;;  %v4585_v31 = vpop.xlane.xlu1 %4584  ;;  %4869 = vst.msk [vmem:[%s8446_s11 + $0xc0] sm:$0xff] %vm4457_vm7, %v4815_v41  ;;  %v4818_v1 = vadd.f32 %v4817_v26, %v8440_v12 }
 0x310   : > { %4617 = vst.msk [vmem:[%s8366_s16 + $0xf8] sm:$0xff] %vm4457_vm7, %v4585_v31  ;;  %4872 = vst.msk [vmem:[%s8446_s11 + $0xd8] sm:$0xff] %vm4457_vm7, %v4826_v10 }
 0x311   : > { %4870 = vst.msk [vmem:[%s8446_s11 + $0xc8] sm:$0xff] %vm4457_vm7, %v4818_v1 }
 0x313   : > { %v5975_v40 = vpop.f32.mrb[92].mxu1 }
 0x314   : > { %v4839_v58 = vadd.f32 %v5975_v40, %v8440_v12  ;;  %v4830_v61 = vpop.f32.mrb[93].mxu1 }
 0x315   : > { %v4831_v47 = vadd.f32 %v4830_v61, %v8440_v12  ;;  %v5976_v39 = vpop.f32.mrb[94].mxu1 }
 0x316   : > { %4875 = vst.msk [vmem:[%s8446_s11 + $0xf0] sm:$0xff] %vm4457_vm7, %v4839_v58  ;;  %v4842_v48 = vadd.f32 %v5976_v39, %v8440_v12  ;;  %v4833_v25 = vpop.f32.mrb[95].mxu1 }
 0x317   : > { %4873 = vst.msk [vmem:[%s8446_s11 + $0xe0] sm:$0xff] %vm4457_vm7, %v4831_v47  ;;  %v4834_v21 = vadd.f32 %v4833_v25, %v8440_v12 }
 0x318   : > { %4876 = vst.msk [vmem:[%s8446_s11 + $0xf8] sm:$0xff] %vm4457_vm7, %v4842_v48 }
 0x319   : > { %4874 = vst.msk [vmem:[%s8446_s11 + $0xe8] sm:$0xff] %vm4457_vm7, %v4834_v21 }
 0x31a PF: > { %s22_s15 = sadd.s32 1, %s6310_s15  }
 0x31b   : > { %p19_p4 = scmp.ge.s32.totalorder %s22_s15, 4  }
 0x31d   :  { %21 = sbr.rel (!%p19_p4) target bundleno = 2 (0x2), region = 122 }

</bundles_post_ra>
